<compile_context>
chip_gen: v7x
topology: tpu7x:2x2x1
jax: 0.10.0
libtpu: 0.0.40
codegen_flags: <defaults>
</compile_context>

<pallas_src>
import math
import functools

import jax
import jax.numpy as jnp
from jax.experimental import pallas as pl
from jax.experimental.pallas import tpu as pltpu

EPS = 1e-5  # nn.LayerNorm default eps (norm_layer=nn.LayerNorm in __init__)


# ----------------------------------------------------------------------------
# helpers
# ----------------------------------------------------------------------------
def _ln(v_f32, w_ref, b_ref):
    """LayerNorm over last dim; v is f32, weights are refs of shape (1, D)."""
    mu = jnp.mean(v_f32, axis=-1, keepdims=True)
    var = jnp.mean(jnp.square(v_f32 - mu), axis=-1, keepdims=True)
    return ((v_f32 - mu) * jax.lax.rsqrt(var + EPS)
            * w_ref[...].astype(jnp.float32) + b_ref[...].astype(jnp.float32))


def _pick_tile(dim, cap, align):
    """Largest multiple of `align` <= cap that divides dim; else the full dim."""
    if dim <= cap:
        return dim
    t = (cap // align) * align
    while t >= align:
        if dim % t == 0:
            return t
        t -= align
    return dim


# ----------------------------------------------------------------------------
# patch-embed: tiled matmul + bias (f32 accumulator, init/finalize via pl.when)
# ----------------------------------------------------------------------------
def matmul_bias_kernel(a_ref, w_ref, b_ref, o_ref, acc_ref):
    k = pl.program_id(2)

    @pl.when(k == 0)
    def _():
        acc_ref[...] = jnp.zeros_like(acc_ref)

    acc_ref[...] += jnp.dot(a_ref[...], w_ref[...],
                            preferred_element_type=jnp.float32)

    @pl.when(k == pl.num_programs(2) - 1)
    def _():
        o_ref[...] = (acc_ref[...] + b_ref[...].astype(jnp.float32)).astype(o_ref.dtype)


def matmul_bias(a, w, b, *, tm_cap=256, tn_cap=256, tk_cap=512):
    M, K = a.shape
    _, N = w.shape
    tm = _pick_tile(M, tm_cap, 8)
    tn = _pick_tile(N, tn_cap, 128)
    tk = _pick_tile(K, tk_cap, 128)
    return pl.pallas_call(
        matmul_bias_kernel,
        out_shape=jax.ShapeDtypeStruct((M, N), a.dtype),
        grid=(M // tm, N // tn, K // tk),
        in_specs=[pl.BlockSpec((tm, tk), lambda i, j, k: (i, k)),
                  pl.BlockSpec((tk, tn), lambda i, j, k: (k, j)),
                  pl.BlockSpec((1, tn), lambda i, j, k: (0, j))],
        out_specs=pl.BlockSpec((tm, tn), lambda i, j, k: (i, j)),
        scratch_shapes=[pltpu.VMEM((tm, tn), jnp.float32)],
        compiler_params=pltpu.CompilerParams(
            dimension_semantics=("parallel", "parallel", "arbitrary")),
    )(a, w, b)


# ----------------------------------------------------------------------------
# fused transformer block: grid = (B, Hm_tiles)
# ----------------------------------------------------------------------------
def _block_body(pos_ref, prew_ref, preb_ref, x_ref,
                ln1w_ref, ln1b_ref, wqkv_ref, bqkv_ref, wproj_ref, bproj_ref,
                ln2w_ref, ln2b_ref, wfc1_ref, bfc1_ref, wfc2_ref, bfc2_ref,
                o_ref, xmid_ref, xn2_ref, acc_ref, *, num_heads, seq_len):
    hm = pl.program_id(1)
    cdt = x_ref.dtype                      # compute dtype (bf16) for MXU inputs
    Sp = x_ref.shape[1]
    D = x_ref.shape[2]
    hd = D // num_heads
    scale = 1.0 / math.sqrt(hd)

    # ---- attention + residual: once per batch element (first hidden tile) ----
    @pl.when(hm == 0)
    def _attn():
        x = x_ref[0].astype(jnp.float32)                      # [Sp, D]
        if pos_ref is not None:                               # fused pos-add + norm_pre
            x = x + pos_ref[0].astype(jnp.float32)
            x = _ln(x, prew_ref, preb_ref)

        xn = _ln(x, ln1w_ref, ln1b_ref).astype(cdt)
        qkv = (jnp.dot(xn, wqkv_ref[...], preferred_element_type=jnp.float32)
               + bqkv_ref[...].astype(jnp.float32)).astype(cdt)   # [Sp, 3D]

        if seq_len < Sp:                                      # mask padded key columns
            kpad = jax.lax.broadcasted_iota(jnp.int32, (1, Sp), 1) >= seq_len
            neg = jnp.where(kpad, -1e30, 0.0).astype(jnp.float32)
        else:
            neg = None

        attn = jnp.zeros((Sp, D), jnp.float32)
        for h in range(num_heads):
            qh = qkv[:, h * hd:(h + 1) * hd]
            kh = qkv[:, D + h * hd:D + (h + 1) * hd]
            vh = qkv[:, 2 * D + h * hd:2 * D + (h + 1) * hd]
            # q @ k^T without an explicit transpose (contract on last dims)
            s = jax.lax.dot_general(qh, kh, (((1,), (1,)), ((), ())),
                                    preferred_element_type=jnp.float32) * scale
            if neg is not None:
                s = s + neg
            s = s - jnp.max(s, axis=-1, keepdims=True)
            p = jnp.exp(s)
            p = p * pl.reciprocal(jnp.sum(p, axis=-1, keepdims=True), approx=True)
            hv = jnp.dot(p.astype(cdt), vh, preferred_element_type=jnp.float32)
            # accumulate the output projection per head (sublane row-slice of wproj; no concat)
            attn = attn + jnp.dot(hv.astype(cdt), wproj_ref[h * hd:(h + 1) * hd, :],
                                  preferred_element_type=jnp.float32)

        x_mid = x + attn + bproj_ref[...].astype(jnp.float32)   # drop_path = identity
        xmid_ref[...] = x_mid
        xn2_ref[...] = _ln(x_mid, ln2w_ref, ln2b_ref).astype(xn2_ref.dtype)
        acc_ref[...] = jnp.zeros_like(acc_ref)

    # ---- MLP: accumulate over hidden-dim tiles (f32 accumulator) ----
    h1 = (jnp.dot(xn2_ref[...], wfc1_ref[...], preferred_element_type=jnp.float32)
          + bfc1_ref[...].astype(jnp.float32))
    h1 = 0.5 * h1 * (1.0 + jax.lax.erf(h1 * (1.0 / math.sqrt(2.0))))   # exact GELU
    acc_ref[...] += jnp.dot(h1.astype(cdt), wfc2_ref[...],
                            preferred_element_type=jnp.float32)

    @pl.when(hm == pl.num_programs(1) - 1)
    def _finish():
        o_ref[0] = (xmid_ref[...] + acc_ref[...]
                    + bfc2_ref[...].astype(jnp.float32)).astype(o_ref.dtype)


def block_kernel_fused_pre(*refs, num_heads, seq_len):
    _block_body(*refs, num_heads=num_heads, seq_len=seq_len)


def block_kernel(*refs, num_heads, seq_len):
    _block_body(None, None, None, *refs, num_heads=num_heads, seq_len=seq_len)


def transformer_block(x, blk, *, num_heads, seq_len, pre=None, hidden_tile=512):
    B, Sp, D = x.shape
    Hm = blk["wfc1"].shape[1]
    tHm = _pick_tile(Hm, hidden_tile, 128)
    n_hm = Hm // tHm

    def wspec(shape):  # weights: block index constant over the whole grid -> fetched once
        return pl.BlockSpec(shape, lambda b, h: (0, 0))

    in_specs, args = [], []
    if pre is not None:
        pos, prew, preb = pre
        in_specs += [pl.BlockSpec((1, Sp, D), lambda b, h: (0, 0, 0)),
                     wspec((1, D)), wspec((1, D))]
        args += [pos, prew, preb]
        kern = functools.partial(block_kernel_fused_pre,
                                 num_heads=num_heads, seq_len=seq_len)
    else:
        kern = functools.partial(block_kernel, num_heads=num_heads, seq_len=seq_len)

    in_specs += [
        pl.BlockSpec((1, Sp, D), lambda b, h: (b, 0, 0)),      # tokens
        wspec((1, D)), wspec((1, D)),                          # ln1
        wspec((D, 3 * D)), wspec((1, 3 * D)),                  # qkv
        wspec((D, D)), wspec((1, D)),                          # proj
        wspec((1, D)), wspec((1, D)),                          # ln2
        pl.BlockSpec((D, tHm), lambda b, h: (0, h)),           # fc1 weight tile
        pl.BlockSpec((1, tHm), lambda b, h: (0, h)),           # fc1 bias tile
        pl.BlockSpec((tHm, D), lambda b, h: (h, 0)),           # fc2 weight tile
        wspec((1, D)),                                         # fc2 bias
    ]
    args += [x, blk["ln1_w"], blk["ln1_b"], blk["wqkv"], blk["bqkv"],
             blk["wproj"], blk["bproj"], blk["ln2_w"], blk["ln2_b"],
             blk["wfc1"], blk["bfc1"], blk["wfc2"], blk["bfc2"]]

    return pl.pallas_call(
        kern,
        out_shape=jax.ShapeDtypeStruct((B, Sp, D), x.dtype),
        grid=(B, n_hm),
        in_specs=in_specs,
        out_specs=pl.BlockSpec((1, Sp, D), lambda b, h: (b, 0, 0)),
        scratch_shapes=[pltpu.VMEM((Sp, D), jnp.float32),   # residual after attention
                        pltpu.VMEM((Sp, D), x.dtype),       # ln2 output (MXU input)
                        pltpu.VMEM((Sp, D), jnp.float32)],  # MLP accumulator
        compiler_params=pltpu.CompilerParams(
            dimension_semantics=("parallel", "arbitrary"),
            vmem_limit_bytes=64 * 1024 * 1024),
    )(*args)


# ----------------------------------------------------------------------------
# final LayerNorm on the cls token (tiny)
# ----------------------------------------------------------------------------
def ln_kernel(x_ref, w_ref, b_ref, o_ref):
    x = x_ref[...].astype(jnp.float32)
    o_ref[...] = _ln(x, w_ref, b_ref).astype(o_ref.dtype)


def layernorm(x, w, b, out_dtype=jnp.float32):
    M, D = x.shape
    full = lambda shape: pl.BlockSpec(shape, lambda i: (0, 0))
    return pl.pallas_call(
        ln_kernel,
        out_shape=jax.ShapeDtypeStruct((M, D), out_dtype),
        grid=(1,),
        in_specs=[full((M, D)), full((1, D)), full((1, D))],
        out_specs=full((M, D)),
    )(x, w, b)


# ----------------------------------------------------------------------------
# parameter init (deterministic, mirrors the module's __init__ / _init_weights)
# ----------------------------------------------------------------------------
def _xavier_uniform(key, fan_in, fan_out):
    a = math.sqrt(6.0 / (fan_in + fan_out))
    return jax.random.uniform(key, (fan_in, fan_out), jnp.float32, -a, a)


def init_params(key, *, in_chans, patch_size, embed_dim, depth, num_heads,
                mlp_ratio, num_patches):
    D = embed_dim
    Hm = int(D * mlp_ratio)
    K = in_chans * patch_size * patch_size
    S = num_patches + 1

    keys = jax.random.split(key, 4 + depth)
    params = {
        "patch_w": _xavier_uniform(keys[0], K, D),
        "patch_b": jnp.zeros((1, D), jnp.float32),
        "cls_token": 0.02 * jax.random.normal(keys[1], (1, 1, D), jnp.float32),
        "pos_embed": 0.02 * jax.random.truncated_normal(keys[2], -2.0, 2.0,
                                                        (1, S, D), jnp.float32),
        "norm_pre_w": jnp.ones((1, D), jnp.float32),
        "norm_pre_b": jnp.zeros((1, D), jnp.float32),
        "norm_w": jnp.ones((1, D), jnp.float32),
        "norm_b": jnp.zeros((1, D), jnp.float32),
        "blocks": [],
    }
    for i in range(depth):
        bk = jax.random.split(keys[4 + i], 4)
        params["blocks"].append({
            "ln1_w": jnp.ones((1, D), jnp.float32),
            "ln1_b": jnp.zeros((1, D), jnp.float32),
            "wqkv": _xavier_uniform(bk[0], D, 3 * D),
            "bqkv": jnp.zeros((1, 3 * D), jnp.float32),
            "wproj": _xavier_uniform(bk[1], D, D),
            "bproj": jnp.zeros((1, D), jnp.float32),
            "ln2_w": jnp.ones((1, D), jnp.float32),
            "ln2_b": jnp.zeros((1, D), jnp.float32),
            "wfc1": _xavier_uniform(bk[2], D, Hm),
            "bfc1": jnp.zeros((1, Hm), jnp.float32),
            "wfc2": _xavier_uniform(bk[3], Hm, D),
            "bfc2": jnp.zeros((1, D), jnp.float32),
        })
    return params


# ----------------------------------------------------------------------------
# full forward (mask_ratio=0, return_ids=False -> head is Identity)
# ----------------------------------------------------------------------------
def vit_forward(imgs, params, *, patch_size, num_heads,
                compute_dtype=jnp.bfloat16, hidden_tile=512):
    B, C, Himg, Wimg = imgs.shape
    p = patch_size
    gh, gw = Himg // p, Wimg // p

    # cls token carries pos_embed[:, 0] here AND receives it again via the fused
    # full-pos add inside the first block (matches the reference exactly).
    cls = params["cls_token"] + params["pos_embed"][:, :1, :]
    params = jax.tree_util.tree_map(lambda a: a.astype(compute_dtype), params)
    D = params["patch_w"].shape[1]

    # patch extraction (glue) + tiled patch-embed matmul (Pallas)
    patches = (imgs.reshape(B, C, gh, p, gw, p)
               .transpose(0, 2, 4, 1, 3, 5)            # (B, gh, gw, C, ph, pw)
               .reshape(B * gh * gw, C * p * p)).astype(compute_dtype)
    tok = matmul_bias(patches, params["patch_w"], params["patch_b"])
    tok = tok.reshape(B, gh * gw, D)

    cls = jnp.broadcast_to(cls.astype(compute_dtype), (B, 1, D))
    x = jnp.concatenate([cls, tok], axis=1)             # [B, S, D]
    S = x.shape[1]
    Sp = ((S + 7) // 8) * 8                             # pad tokens to a sublane multiple
    if Sp != S:
        x = jnp.pad(x, ((0, 0), (0, Sp - S), (0, 0)))
        pos = jnp.pad(params["pos_embed"], ((0, 0), (0, Sp - S), (0, 0)))
    else:
        pos = params["pos_embed"]

    assert params["blocks"], "depth must be >= 1"
    for i, blk in enumerate(params["blocks"]):
        pre = (pos, params["norm_pre_w"], params["norm_pre_b"]) if i == 0 else None
        x = transformer_block(x, blk, num_heads=num_heads, seq_len=S, pre=pre,
                              hidden_tile=hidden_tile)

    # final norm on cls token only (LayerNorm is per-token -> equivalent)
    cls_out = layernorm(x[:, 0, :], params["norm_w"], params["norm_b"])
    return cls_out                                      # head = nn.Identity (num_classes=0)


# ----------------------------------------------------------------------------
if __name__ == "__main__":
    # small config consistent with the module's forward
    B, C, IMG, P = 2, 4, 16, 4
    EMBED, DEPTH, HEADS, MLP_RATIO = 32, 2, 4, 4.0
    NUM_PATCHES = (IMG // P) ** 2

    key = jax.random.PRNGKey(0)
    k_params, k_x = jax.random.split(key)
    params = init_params(
        k_params, in_chans=C, patch_size=P, embed_dim=EMBED, depth=DEPTH,
        num_heads=HEADS, mlp_ratio=MLP_RATIO, num_patches=NUM_PATCHES,
    )
    imgs = jax.random.normal(k_x, (B, C, IMG, IMG), jnp.float32)

    fwd = jax.jit(functools.partial(vit_forward, patch_size=P, num_heads=HEADS))
    out = jax.block_until_ready(fwd(imgs, params))
    assert out.shape == (B, EMBED), out.shape
    print("KERNEL_OK")
</pallas_src>

<mosaic_0001>
module attributes {stable_mosaic.version = 11 : i64} {
  func.func @matmul_bias_kernel(%arg0: i32, %arg1: i32, %arg2: i32, %arg3: memref<32x64xbf16, #tpu.memory_space<vmem>>, %arg4: memref<64x32xbf16, #tpu.memory_space<vmem>>, %arg5: memref<1x32xbf16, #tpu.memory_space<vmem>>, %arg6: memref<32x32xbf16, #tpu.memory_space<vmem>>, %arg7: memref<32x32xf32, #tpu.memory_space<vmem>>) attributes {dimension_semantics = [#tpu.dimension_semantics<parallel>, #tpu.dimension_semantics<parallel>, #tpu.dimension_semantics<arbitrary>], iteration_bounds = array<i64: 1, 1, 1>, scalar_prefetch = 0 : i64, scratch_operands = 1 : i64, tpu.core_type = #tpu.core_type<tc>, window_params = [{transform_indices = @transform_0, window_bounds = array<i64: 32, 64>}, {transform_indices = @transform_1, window_bounds = array<i64: 64, 32>}, {transform_indices = @transform_2, window_bounds = array<i64: 1, 32>}, {transform_indices = @transform_3, window_bounds = array<i64: 32, 32>}]} {
    %c0_i32 = arith.constant 0 : i32
    %0 = arith.cmpi eq, %arg2, %c0_i32 : i32
    %1 = arith.extui %0 : i1 to i32
    %c0_i32_0 = arith.constant 0 : i32
    %2 = arith.cmpi ne, %1, %c0_i32_0 : i32
    scf.if %2 {
      %cst_10 = arith.constant 0.000000e+00 : f32
      %12 = vector.broadcast %cst_10 : f32 to vector<32x32xf32>
      %c0_11 = arith.constant 0 : index
      %c0_12 = arith.constant 0 : index
      %13 = vector.load %arg7[%c0_11, %c0_12] : memref<32x32xf32, #tpu.memory_space<vmem>>, vector<32x32xf32>
      tpu.vector_store %arg7[%c0_11, %c0_12], %12 {strides = array<i32>} : memref<32x32xf32, #tpu.memory_space<vmem>>, vector<32x32xf32>,
    } else {
    }
    %c0 = arith.constant 0 : index
    %c0_1 = arith.constant 0 : index
    %3 = vector.load %arg7[%c0, %c0_1] : memref<32x32xf32, #tpu.memory_space<vmem>>, vector<32x32xf32>
    %c0_2 = arith.constant 0 : index
    %c0_3 = arith.constant 0 : index
    %4 = vector.load %arg3[%c0_2, %c0_3] : memref<32x64xbf16, #tpu.memory_space<vmem>>, vector<32x64xbf16>
    %c0_4 = arith.constant 0 : index
    %c0_5 = arith.constant 0 : index
    %5 = vector.load %arg4[%c0_4, %c0_5] : memref<64x32xbf16, #tpu.memory_space<vmem>>, vector<64x32xbf16>
    %cst = arith.constant dense<0.000000e+00> : vector<32x32xf32>
    %6 = tpu.matmul %4, %5, %cst {dimension_numbers = #tpu.dot_dimension_numbers<[1], [0], [0], [1], [0, 0, 1, 1], [], []>} : vector<32x64xbf16>, vector<64x32xbf16>, vector<32x32xf32> -> vector<32x32xf32>
    %7 = arith.addf %3, %6 : vector<32x32xf32>
    %c0_6 = arith.constant 0 : index
    %c0_7 = arith.constant 0 : index
    %8 = vector.load %arg7[%c0_6, %c0_7] : memref<32x32xf32, #tpu.memory_space<vmem>>, vector<32x32xf32>
    tpu.vector_store %arg7[%c0_6, %c0_7], %7 {strides = array<i32>} : memref<32x32xf32, #tpu.memory_space<vmem>>, vector<32x32xf32>,
    %c0_i32_8 = arith.constant 0 : i32
    %9 = arith.cmpi eq, %arg2, %c0_i32_8 : i32
    %10 = arith.extui %9 : i1 to i32
    %c0_i32_9 = arith.constant 0 : i32
    %11 = arith.cmpi ne, %10, %c0_i32_9 : i32
    scf.if %11 {
      %c0_10 = arith.constant 0 : index
      %c0_11 = arith.constant 0 : index
      %12 = vector.load %arg7[%c0_10, %c0_11] : memref<32x32xf32, #tpu.memory_space<vmem>>, vector<32x32xf32>
      %c0_12 = arith.constant 0 : index
      %c0_13 = arith.constant 0 : index
      %13 = vector.load %arg5[%c0_12, %c0_13] : memref<1x32xbf16, #tpu.memory_space<vmem>>, vector<1x32xbf16>
      %14 = arith.extf %13 : vector<1x32xbf16> to vector<1x32xf32>
      %15 = vector.broadcast %14 : vector<1x32xf32> to vector<32x32xf32>
      %16 = arith.addf %12, %15 : vector<32x32xf32>
      %17 = arith.truncf %16 : vector<32x32xf32> to vector<32x32xbf16>
      %c0_14 = arith.constant 0 : index
      %c0_15 = arith.constant 0 : index
      %18 = vector.load %arg6[%c0_14, %c0_15] : memref<32x32xbf16, #tpu.memory_space<vmem>>, vector<32x32xbf16>
      tpu.vector_store %arg6[%c0_14, %c0_15], %17 {strides = array<i32>} : memref<32x32xbf16, #tpu.memory_space<vmem>>, vector<32x32xbf16>,
    } else {
    }
    return
  }
  func.func @transform_0(%arg0: i32, %arg1: i32, %arg2: i32) -> (i32, i32) {
    %c0_i32 = arith.constant 0 : i32
    return %arg0, %arg2 : i32, i32
  }
  func.func @transform_1(%arg0: i32, %arg1: i32, %arg2: i32) -> (i32, i32) {
    %c0_i32 = arith.constant 0 : i32
    return %arg2, %arg1 : i32, i32
  }
  func.func @transform_2(%arg0: i32, %arg1: i32, %arg2: i32) -> (i32, i32) {
    %c0_i32 = arith.constant 0 : i32
    %c0_i32_0 = arith.constant 0 : i32
    return %c0_i32, %arg1 : i32, i32
  }
  func.func @transform_3(%arg0: i32, %arg1: i32, %arg2: i32) -> (i32, i32) {
    %c0_i32 = arith.constant 0 : i32
    return %arg0, %arg1 : i32, i32
  }
}

module attributes {stable_mosaic.version = 11 : i64} {
  func.func @block_kernel_fused_pre(%arg0: i32, %arg1: i32, %arg2: memref<1x24x32xbf16, #tpu.memory_space<vmem>>, %arg3: memref<1x32xbf16, #tpu.memory_space<vmem>>, %arg4: memref<1x32xbf16, #tpu.memory_space<vmem>>, %arg5: memref<1x24x32xbf16, #tpu.memory_space<vmem>>, %arg6: memref<1x32xbf16, #tpu.memory_space<vmem>>, %arg7: memref<1x32xbf16, #tpu.memory_space<vmem>>, %arg8: memref<32x96xbf16, #tpu.memory_space<vmem>>, %arg9: memref<1x96xbf16, #tpu.memory_space<vmem>>, %arg10: memref<32x32xbf16, #tpu.memory_space<vmem>>, %arg11: memref<1x32xbf16, #tpu.memory_space<vmem>>, %arg12: memref<1x32xbf16, #tpu.memory_space<vmem>>, %arg13: memref<1x32xbf16, #tpu.memory_space<vmem>>, %arg14: memref<32x128xbf16, #tpu.memory_space<vmem>>, %arg15: memref<1x128xbf16, #tpu.memory_space<vmem>>, %arg16: memref<128x32xbf16, #tpu.memory_space<vmem>>, %arg17: memref<1x32xbf16, #tpu.memory_space<vmem>>, %arg18: memref<1x24x32xbf16, #tpu.memory_space<vmem>>, %arg19: memref<24x32xf32, #tpu.memory_space<vmem>>, %arg20: memref<24x32xbf16, #tpu.memory_space<vmem>>, %arg21: memref<24x32xf32, #tpu.memory_space<vmem>>) attributes {dimension_semantics = [#tpu.dimension_semantics<parallel>, #tpu.dimension_semantics<arbitrary>], iteration_bounds = array<i64: 2, 1>, scalar_prefetch = 0 : i64, scratch_operands = 3 : i64, tpu.core_type = #tpu.core_type<tc>, window_params = [{pipeline_mode = #tpu.pipeline_mode<synchronous>, transform_indices = @transform_0, window_bounds = array<i64: 1, 24, 32>}, {pipeline_mode = #tpu.pipeline_mode<synchronous>, transform_indices = @transform_1, window_bounds = array<i64: 1, 32>}, {pipeline_mode = #tpu.pipeline_mode<synchronous>, transform_indices = @transform_2, window_bounds = array<i64: 1, 32>}, {transform_indices = @transform_3, window_bounds = array<i64: 1, 24, 32>}, {pipeline_mode = #tpu.pipeline_mode<synchronous>, transform_indices = @transform_4, window_bounds = array<i64: 1, 32>}, {pipeline_mode = #tpu.pipeline_mode<synchronous>, transform_indices = @transform_5, window_bounds = array<i64: 1, 32>}, {pipeline_mode = #tpu.pipeline_mode<synchronous>, transform_indices = @transform_6, window_bounds = array<i64: 32, 96>}, {pipeline_mode = #tpu.pipeline_mode<synchronous>, transform_indices = @transform_7, window_bounds = array<i64: 1, 96>}, {pipeline_mode = #tpu.pipeline_mode<synchronous>, transform_indices = @transform_8, window_bounds = array<i64: 32, 32>}, {pipeline_mode = #tpu.pipeline_mode<synchronous>, transform_indices = @transform_9, window_bounds = array<i64: 1, 32>}, {pipeline_mode = #tpu.pipeline_mode<synchronous>, transform_indices = @transform_10, window_bounds = array<i64: 1, 32>}, {pipeline_mode = #tpu.pipeline_mode<synchronous>, transform_indices = @transform_11, window_bounds = array<i64: 1, 32>}, {transform_indices = @transform_12, window_bounds = array<i64: 32, 128>}, {transform_indices = @transform_13, window_bounds = array<i64: 1, 128>}, {transform_indices = @transform_14, window_bounds = array<i64: 128, 32>}, {pipeline_mode = #tpu.pipeline_mode<synchronous>, transform_indices = @transform_15, window_bounds = array<i64: 1, 32>}, {transform_indices = @transform_16, window_bounds = array<i64: 1, 24, 32>}]} {
    %c0_i32 = arith.constant 0 : i32
    %0 = arith.cmpi eq, %arg1, %c0_i32 : i32
    %1 = arith.extui %0 : i1 to i32
    %c0_i32_0 = arith.constant 0 : i32
    %2 = arith.cmpi ne, %1, %c0_i32_0 : i32
    scf.if %2 {
      %c0_18 = arith.constant 0 : index
      %c0_19 = arith.constant 0 : index
      %c0_20 = arith.constant 0 : index
      %27 = vector.load %arg5[%c0_18, %c0_19, %c0_20] : memref<1x24x32xbf16, #tpu.memory_space<vmem>>, vector<1x24x32xbf16>
      %28 = vector.shape_cast %27 : vector<1x24x32xbf16> to vector<24x32xbf16>
      %29 = arith.extf %28 : vector<24x32xbf16> to vector<24x32xf32>
      %c0_21 = arith.constant 0 : index
      %c0_22 = arith.constant 0 : index
      %c0_23 = arith.constant 0 : index
      %30 = vector.load %arg2[%c0_21, %c0_22, %c0_23] : memref<1x24x32xbf16, #tpu.memory_space<vmem>>, vector<1x24x32xbf16>
      %31 = vector.shape_cast %30 : vector<1x24x32xbf16> to vector<24x32xbf16>
      %32 = arith.extf %31 : vector<24x32xbf16> to vector<24x32xf32>
      %33 = arith.addf %29, %32 : vector<24x32xf32>
      %cst_24 = arith.constant dense<0.000000e+00> : vector<24xf32>
      %34 = vector.multi_reduction <add>, %33, %cst_24 [1] : vector<24x32xf32> to vector<24xf32>
      %35 = vector.shape_cast %34 : vector<24xf32> to vector<24x1xf32>
      %cst_25 = arith.constant 3.200000e+01 : f32
      %36 = vector.broadcast %cst_25 : f32 to vector<24x1xf32>
      %37 = arith.divf %35, %36 : vector<24x1xf32>
      %38 = vector.broadcast %37 : vector<24x1xf32> to vector<24x32xf32>
      %39 = arith.subf %33, %38 : vector<24x32xf32>
      %40 = arith.mulf %39, %39 : vector<24x32xf32>
      %cst_26 = arith.constant dense<0.000000e+00> : vector<24xf32>
      %41 = vector.multi_reduction <add>, %40, %cst_26 [1] : vector<24x32xf32> to vector<24xf32>
      %42 = vector.shape_cast %41 : vector<24xf32> to vector<24x1xf32>
      %cst_27 = arith.constant 3.200000e+01 : f32
      %43 = vector.broadcast %cst_27 : f32 to vector<24x1xf32>
      %44 = arith.divf %42, %43 : vector<24x1xf32>
      %45 = vector.broadcast %37 : vector<24x1xf32> to vector<24x32xf32>
      %46 = arith.subf %33, %45 : vector<24x32xf32>
      %cst_28 = arith.constant 9.99999974E-6 : f32
      %47 = vector.broadcast %cst_28 : f32 to vector<24x1xf32>
      %48 = arith.addf %44, %47 : vector<24x1xf32>
      %49 = math.rsqrt %48 : vector<24x1xf32>
      %50 = vector.broadcast %49 : vector<24x1xf32> to vector<24x32xf32>
      %51 = arith.mulf %46, %50 : vector<24x32xf32>
      %c0_29 = arith.constant 0 : index
      %c0_30 = arith.constant 0 : index
      %52 = vector.load %arg3[%c0_29, %c0_30] : memref<1x32xbf16, #tpu.memory_space<vmem>>, vector<1x32xbf16>
      %53 = arith.extf %52 : vector<1x32xbf16> to vector<1x32xf32>
      %54 = vector.broadcast %53 : vector<1x32xf32> to vector<24x32xf32>
      %55 = arith.mulf %51, %54 : vector<24x32xf32>
      %c0_31 = arith.constant 0 : index
      %c0_32 = arith.constant 0 : index
      %56 = vector.load %arg4[%c0_31, %c0_32] : memref<1x32xbf16, #tpu.memory_space<vmem>>, vector<1x32xbf16>
      %57 = arith.extf %56 : vector<1x32xbf16> to vector<1x32xf32>
      %58 = vector.broadcast %57 : vector<1x32xf32> to vector<24x32xf32>
      %59 = arith.addf %55, %58 : vector<24x32xf32>
      %cst_33 = arith.constant dense<0.000000e+00> : vector<24xf32>
      %60 = vector.multi_reduction <add>, %59, %cst_33 [1] : vector<24x32xf32> to vector<24xf32>
      %61 = vector.shape_cast %60 : vector<24xf32> to vector<24x1xf32>
      %cst_34 = arith.constant 3.200000e+01 : f32
      %62 = vector.broadcast %cst_34 : f32 to vector<24x1xf32>
      %63 = arith.divf %61, %62 : vector<24x1xf32>
      %64 = vector.broadcast %63 : vector<24x1xf32> to vector<24x32xf32>
      %65 = arith.subf %59, %64 : vector<24x32xf32>
      %66 = arith.mulf %65, %65 : vector<24x32xf32>
      %cst_35 = arith.constant dense<0.000000e+00> : vector<24xf32>
      %67 = vector.multi_reduction <add>, %66, %cst_35 [1] : vector<24x32xf32> to vector<24xf32>
      %68 = vector.shape_cast %67 : vector<24xf32> to vector<24x1xf32>
      %cst_36 = arith.constant 3.200000e+01 : f32
      %69 = vector.broadcast %cst_36 : f32 to vector<24x1xf32>
      %70 = arith.divf %68, %69 : vector<24x1xf32>
      %71 = vector.broadcast %63 : vector<24x1xf32> to vector<24x32xf32>
      %72 = arith.subf %59, %71 : vector<24x32xf32>
      %cst_37 = arith.constant 9.99999974E-6 : f32
      %73 = vector.broadcast %cst_37 : f32 to vector<24x1xf32>
      %74 = arith.addf %70, %73 : vector<24x1xf32>
      %75 = math.rsqrt %74 : vector<24x1xf32>
      %76 = vector.broadcast %75 : vector<24x1xf32> to vector<24x32xf32>
      %77 = arith.mulf %72, %76 : vector<24x32xf32>
      %c0_38 = arith.constant 0 : index
      %c0_39 = arith.constant 0 : index
      %78 = vector.load %arg6[%c0_38, %c0_39] : memref<1x32xbf16, #tpu.memory_space<vmem>>, vector<1x32xbf16>
      %79 = arith.extf %78 : vector<1x32xbf16> to vector<1x32xf32>
      %80 = vector.broadcast %79 : vector<1x32xf32> to vector<24x32xf32>
      %81 = arith.mulf %77, %80 : vector<24x32xf32>
      %c0_40 = arith.constant 0 : index
      %c0_41 = arith.constant 0 : index
      %82 = vector.load %arg7[%c0_40, %c0_41] : memref<1x32xbf16, #tpu.memory_space<vmem>>, vector<1x32xbf16>
      %83 = arith.extf %82 : vector<1x32xbf16> to vector<1x32xf32>
      %84 = vector.broadcast %83 : vector<1x32xf32> to vector<24x32xf32>
      %85 = arith.addf %81, %84 : vector<24x32xf32>
      %86 = arith.truncf %85 : vector<24x32xf32> to vector<24x32xbf16>
      %c0_42 = arith.constant 0 : index
      %c0_43 = arith.constant 0 : index
      %87 = vector.load %arg8[%c0_42, %c0_43] : memref<32x96xbf16, #tpu.memory_space<vmem>>, vector<32x96xbf16>
      %cst_44 = arith.constant dense<0.000000e+00> : vector<24x96xf32>
      %88 = tpu.matmul %86, %87, %cst_44 {dimension_numbers = #tpu.dot_dimension_numbers<[1], [0], [0], [1], [0, 0, 1, 1], [], []>} : vector<24x32xbf16>, vector<32x96xbf16>, vector<24x96xf32> -> vector<24x96xf32>
      %c0_45 = arith.constant 0 : index
      %c0_46 = arith.constant 0 : index
      %89 = vector.load %arg9[%c0_45, %c0_46] : memref<1x96xbf16, #tpu.memory_space<vmem>>, vector<1x96xbf16>
      %90 = arith.extf %89 : vector<1x96xbf16> to vector<1x96xf32>
      %91 = vector.broadcast %90 : vector<1x96xf32> to vector<24x96xf32>
      %92 = arith.addf %88, %91 : vector<24x96xf32>
      %93 = arith.truncf %92 : vector<24x96xf32> to vector<24x96xbf16>
      %94 = tpu.iota {dimensions = array<i32: 1>} : vector<1x24xi32>
      %c17_i32 = arith.constant 17 : i32
      %95 = vector.broadcast %c17_i32 : i32 to vector<1x24xi32>
      %96 = arith.cmpi sge, %94, %95 : vector<1x24xi32>
      %cst_47 = arith.constant -1.000000e+30 : f32
      %cst_48 = arith.constant 0.000000e+00 : f32
      %97 = vector.broadcast %cst_47 : f32 to vector<1x24xf32>
      %98 = vector.broadcast %cst_48 : f32 to vector<1x24xf32>
      %99 = arith.select %96, %97, %98 : vector<1x24xi1>, vector<1x24xf32>
      %cst_49 = arith.constant 0.000000e+00 : f32
      %100 = vector.broadcast %cst_49 : f32 to vector<24x32xf32>
      %101 = vector.extract_strided_slice %93 {offsets = [0, 0], sizes = [24, 8], strides = [1, 1]} : vector<24x96xbf16> to vector<24x8xbf16>
      %102 = vector.extract_strided_slice %93 {offsets = [0, 32], sizes = [24, 8], strides = [1, 1]} : vector<24x96xbf16> to vector<24x8xbf16>
      %103 = vector.extract_strided_slice %93 {offsets = [0, 64], sizes = [24, 8], strides = [1, 1]} : vector<24x96xbf16> to vector<24x8xbf16>
      %cst_50 = arith.constant dense<0.000000e+00> : vector<24x24xf32>
      %104 = tpu.matmul %101, %102, %cst_50 {dimension_numbers = #tpu.dot_dimension_numbers<[1], [1], [0], [0], [0, 0, 1, 0], [], []>} : vector<24x8xbf16>, vector<24x8xbf16>, vector<24x24xf32> -> vector<24x24xf32>
      %cst_51 = arith.constant 0.353553385 : f32
      %105 = vector.broadcast %cst_51 : f32 to vector<24x24xf32>
      %106 = arith.mulf %104, %105 : vector<24x24xf32>
      %107 = vector.broadcast %99 : vector<1x24xf32> to vector<24x24xf32>
      %108 = arith.addf %106, %107 : vector<24x24xf32>
      %cst_52 = arith.constant dense<0xFF800000> : vector<24xf32>
      %109 = vector.multi_reduction <maximumf>, %108, %cst_52 [1] : vector<24x24xf32> to vector<24xf32>
      %110 = vector.shape_cast %109 : vector<24xf32> to vector<24x1xf32>
      %111 = vector.broadcast %110 : vector<24x1xf32> to vector<24x24xf32>
      %112 = arith.subf %108, %111 : vector<24x24xf32>
      %113 = math.exp %112 : vector<24x24xf32>
      %cst_53 = arith.constant dense<0.000000e+00> : vector<24xf32>
      %114 = vector.multi_reduction <add>, %113, %cst_53 [1] : vector<24x24xf32> to vector<24xf32>
      %115 = vector.shape_cast %114 : vector<24xf32> to vector<24x1xf32>
      %116 = tpu.reciprocal %115 {approx = true} : vector<24x1xf32> -> vector<24x1xf32>
      %117 = vector.broadcast %116 : vector<24x1xf32> to vector<24x24xf32>
      %118 = arith.mulf %113, %117 : vector<24x24xf32>
      %119 = arith.truncf %118 : vector<24x24xf32> to vector<24x24xbf16>
      %cst_54 = arith.constant dense<0.000000e+00> : vector<24x8xf32>
      %120 = tpu.matmul %119, %103, %cst_54 {dimension_numbers = #tpu.dot_dimension_numbers<[1], [0], [0], [1], [0, 0, 1, 1], [], []>} : vector<24x24xbf16>, vector<24x8xbf16>, vector<24x8xf32> -> vector<24x8xf32>
      %121 = arith.truncf %120 : vector<24x8xf32> to vector<24x8xbf16>
      %c0_55 = arith.constant 0 : index
      %c0_56 = arith.constant 0 : index
      %122 = vector.load %arg10[%c0_55, %c0_56] : memref<32x32xbf16, #tpu.memory_space<vmem>>, vector<8x32xbf16>
      %cst_57 = arith.constant dense<0.000000e+00> : vector<24x32xf32>
      %123 = tpu.matmul %121, %122, %cst_57 {dimension_numbers = #tpu.dot_dimension_numbers<[1], [0], [0], [1], [0, 0, 1, 1], [], []>} : vector<24x8xbf16>, vector<8x32xbf16>, vector<24x32xf32> -> vector<24x32xf32>
      %124 = arith.addf %100, %123 : vector<24x32xf32>
      %125 = vector.extract_strided_slice %93 {offsets = [0, 8], sizes = [24, 8], strides = [1, 1]} : vector<24x96xbf16> to vector<24x8xbf16>
      %126 = vector.extract_strided_slice %93 {offsets = [0, 40], sizes = [24, 8], strides = [1, 1]} : vector<24x96xbf16> to vector<24x8xbf16>
      %127 = vector.extract_strided_slice %93 {offsets = [0, 72], sizes = [24, 8], strides = [1, 1]} : vector<24x96xbf16> to vector<24x8xbf16>
      %cst_58 = arith.constant dense<0.000000e+00> : vector<24x24xf32>
      %128 = tpu.matmul %125, %126, %cst_58 {dimension_numbers = #tpu.dot_dimension_numbers<[1], [1], [0], [0], [0, 0, 1, 0], [], []>} : vector<24x8xbf16>, vector<24x8xbf16>, vector<24x24xf32> -> vector<24x24xf32>
      %cst_59 = arith.constant 0.353553385 : f32
      %129 = vector.broadcast %cst_59 : f32 to vector<24x24xf32>
      %130 = arith.mulf %128, %129 : vector<24x24xf32>
      %131 = vector.broadcast %99 : vector<1x24xf32> to vector<24x24xf32>
      %132 = arith.addf %130, %131 : vector<24x24xf32>
      %cst_60 = arith.constant dense<0xFF800000> : vector<24xf32>
      %133 = vector.multi_reduction <maximumf>, %132, %cst_60 [1] : vector<24x24xf32> to vector<24xf32>
      %134 = vector.shape_cast %133 : vector<24xf32> to vector<24x1xf32>
      %135 = vector.broadcast %134 : vector<24x1xf32> to vector<24x24xf32>
      %136 = arith.subf %132, %135 : vector<24x24xf32>
      %137 = math.exp %136 : vector<24x24xf32>
      %cst_61 = arith.constant dense<0.000000e+00> : vector<24xf32>
      %138 = vector.multi_reduction <add>, %137, %cst_61 [1] : vector<24x24xf32> to vector<24xf32>
      %139 = vector.shape_cast %138 : vector<24xf32> to vector<24x1xf32>
      %140 = tpu.reciprocal %139 {approx = true} : vector<24x1xf32> -> vector<24x1xf32>
      %141 = vector.broadcast %140 : vector<24x1xf32> to vector<24x24xf32>
      %142 = arith.mulf %137, %141 : vector<24x24xf32>
      %143 = arith.truncf %142 : vector<24x24xf32> to vector<24x24xbf16>
      %cst_62 = arith.constant dense<0.000000e+00> : vector<24x8xf32>
      %144 = tpu.matmul %143, %127, %cst_62 {dimension_numbers = #tpu.dot_dimension_numbers<[1], [0], [0], [1], [0, 0, 1, 1], [], []>} : vector<24x24xbf16>, vector<24x8xbf16>, vector<24x8xf32> -> vector<24x8xf32>
      %145 = arith.truncf %144 : vector<24x8xf32> to vector<24x8xbf16>
      %c8 = arith.constant 8 : index
      %c0_63 = arith.constant 0 : index
      %146 = vector.load %arg10[%c8, %c0_63] : memref<32x32xbf16, #tpu.memory_space<vmem>>, vector<8x32xbf16>
      %cst_64 = arith.constant dense<0.000000e+00> : vector<24x32xf32>
      %147 = tpu.matmul %145, %146, %cst_64 {dimension_numbers = #tpu.dot_dimension_numbers<[1], [0], [0], [1], [0, 0, 1, 1], [], []>} : vector<24x8xbf16>, vector<8x32xbf16>, vector<24x32xf32> -> vector<24x32xf32>
      %148 = arith.addf %124, %147 : vector<24x32xf32>
      %149 = vector.extract_strided_slice %93 {offsets = [0, 16], sizes = [24, 8], strides = [1, 1]} : vector<24x96xbf16> to vector<24x8xbf16>
      %150 = vector.extract_strided_slice %93 {offsets = [0, 48], sizes = [24, 8], strides = [1, 1]} : vector<24x96xbf16> to vector<24x8xbf16>
      %151 = vector.extract_strided_slice %93 {offsets = [0, 80], sizes = [24, 8], strides = [1, 1]} : vector<24x96xbf16> to vector<24x8xbf16>
      %cst_65 = arith.constant dense<0.000000e+00> : vector<24x24xf32>
      %152 = tpu.matmul %149, %150, %cst_65 {dimension_numbers = #tpu.dot_dimension_numbers<[1], [1], [0], [0], [0, 0, 1, 0], [], []>} : vector<24x8xbf16>, vector<24x8xbf16>, vector<24x24xf32> -> vector<24x24xf32>
      %cst_66 = arith.constant 0.353553385 : f32
      %153 = vector.broadcast %cst_66 : f32 to vector<24x24xf32>
      %154 = arith.mulf %152, %153 : vector<24x24xf32>
      %155 = vector.broadcast %99 : vector<1x24xf32> to vector<24x24xf32>
      %156 = arith.addf %154, %155 : vector<24x24xf32>
      %cst_67 = arith.constant dense<0xFF800000> : vector<24xf32>
      %157 = vector.multi_reduction <maximumf>, %156, %cst_67 [1] : vector<24x24xf32> to vector<24xf32>
      %158 = vector.shape_cast %157 : vector<24xf32> to vector<24x1xf32>
      %159 = vector.broadcast %158 : vector<24x1xf32> to vector<24x24xf32>
      %160 = arith.subf %156, %159 : vector<24x24xf32>
      %161 = math.exp %160 : vector<24x24xf32>
      %cst_68 = arith.constant dense<0.000000e+00> : vector<24xf32>
      %162 = vector.multi_reduction <add>, %161, %cst_68 [1] : vector<24x24xf32> to vector<24xf32>
      %163 = vector.shape_cast %162 : vector<24xf32> to vector<24x1xf32>
      %164 = tpu.reciprocal %163 {approx = true} : vector<24x1xf32> -> vector<24x1xf32>
      %165 = vector.broadcast %164 : vector<24x1xf32> to vector<24x24xf32>
      %166 = arith.mulf %161, %165 : vector<24x24xf32>
      %167 = arith.truncf %166 : vector<24x24xf32> to vector<24x24xbf16>
      %cst_69 = arith.constant dense<0.000000e+00> : vector<24x8xf32>
      %168 = tpu.matmul %167, %151, %cst_69 {dimension_numbers = #tpu.dot_dimension_numbers<[1], [0], [0], [1], [0, 0, 1, 1], [], []>} : vector<24x24xbf16>, vector<24x8xbf16>, vector<24x8xf32> -> vector<24x8xf32>
      %169 = arith.truncf %168 : vector<24x8xf32> to vector<24x8xbf16>
      %c16 = arith.constant 16 : index
      %c0_70 = arith.constant 0 : index
      %170 = vector.load %arg10[%c16, %c0_70] : memref<32x32xbf16, #tpu.memory_space<vmem>>, vector<8x32xbf16>
      %cst_71 = arith.constant dense<0.000000e+00> : vector<24x32xf32>
      %171 = tpu.matmul %169, %170, %cst_71 {dimension_numbers = #tpu.dot_dimension_numbers<[1], [0], [0], [1], [0, 0, 1, 1], [], []>} : vector<24x8xbf16>, vector<8x32xbf16>, vector<24x32xf32> -> vector<24x32xf32>
      %172 = arith.addf %148, %171 : vector<24x32xf32>
      %173 = vector.extract_strided_slice %93 {offsets = [0, 24], sizes = [24, 8], strides = [1, 1]} : vector<24x96xbf16> to vector<24x8xbf16>
      %174 = vector.extract_strided_slice %93 {offsets = [0, 56], sizes = [24, 8], strides = [1, 1]} : vector<24x96xbf16> to vector<24x8xbf16>
      %175 = vector.extract_strided_slice %93 {offsets = [0, 88], sizes = [24, 8], strides = [1, 1]} : vector<24x96xbf16> to vector<24x8xbf16>
      %cst_72 = arith.constant dense<0.000000e+00> : vector<24x24xf32>
      %176 = tpu.matmul %173, %174, %cst_72 {dimension_numbers = #tpu.dot_dimension_numbers<[1], [1], [0], [0], [0, 0, 1, 0], [], []>} : vector<24x8xbf16>, vector<24x8xbf16>, vector<24x24xf32> -> vector<24x24xf32>
      %cst_73 = arith.constant 0.353553385 : f32
      %177 = vector.broadcast %cst_73 : f32 to vector<24x24xf32>
      %178 = arith.mulf %176, %177 : vector<24x24xf32>
      %179 = vector.broadcast %99 : vector<1x24xf32> to vector<24x24xf32>
      %180 = arith.addf %178, %179 : vector<24x24xf32>
      %cst_74 = arith.constant dense<0xFF800000> : vector<24xf32>
      %181 = vector.multi_reduction <maximumf>, %180, %cst_74 [1] : vector<24x24xf32> to vector<24xf32>
      %182 = vector.shape_cast %181 : vector<24xf32> to vector<24x1xf32>
      %183 = vector.broadcast %182 : vector<24x1xf32> to vector<24x24xf32>
      %184 = arith.subf %180, %183 : vector<24x24xf32>
      %185 = math.exp %184 : vector<24x24xf32>
      %cst_75 = arith.constant dense<0.000000e+00> : vector<24xf32>
      %186 = vector.multi_reduction <add>, %185, %cst_75 [1] : vector<24x24xf32> to vector<24xf32>
      %187 = vector.shape_cast %186 : vector<24xf32> to vector<24x1xf32>
      %188 = tpu.reciprocal %187 {approx = true} : vector<24x1xf32> -> vector<24x1xf32>
      %189 = vector.broadcast %188 : vector<24x1xf32> to vector<24x24xf32>
      %190 = arith.mulf %185, %189 : vector<24x24xf32>
      %191 = arith.truncf %190 : vector<24x24xf32> to vector<24x24xbf16>
      %cst_76 = arith.constant dense<0.000000e+00> : vector<24x8xf32>
      %192 = tpu.matmul %191, %175, %cst_76 {dimension_numbers = #tpu.dot_dimension_numbers<[1], [0], [0], [1], [0, 0, 1, 1], [], []>} : vector<24x24xbf16>, vector<24x8xbf16>, vector<24x8xf32> -> vector<24x8xf32>
      %193 = arith.truncf %192 : vector<24x8xf32> to vector<24x8xbf16>
      %c24 = arith.constant 24 : index
      %c0_77 = arith.constant 0 : index
      %194 = vector.load %arg10[%c24, %c0_77] : memref<32x32xbf16, #tpu.memory_space<vmem>>, vector<8x32xbf16>
      %cst_78 = arith.constant dense<0.000000e+00> : vector<24x32xf32>
      %195 = tpu.matmul %193, %194, %cst_78 {dimension_numbers = #tpu.dot_dimension_numbers<[1], [0], [0], [1], [0, 0, 1, 1], [], []>} : vector<24x8xbf16>, vector<8x32xbf16>, vector<24x32xf32> -> vector<24x32xf32>
      %196 = arith.addf %172, %195 : vector<24x32xf32>
      %197 = arith.addf %59, %196 : vector<24x32xf32>
      %c0_79 = arith.constant 0 : index
      %c0_80 = arith.constant 0 : index
      %198 = vector.load %arg11[%c0_79, %c0_80] : memref<1x32xbf16, #tpu.memory_space<vmem>>, vector<1x32xbf16>
      %199 = arith.extf %198 : vector<1x32xbf16> to vector<1x32xf32>
      %200 = vector.broadcast %199 : vector<1x32xf32> to vector<24x32xf32>
      %201 = arith.addf %197, %200 : vector<24x32xf32>
      %c0_81 = arith.constant 0 : index
      %c0_82 = arith.constant 0 : index
      %202 = vector.load %arg19[%c0_81, %c0_82] : memref<24x32xf32, #tpu.memory_space<vmem>>, vector<24x32xf32>
      tpu.vector_store %arg19[%c0_81, %c0_82], %201 {strides = array<i32>} : memref<24x32xf32, #tpu.memory_space<vmem>>, vector<24x32xf32>,
      %cst_83 = arith.constant dense<0.000000e+00> : vector<24xf32>
      %203 = vector.multi_reduction <add>, %201, %cst_83 [1] : vector<24x32xf32> to vector<24xf32>
      %204 = vector.shape_cast %203 : vector<24xf32> to vector<24x1xf32>
      %cst_84 = arith.constant 3.200000e+01 : f32
      %205 = vector.broadcast %cst_84 : f32 to vector<24x1xf32>
      %206 = arith.divf %204, %205 : vector<24x1xf32>
      %207 = vector.broadcast %206 : vector<24x1xf32> to vector<24x32xf32>
      %208 = arith.subf %201, %207 : vector<24x32xf32>
      %209 = arith.mulf %208, %208 : vector<24x32xf32>
      %cst_85 = arith.constant dense<0.000000e+00> : vector<24xf32>
      %210 = vector.multi_reduction <add>, %209, %cst_85 [1] : vector<24x32xf32> to vector<24xf32>
      %211 = vector.shape_cast %210 : vector<24xf32> to vector<24x1xf32>
      %cst_86 = arith.constant 3.200000e+01 : f32
      %212 = vector.broadcast %cst_86 : f32 to vector<24x1xf32>
      %213 = arith.divf %211, %212 : vector<24x1xf32>
      %214 = vector.broadcast %206 : vector<24x1xf32> to vector<24x32xf32>
      %215 = arith.subf %201, %214 : vector<24x32xf32>
      %cst_87 = arith.constant 9.99999974E-6 : f32
      %216 = vector.broadcast %cst_87 : f32 to vector<24x1xf32>
      %217 = arith.addf %213, %216 : vector<24x1xf32>
      %218 = math.rsqrt %217 : vector<24x1xf32>
      %219 = vector.broadcast %218 : vector<24x1xf32> to vector<24x32xf32>
      %220 = arith.mulf %215, %219 : vector<24x32xf32>
      %c0_88 = arith.constant 0 : index
      %c0_89 = arith.constant 0 : index
      %221 = vector.load %arg12[%c0_88, %c0_89] : memref<1x32xbf16, #tpu.memory_space<vmem>>, vector<1x32xbf16>
      %222 = arith.extf %221 : vector<1x32xbf16> to vector<1x32xf32>
      %223 = vector.broadcast %222 : vector<1x32xf32> to vector<24x32xf32>
      %224 = arith.mulf %220, %223 : vector<24x32xf32>
      %c0_90 = arith.constant 0 : index
      %c0_91 = arith.constant 0 : index
      %225 = vector.load %arg13[%c0_90, %c0_91] : memref<1x32xbf16, #tpu.memory_space<vmem>>, vector<1x32xbf16>
      %226 = arith.extf %225 : vector<1x32xbf16> to vector<1x32xf32>
      %227 = vector.broadcast %226 : vector<1x32xf32> to vector<24x32xf32>
      %228 = arith.addf %224, %227 : vector<24x32xf32>
      %229 = arith.truncf %228 : vector<24x32xf32> to vector<24x32xbf16>
      %c0_92 = arith.constant 0 : index
      %c0_93 = arith.constant 0 : index
      %230 = vector.load %arg20[%c0_92, %c0_93] : memref<24x32xbf16, #tpu.memory_space<vmem>>, vector<24x32xbf16>
      tpu.vector_store %arg20[%c0_92, %c0_93], %229 {strides = array<i32>} : memref<24x32xbf16, #tpu.memory_space<vmem>>, vector<24x32xbf16>,
      %cst_94 = arith.constant 0.000000e+00 : f32
      %231 = vector.broadcast %cst_94 : f32 to vector<24x32xf32>
      %c0_95 = arith.constant 0 : index
      %c0_96 = arith.constant 0 : index
      %232 = vector.load %arg21[%c0_95, %c0_96] : memref<24x32xf32, #tpu.memory_space<vmem>>, vector<24x32xf32>
      tpu.vector_store %arg21[%c0_95, %c0_96], %231 {strides = array<i32>} : memref<24x32xf32, #tpu.memory_space<vmem>>, vector<24x32xf32>,
    } else {
    }
    %c0 = arith.constant 0 : index
    %c0_1 = arith.constant 0 : index
    %3 = vector.load %arg20[%c0, %c0_1] : memref<24x32xbf16, #tpu.memory_space<vmem>>, vector<24x32xbf16>
    %c0_2 = arith.constant 0 : index
    %c0_3 = arith.constant 0 : index
    %4 = vector.load %arg14[%c0_2, %c0_3] : memref<32x128xbf16, #tpu.memory_space<vmem>>, vector<32x128xbf16>
    %cst = arith.constant dense<0.000000e+00> : vector<24x128xf32>
    %5 = tpu.matmul %3, %4, %cst {dimension_numbers = #tpu.dot_dimension_numbers<[1], [0], [0], [1], [0, 0, 1, 1], [], []>} : vector<24x32xbf16>, vector<32x128xbf16>, vector<24x128xf32> -> vector<24x128xf32>
    %c0_4 = arith.constant 0 : index
    %c0_5 = arith.constant 0 : index
    %6 = vector.load %arg15[%c0_4, %c0_5] : memref<1x128xbf16, #tpu.memory_space<vmem>>, vector<1x128xbf16>
    %7 = arith.extf %6 : vector<1x128xbf16> to vector<1x128xf32>
    %8 = vector.broadcast %7 : vector<1x128xf32> to vector<24x128xf32>
    %9 = arith.addf %5, %8 : vector<24x128xf32>
    %cst_6 = arith.constant 5.000000e-01 : f32
    %10 = vector.broadcast %cst_6 : f32 to vector<24x128xf32>
    %11 = arith.mulf %10, %9 : vector<24x128xf32>
    %cst_7 = arith.constant 0.707106769 : f32
    %12 = vector.broadcast %cst_7 : f32 to vector<24x128xf32>
    %13 = arith.mulf %9, %12 : vector<24x128xf32>
    %14 = math.erf %13 : vector<24x128xf32>
    %cst_8 = arith.constant 1.000000e+00 : f32
    %15 = vector.broadcast %cst_8 : f32 to vector<24x128xf32>
    %16 = arith.addf %15, %14 : vector<24x128xf32>
    %17 = arith.mulf %11, %16 : vector<24x128xf32>
    %c0_9 = arith.constant 0 : index
    %c0_10 = arith.constant 0 : index
    %18 = vector.load %arg21[%c0_9, %c0_10] : memref<24x32xf32, #tpu.memory_space<vmem>>, vector<24x32xf32>
    %19 = arith.truncf %17 : vector<24x128xf32> to vector<24x128xbf16>
    %c0_11 = arith.constant 0 : index
    %c0_12 = arith.constant 0 : index
    %20 = vector.load %arg16[%c0_11, %c0_12] : memref<128x32xbf16, #tpu.memory_space<vmem>>, vector<128x32xbf16>
    %cst_13 = arith.constant dense<0.000000e+00> : vector<24x32xf32>
    %21 = tpu.matmul %19, %20, %cst_13 {dimension_numbers = #tpu.dot_dimension_numbers<[1], [0], [0], [1], [0, 0, 1, 1], [], []>} : vector<24x128xbf16>, vector<128x32xbf16>, vector<24x32xf32> -> vector<24x32xf32>
    %22 = arith.addf %18, %21 : vector<24x32xf32>
    %c0_14 = arith.constant 0 : index
    %c0_15 = arith.constant 0 : index
    %23 = vector.load %arg21[%c0_14, %c0_15] : memref<24x32xf32, #tpu.memory_space<vmem>>, vector<24x32xf32>
    tpu.vector_store %arg21[%c0_14, %c0_15], %22 {strides = array<i32>} : memref<24x32xf32, #tpu.memory_space<vmem>>, vector<24x32xf32>,
    %c0_i32_16 = arith.constant 0 : i32
    %24 = arith.cmpi eq, %arg1, %c0_i32_16 : i32
    %25 = arith.extui %24 : i1 to i32
    %c0_i32_17 = arith.constant 0 : i32
    %26 = arith.cmpi ne, %25, %c0_i32_17 : i32
    scf.if %26 {
      %c0_18 = arith.constant 0 : index
      %c0_19 = arith.constant 0 : index
      %27 = vector.load %arg19[%c0_18, %c0_19] : memref<24x32xf32, #tpu.memory_space<vmem>>, vector<24x32xf32>
      %c0_20 = arith.constant 0 : index
      %c0_21 = arith.constant 0 : index
      %28 = vector.load %arg21[%c0_20, %c0_21] : memref<24x32xf32, #tpu.memory_space<vmem>>, vector<24x32xf32>
      %29 = arith.addf %27, %28 : vector<24x32xf32>
      %c0_22 = arith.constant 0 : index
      %c0_23 = arith.constant 0 : index
      %30 = vector.load %arg17[%c0_22, %c0_23] : memref<1x32xbf16, #tpu.memory_space<vmem>>, vector<1x32xbf16>
      %31 = arith.extf %30 : vector<1x32xbf16> to vector<1x32xf32>
      %32 = vector.broadcast %31 : vector<1x32xf32> to vector<24x32xf32>
      %33 = arith.addf %29, %32 : vector<24x32xf32>
      %34 = arith.truncf %33 : vector<24x32xf32> to vector<24x32xbf16>
      %c0_24 = arith.constant 0 : index
      %c0_25 = arith.constant 0 : index
      %c0_26 = arith.constant 0 : index
      %35 = vector.load %arg18[%c0_24, %c0_25, %c0_26] : memref<1x24x32xbf16, #tpu.memory_space<vmem>>, vector<1x24x32xbf16>
      %36 = vector.shape_cast %35 : vector<1x24x32xbf16> to vector<24x32xbf16>
      %37 = vector.shape_cast %34 : vector<24x32xbf16> to vector<1x24x32xbf16>
      tpu.vector_store %arg18[%c0_24, %c0_25, %c0_26], %37 {strides = array<i32>} : memref<1x24x32xbf16, #tpu.memory_space<vmem>>, vector<1x24x32xbf16>,
    } else {
    }
    return
  }
  func.func @transform_0(%arg0: i32, %arg1: i32) -> (i32, i32, i32) {
    %c0_i32 = arith.constant 0 : i32
    %c0_i32_0 = arith.constant 0 : i32
    %c0_i32_1 = arith.constant 0 : i32
    %c0_i32_2 = arith.constant 0 : i32
    return %c0_i32, %c0_i32_0, %c0_i32_1 : i32, i32, i32
  }
  func.func @transform_1(%arg0: i32, %arg1: i32) -> (i32, i32) {
    %c0_i32 = arith.constant 0 : i32
    %c0_i32_0 = arith.constant 0 : i32
    %c0_i32_1 = arith.constant 0 : i32
    return %c0_i32, %c0_i32_0 : i32, i32
  }
  func.func @transform_2(%arg0: i32, %arg1: i32) -> (i32, i32) {
    %c0_i32 = arith.constant 0 : i32
    %c0_i32_0 = arith.constant 0 : i32
    %c0_i32_1 = arith.constant 0 : i32
    return %c0_i32, %c0_i32_0 : i32, i32
  }
  func.func @transform_3(%arg0: i32, %arg1: i32) -> (i32, i32, i32) {
    %c0_i32 = arith.constant 0 : i32
    %c0_i32_0 = arith.constant 0 : i32
    %c0_i32_1 = arith.constant 0 : i32
    return %arg0, %c0_i32, %c0_i32_0 : i32, i32, i32
  }
  func.func @transform_4(%arg0: i32, %arg1: i32) -> (i32, i32) {
    %c0_i32 = arith.constant 0 : i32
    %c0_i32_0 = arith.constant 0 : i32
    %c0_i32_1 = arith.constant 0 : i32
    return %c0_i32, %c0_i32_0 : i32, i32
  }
  func.func @transform_5(%arg0: i32, %arg1: i32) -> (i32, i32) {
    %c0_i32 = arith.constant 0 : i32
    %c0_i32_0 = arith.constant 0 : i32
    %c0_i32_1 = arith.constant 0 : i32
    return %c0_i32, %c0_i32_0 : i32, i32
  }
  func.func @transform_6(%arg0: i32, %arg1: i32) -> (i32, i32) {
    %c0_i32 = arith.constant 0 : i32
    %c0_i32_0 = arith.constant 0 : i32
    %c0_i32_1 = arith.constant 0 : i32
    return %c0_i32, %c0_i32_0 : i32, i32
  }
  func.func @transform_7(%arg0: i32, %arg1: i32) -> (i32, i32) {
    %c0_i32 = arith.constant 0 : i32
    %c0_i32_0 = arith.constant 0 : i32
    %c0_i32_1 = arith.constant 0 : i32
    return %c0_i32, %c0_i32_0 : i32, i32
  }
  func.func @transform_8(%arg0: i32, %arg1: i32) -> (i32, i32) {
    %c0_i32 = arith.constant 0 : i32
    %c0_i32_0 = arith.constant 0 : i32
    %c0_i32_1 = arith.constant 0 : i32
    return %c0_i32, %c0_i32_0 : i32, i32
  }
  func.func @transform_9(%arg0: i32, %arg1: i32) -> (i32, i32) {
    %c0_i32 = arith.constant 0 : i32
    %c0_i32_0 = arith.constant 0 : i32
    %c0_i32_1 = arith.constant 0 : i32
    return %c0_i32, %c0_i32_0 : i32, i32
  }
  func.func @transform_10(%arg0: i32, %arg1: i32) -> (i32, i32) {
    %c0_i32 = arith.constant 0 : i32
    %c0_i32_0 = arith.constant 0 : i32
    %c0_i32_1 = arith.constant 0 : i32
    return %c0_i32, %c0_i32_0 : i32, i32
  }
  func.func @transform_11(%arg0: i32, %arg1: i32) -> (i32, i32) {
    %c0_i32 = arith.constant 0 : i32
    %c0_i32_0 = arith.constant 0 : i32
    %c0_i32_1 = arith.constant 0 : i32
    return %c0_i32, %c0_i32_0 : i32, i32
  }
  func.func @transform_12(%arg0: i32, %arg1: i32) -> (i32, i32) {
    %c0_i32 = arith.constant 0 : i32
    %c0_i32_0 = arith.constant 0 : i32
    return %c0_i32, %arg1 : i32, i32
  }
  func.func @transform_13(%arg0: i32, %arg1: i32) -> (i32, i32) {
    %c0_i32 = arith.constant 0 : i32
    %c0_i32_0 = arith.constant 0 : i32
    return %c0_i32, %arg1 : i32, i32
  }
  func.func @transform_14(%arg0: i32, %arg1: i32) -> (i32, i32) {
    %c0_i32 = arith.constant 0 : i32
    %c0_i32_0 = arith.constant 0 : i32
    return %arg1, %c0_i32 : i32, i32
  }
  func.func @transform_15(%arg0: i32, %arg1: i32) -> (i32, i32) {
    %c0_i32 = arith.constant 0 : i32
    %c0_i32_0 = arith.constant 0 : i32
    %c0_i32_1 = arith.constant 0 : i32
    return %c0_i32, %c0_i32_0 : i32, i32
  }
  func.func @transform_16(%arg0: i32, %arg1: i32) -> (i32, i32, i32) {
    %c0_i32 = arith.constant 0 : i32
    %c0_i32_0 = arith.constant 0 : i32
    %c0_i32_1 = arith.constant 0 : i32
    return %arg0, %c0_i32, %c0_i32_0 : i32, i32, i32
  }
}

module attributes {stable_mosaic.version = 11 : i64} {
  func.func @block_kernel(%arg0: i32, %arg1: i32, %arg2: memref<1x24x32xbf16, #tpu.memory_space<vmem>>, %arg3: memref<1x32xbf16, #tpu.memory_space<vmem>>, %arg4: memref<1x32xbf16, #tpu.memory_space<vmem>>, %arg5: memref<32x96xbf16, #tpu.memory_space<vmem>>, %arg6: memref<1x96xbf16, #tpu.memory_space<vmem>>, %arg7: memref<32x32xbf16, #tpu.memory_space<vmem>>, %arg8: memref<1x32xbf16, #tpu.memory_space<vmem>>, %arg9: memref<1x32xbf16, #tpu.memory_space<vmem>>, %arg10: memref<1x32xbf16, #tpu.memory_space<vmem>>, %arg11: memref<32x128xbf16, #tpu.memory_space<vmem>>, %arg12: memref<1x128xbf16, #tpu.memory_space<vmem>>, %arg13: memref<128x32xbf16, #tpu.memory_space<vmem>>, %arg14: memref<1x32xbf16, #tpu.memory_space<vmem>>, %arg15: memref<1x24x32xbf16, #tpu.memory_space<vmem>>, %arg16: memref<24x32xf32, #tpu.memory_space<vmem>>, %arg17: memref<24x32xbf16, #tpu.memory_space<vmem>>, %arg18: memref<24x32xf32, #tpu.memory_space<vmem>>) attributes {dimension_semantics = [#tpu.dimension_semantics<parallel>, #tpu.dimension_semantics<arbitrary>], iteration_bounds = array<i64: 2, 1>, scalar_prefetch = 0 : i64, scratch_operands = 3 : i64, tpu.core_type = #tpu.core_type<tc>, window_params = [{transform_indices = @transform_0, window_bounds = array<i64: 1, 24, 32>}, {pipeline_mode = #tpu.pipeline_mode<synchronous>, transform_indices = @transform_1, window_bounds = array<i64: 1, 32>}, {pipeline_mode = #tpu.pipeline_mode<synchronous>, transform_indices = @transform_2, window_bounds = array<i64: 1, 32>}, {pipeline_mode = #tpu.pipeline_mode<synchronous>, transform_indices = @transform_3, window_bounds = array<i64: 32, 96>}, {pipeline_mode = #tpu.pipeline_mode<synchronous>, transform_indices = @transform_4, window_bounds = array<i64: 1, 96>}, {pipeline_mode = #tpu.pipeline_mode<synchronous>, transform_indices = @transform_5, window_bounds = array<i64: 32, 32>}, {pipeline_mode = #tpu.pipeline_mode<synchronous>, transform_indices = @transform_6, window_bounds = array<i64: 1, 32>}, {pipeline_mode = #tpu.pipeline_mode<synchronous>, transform_indices = @transform_7, window_bounds = array<i64: 1, 32>}, {pipeline_mode = #tpu.pipeline_mode<synchronous>, transform_indices = @transform_8, window_bounds = array<i64: 1, 32>}, {transform_indices = @transform_9, window_bounds = array<i64: 32, 128>}, {transform_indices = @transform_10, window_bounds = array<i64: 1, 128>}, {transform_indices = @transform_11, window_bounds = array<i64: 128, 32>}, {pipeline_mode = #tpu.pipeline_mode<synchronous>, transform_indices = @transform_12, window_bounds = array<i64: 1, 32>}, {transform_indices = @transform_13, window_bounds = array<i64: 1, 24, 32>}]} {
    %c0_i32 = arith.constant 0 : i32
    %0 = arith.cmpi eq, %arg1, %c0_i32 : i32
    %1 = arith.extui %0 : i1 to i32
    %c0_i32_0 = arith.constant 0 : i32
    %2 = arith.cmpi ne, %1, %c0_i32_0 : i32
    scf.if %2 {
      %c0_18 = arith.constant 0 : index
      %c0_19 = arith.constant 0 : index
      %c0_20 = arith.constant 0 : index
      %27 = vector.load %arg2[%c0_18, %c0_19, %c0_20] : memref<1x24x32xbf16, #tpu.memory_space<vmem>>, vector<1x24x32xbf16>
      %28 = vector.shape_cast %27 : vector<1x24x32xbf16> to vector<24x32xbf16>
      %29 = arith.extf %28 : vector<24x32xbf16> to vector<24x32xf32>
      %cst_21 = arith.constant dense<0.000000e+00> : vector<24xf32>
      %30 = vector.multi_reduction <add>, %29, %cst_21 [1] : vector<24x32xf32> to vector<24xf32>
      %31 = vector.shape_cast %30 : vector<24xf32> to vector<24x1xf32>
      %cst_22 = arith.constant 3.200000e+01 : f32
      %32 = vector.broadcast %cst_22 : f32 to vector<24x1xf32>
      %33 = arith.divf %31, %32 : vector<24x1xf32>
      %34 = vector.broadcast %33 : vector<24x1xf32> to vector<24x32xf32>
      %35 = arith.subf %29, %34 : vector<24x32xf32>
      %36 = arith.mulf %35, %35 : vector<24x32xf32>
      %cst_23 = arith.constant dense<0.000000e+00> : vector<24xf32>
      %37 = vector.multi_reduction <add>, %36, %cst_23 [1] : vector<24x32xf32> to vector<24xf32>
      %38 = vector.shape_cast %37 : vector<24xf32> to vector<24x1xf32>
      %cst_24 = arith.constant 3.200000e+01 : f32
      %39 = vector.broadcast %cst_24 : f32 to vector<24x1xf32>
      %40 = arith.divf %38, %39 : vector<24x1xf32>
      %41 = vector.broadcast %33 : vector<24x1xf32> to vector<24x32xf32>
      %42 = arith.subf %29, %41 : vector<24x32xf32>
      %cst_25 = arith.constant 9.99999974E-6 : f32
      %43 = vector.broadcast %cst_25 : f32 to vector<24x1xf32>
      %44 = arith.addf %40, %43 : vector<24x1xf32>
      %45 = math.rsqrt %44 : vector<24x1xf32>
      %46 = vector.broadcast %45 : vector<24x1xf32> to vector<24x32xf32>
      %47 = arith.mulf %42, %46 : vector<24x32xf32>
      %c0_26 = arith.constant 0 : index
      %c0_27 = arith.constant 0 : index
      %48 = vector.load %arg3[%c0_26, %c0_27] : memref<1x32xbf16, #tpu.memory_space<vmem>>, vector<1x32xbf16>
      %49 = arith.extf %48 : vector<1x32xbf16> to vector<1x32xf32>
      %50 = vector.broadcast %49 : vector<1x32xf32> to vector<24x32xf32>
      %51 = arith.mulf %47, %50 : vector<24x32xf32>
      %c0_28 = arith.constant 0 : index
      %c0_29 = arith.constant 0 : index
      %52 = vector.load %arg4[%c0_28, %c0_29] : memref<1x32xbf16, #tpu.memory_space<vmem>>, vector<1x32xbf16>
      %53 = arith.extf %52 : vector<1x32xbf16> to vector<1x32xf32>
      %54 = vector.broadcast %53 : vector<1x32xf32> to vector<24x32xf32>
      %55 = arith.addf %51, %54 : vector<24x32xf32>
      %56 = arith.truncf %55 : vector<24x32xf32> to vector<24x32xbf16>
      %c0_30 = arith.constant 0 : index
      %c0_31 = arith.constant 0 : index
      %57 = vector.load %arg5[%c0_30, %c0_31] : memref<32x96xbf16, #tpu.memory_space<vmem>>, vector<32x96xbf16>
      %cst_32 = arith.constant dense<0.000000e+00> : vector<24x96xf32>
      %58 = tpu.matmul %56, %57, %cst_32 {dimension_numbers = #tpu.dot_dimension_numbers<[1], [0], [0], [1], [0, 0, 1, 1], [], []>} : vector<24x32xbf16>, vector<32x96xbf16>, vector<24x96xf32> -> vector<24x96xf32>
      %c0_33 = arith.constant 0 : index
      %c0_34 = arith.constant 0 : index
      %59 = vector.load %arg6[%c0_33, %c0_34] : memref<1x96xbf16, #tpu.memory_space<vmem>>, vector<1x96xbf16>
      %60 = arith.extf %59 : vector<1x96xbf16> to vector<1x96xf32>
      %61 = vector.broadcast %60 : vector<1x96xf32> to vector<24x96xf32>
      %62 = arith.addf %58, %61 : vector<24x96xf32>
      %63 = arith.truncf %62 : vector<24x96xf32> to vector<24x96xbf16>
      %64 = tpu.iota {dimensions = array<i32: 1>} : vector<1x24xi32>
      %c17_i32 = arith.constant 17 : i32
      %65 = vector.broadcast %c17_i32 : i32 to vector<1x24xi32>
      %66 = arith.cmpi sge, %64, %65 : vector<1x24xi32>
      %cst_35 = arith.constant -1.000000e+30 : f32
      %cst_36 = arith.constant 0.000000e+00 : f32
      %67 = vector.broadcast %cst_35 : f32 to vector<1x24xf32>
      %68 = vector.broadcast %cst_36 : f32 to vector<1x24xf32>
      %69 = arith.select %66, %67, %68 : vector<1x24xi1>, vector<1x24xf32>
      %cst_37 = arith.constant 0.000000e+00 : f32
      %70 = vector.broadcast %cst_37 : f32 to vector<24x32xf32>
      %71 = vector.extract_strided_slice %63 {offsets = [0, 0], sizes = [24, 8], strides = [1, 1]} : vector<24x96xbf16> to vector<24x8xbf16>
      %72 = vector.extract_strided_slice %63 {offsets = [0, 32], sizes = [24, 8], strides = [1, 1]} : vector<24x96xbf16> to vector<24x8xbf16>
      %73 = vector.extract_strided_slice %63 {offsets = [0, 64], sizes = [24, 8], strides = [1, 1]} : vector<24x96xbf16> to vector<24x8xbf16>
      %cst_38 = arith.constant dense<0.000000e+00> : vector<24x24xf32>
      %74 = tpu.matmul %71, %72, %cst_38 {dimension_numbers = #tpu.dot_dimension_numbers<[1], [1], [0], [0], [0, 0, 1, 0], [], []>} : vector<24x8xbf16>, vector<24x8xbf16>, vector<24x24xf32> -> vector<24x24xf32>
      %cst_39 = arith.constant 0.353553385 : f32
      %75 = vector.broadcast %cst_39 : f32 to vector<24x24xf32>
      %76 = arith.mulf %74, %75 : vector<24x24xf32>
      %77 = vector.broadcast %69 : vector<1x24xf32> to vector<24x24xf32>
      %78 = arith.addf %76, %77 : vector<24x24xf32>
      %cst_40 = arith.constant dense<0xFF800000> : vector<24xf32>
      %79 = vector.multi_reduction <maximumf>, %78, %cst_40 [1] : vector<24x24xf32> to vector<24xf32>
      %80 = vector.shape_cast %79 : vector<24xf32> to vector<24x1xf32>
      %81 = vector.broadcast %80 : vector<24x1xf32> to vector<24x24xf32>
      %82 = arith.subf %78, %81 : vector<24x24xf32>
      %83 = math.exp %82 : vector<24x24xf32>
      %cst_41 = arith.constant dense<0.000000e+00> : vector<24xf32>
      %84 = vector.multi_reduction <add>, %83, %cst_41 [1] : vector<24x24xf32> to vector<24xf32>
      %85 = vector.shape_cast %84 : vector<24xf32> to vector<24x1xf32>
      %86 = tpu.reciprocal %85 {approx = true} : vector<24x1xf32> -> vector<24x1xf32>
      %87 = vector.broadcast %86 : vector<24x1xf32> to vector<24x24xf32>
      %88 = arith.mulf %83, %87 : vector<24x24xf32>
      %89 = arith.truncf %88 : vector<24x24xf32> to vector<24x24xbf16>
      %cst_42 = arith.constant dense<0.000000e+00> : vector<24x8xf32>
      %90 = tpu.matmul %89, %73, %cst_42 {dimension_numbers = #tpu.dot_dimension_numbers<[1], [0], [0], [1], [0, 0, 1, 1], [], []>} : vector<24x24xbf16>, vector<24x8xbf16>, vector<24x8xf32> -> vector<24x8xf32>
      %91 = arith.truncf %90 : vector<24x8xf32> to vector<24x8xbf16>
      %c0_43 = arith.constant 0 : index
      %c0_44 = arith.constant 0 : index
      %92 = vector.load %arg7[%c0_43, %c0_44] : memref<32x32xbf16, #tpu.memory_space<vmem>>, vector<8x32xbf16>
      %cst_45 = arith.constant dense<0.000000e+00> : vector<24x32xf32>
      %93 = tpu.matmul %91, %92, %cst_45 {dimension_numbers = #tpu.dot_dimension_numbers<[1], [0], [0], [1], [0, 0, 1, 1], [], []>} : vector<24x8xbf16>, vector<8x32xbf16>, vector<24x32xf32> -> vector<24x32xf32>
      %94 = arith.addf %70, %93 : vector<24x32xf32>
      %95 = vector.extract_strided_slice %63 {offsets = [0, 8], sizes = [24, 8], strides = [1, 1]} : vector<24x96xbf16> to vector<24x8xbf16>
      %96 = vector.extract_strided_slice %63 {offsets = [0, 40], sizes = [24, 8], strides = [1, 1]} : vector<24x96xbf16> to vector<24x8xbf16>
      %97 = vector.extract_strided_slice %63 {offsets = [0, 72], sizes = [24, 8], strides = [1, 1]} : vector<24x96xbf16> to vector<24x8xbf16>
      %cst_46 = arith.constant dense<0.000000e+00> : vector<24x24xf32>
      %98 = tpu.matmul %95, %96, %cst_46 {dimension_numbers = #tpu.dot_dimension_numbers<[1], [1], [0], [0], [0, 0, 1, 0], [], []>} : vector<24x8xbf16>, vector<24x8xbf16>, vector<24x24xf32> -> vector<24x24xf32>
      %cst_47 = arith.constant 0.353553385 : f32
      %99 = vector.broadcast %cst_47 : f32 to vector<24x24xf32>
      %100 = arith.mulf %98, %99 : vector<24x24xf32>
      %101 = vector.broadcast %69 : vector<1x24xf32> to vector<24x24xf32>
      %102 = arith.addf %100, %101 : vector<24x24xf32>
      %cst_48 = arith.constant dense<0xFF800000> : vector<24xf32>
      %103 = vector.multi_reduction <maximumf>, %102, %cst_48 [1] : vector<24x24xf32> to vector<24xf32>
      %104 = vector.shape_cast %103 : vector<24xf32> to vector<24x1xf32>
      %105 = vector.broadcast %104 : vector<24x1xf32> to vector<24x24xf32>
      %106 = arith.subf %102, %105 : vector<24x24xf32>
      %107 = math.exp %106 : vector<24x24xf32>
      %cst_49 = arith.constant dense<0.000000e+00> : vector<24xf32>
      %108 = vector.multi_reduction <add>, %107, %cst_49 [1] : vector<24x24xf32> to vector<24xf32>
      %109 = vector.shape_cast %108 : vector<24xf32> to vector<24x1xf32>
      %110 = tpu.reciprocal %109 {approx = true} : vector<24x1xf32> -> vector<24x1xf32>
      %111 = vector.broadcast %110 : vector<24x1xf32> to vector<24x24xf32>
      %112 = arith.mulf %107, %111 : vector<24x24xf32>
      %113 = arith.truncf %112 : vector<24x24xf32> to vector<24x24xbf16>
      %cst_50 = arith.constant dense<0.000000e+00> : vector<24x8xf32>
      %114 = tpu.matmul %113, %97, %cst_50 {dimension_numbers = #tpu.dot_dimension_numbers<[1], [0], [0], [1], [0, 0, 1, 1], [], []>} : vector<24x24xbf16>, vector<24x8xbf16>, vector<24x8xf32> -> vector<24x8xf32>
      %115 = arith.truncf %114 : vector<24x8xf32> to vector<24x8xbf16>
      %c8 = arith.constant 8 : index
      %c0_51 = arith.constant 0 : index
      %116 = vector.load %arg7[%c8, %c0_51] : memref<32x32xbf16, #tpu.memory_space<vmem>>, vector<8x32xbf16>
      %cst_52 = arith.constant dense<0.000000e+00> : vector<24x32xf32>
      %117 = tpu.matmul %115, %116, %cst_52 {dimension_numbers = #tpu.dot_dimension_numbers<[1], [0], [0], [1], [0, 0, 1, 1], [], []>} : vector<24x8xbf16>, vector<8x32xbf16>, vector<24x32xf32> -> vector<24x32xf32>
      %118 = arith.addf %94, %117 : vector<24x32xf32>
      %119 = vector.extract_strided_slice %63 {offsets = [0, 16], sizes = [24, 8], strides = [1, 1]} : vector<24x96xbf16> to vector<24x8xbf16>
      %120 = vector.extract_strided_slice %63 {offsets = [0, 48], sizes = [24, 8], strides = [1, 1]} : vector<24x96xbf16> to vector<24x8xbf16>
      %121 = vector.extract_strided_slice %63 {offsets = [0, 80], sizes = [24, 8], strides = [1, 1]} : vector<24x96xbf16> to vector<24x8xbf16>
      %cst_53 = arith.constant dense<0.000000e+00> : vector<24x24xf32>
      %122 = tpu.matmul %119, %120, %cst_53 {dimension_numbers = #tpu.dot_dimension_numbers<[1], [1], [0], [0], [0, 0, 1, 0], [], []>} : vector<24x8xbf16>, vector<24x8xbf16>, vector<24x24xf32> -> vector<24x24xf32>
      %cst_54 = arith.constant 0.353553385 : f32
      %123 = vector.broadcast %cst_54 : f32 to vector<24x24xf32>
      %124 = arith.mulf %122, %123 : vector<24x24xf32>
      %125 = vector.broadcast %69 : vector<1x24xf32> to vector<24x24xf32>
      %126 = arith.addf %124, %125 : vector<24x24xf32>
      %cst_55 = arith.constant dense<0xFF800000> : vector<24xf32>
      %127 = vector.multi_reduction <maximumf>, %126, %cst_55 [1] : vector<24x24xf32> to vector<24xf32>
      %128 = vector.shape_cast %127 : vector<24xf32> to vector<24x1xf32>
      %129 = vector.broadcast %128 : vector<24x1xf32> to vector<24x24xf32>
      %130 = arith.subf %126, %129 : vector<24x24xf32>
      %131 = math.exp %130 : vector<24x24xf32>
      %cst_56 = arith.constant dense<0.000000e+00> : vector<24xf32>
      %132 = vector.multi_reduction <add>, %131, %cst_56 [1] : vector<24x24xf32> to vector<24xf32>
      %133 = vector.shape_cast %132 : vector<24xf32> to vector<24x1xf32>
      %134 = tpu.reciprocal %133 {approx = true} : vector<24x1xf32> -> vector<24x1xf32>
      %135 = vector.broadcast %134 : vector<24x1xf32> to vector<24x24xf32>
      %136 = arith.mulf %131, %135 : vector<24x24xf32>
      %137 = arith.truncf %136 : vector<24x24xf32> to vector<24x24xbf16>
      %cst_57 = arith.constant dense<0.000000e+00> : vector<24x8xf32>
      %138 = tpu.matmul %137, %121, %cst_57 {dimension_numbers = #tpu.dot_dimension_numbers<[1], [0], [0], [1], [0, 0, 1, 1], [], []>} : vector<24x24xbf16>, vector<24x8xbf16>, vector<24x8xf32> -> vector<24x8xf32>
      %139 = arith.truncf %138 : vector<24x8xf32> to vector<24x8xbf16>
      %c16 = arith.constant 16 : index
      %c0_58 = arith.constant 0 : index
      %140 = vector.load %arg7[%c16, %c0_58] : memref<32x32xbf16, #tpu.memory_space<vmem>>, vector<8x32xbf16>
      %cst_59 = arith.constant dense<0.000000e+00> : vector<24x32xf32>
      %141 = tpu.matmul %139, %140, %cst_59 {dimension_numbers = #tpu.dot_dimension_numbers<[1], [0], [0], [1], [0, 0, 1, 1], [], []>} : vector<24x8xbf16>, vector<8x32xbf16>, vector<24x32xf32> -> vector<24x32xf32>
      %142 = arith.addf %118, %141 : vector<24x32xf32>
      %143 = vector.extract_strided_slice %63 {offsets = [0, 24], sizes = [24, 8], strides = [1, 1]} : vector<24x96xbf16> to vector<24x8xbf16>
      %144 = vector.extract_strided_slice %63 {offsets = [0, 56], sizes = [24, 8], strides = [1, 1]} : vector<24x96xbf16> to vector<24x8xbf16>
      %145 = vector.extract_strided_slice %63 {offsets = [0, 88], sizes = [24, 8], strides = [1, 1]} : vector<24x96xbf16> to vector<24x8xbf16>
      %cst_60 = arith.constant dense<0.000000e+00> : vector<24x24xf32>
      %146 = tpu.matmul %143, %144, %cst_60 {dimension_numbers = #tpu.dot_dimension_numbers<[1], [1], [0], [0], [0, 0, 1, 0], [], []>} : vector<24x8xbf16>, vector<24x8xbf16>, vector<24x24xf32> -> vector<24x24xf32>
      %cst_61 = arith.constant 0.353553385 : f32
      %147 = vector.broadcast %cst_61 : f32 to vector<24x24xf32>
      %148 = arith.mulf %146, %147 : vector<24x24xf32>
      %149 = vector.broadcast %69 : vector<1x24xf32> to vector<24x24xf32>
      %150 = arith.addf %148, %149 : vector<24x24xf32>
      %cst_62 = arith.constant dense<0xFF800000> : vector<24xf32>
      %151 = vector.multi_reduction <maximumf>, %150, %cst_62 [1] : vector<24x24xf32> to vector<24xf32>
      %152 = vector.shape_cast %151 : vector<24xf32> to vector<24x1xf32>
      %153 = vector.broadcast %152 : vector<24x1xf32> to vector<24x24xf32>
      %154 = arith.subf %150, %153 : vector<24x24xf32>
      %155 = math.exp %154 : vector<24x24xf32>
      %cst_63 = arith.constant dense<0.000000e+00> : vector<24xf32>
      %156 = vector.multi_reduction <add>, %155, %cst_63 [1] : vector<24x24xf32> to vector<24xf32>
      %157 = vector.shape_cast %156 : vector<24xf32> to vector<24x1xf32>
      %158 = tpu.reciprocal %157 {approx = true} : vector<24x1xf32> -> vector<24x1xf32>
      %159 = vector.broadcast %158 : vector<24x1xf32> to vector<24x24xf32>
      %160 = arith.mulf %155, %159 : vector<24x24xf32>
      %161 = arith.truncf %160 : vector<24x24xf32> to vector<24x24xbf16>
      %cst_64 = arith.constant dense<0.000000e+00> : vector<24x8xf32>
      %162 = tpu.matmul %161, %145, %cst_64 {dimension_numbers = #tpu.dot_dimension_numbers<[1], [0], [0], [1], [0, 0, 1, 1], [], []>} : vector<24x24xbf16>, vector<24x8xbf16>, vector<24x8xf32> -> vector<24x8xf32>
      %163 = arith.truncf %162 : vector<24x8xf32> to vector<24x8xbf16>
      %c24 = arith.constant 24 : index
      %c0_65 = arith.constant 0 : index
      %164 = vector.load %arg7[%c24, %c0_65] : memref<32x32xbf16, #tpu.memory_space<vmem>>, vector<8x32xbf16>
      %cst_66 = arith.constant dense<0.000000e+00> : vector<24x32xf32>
      %165 = tpu.matmul %163, %164, %cst_66 {dimension_numbers = #tpu.dot_dimension_numbers<[1], [0], [0], [1], [0, 0, 1, 1], [], []>} : vector<24x8xbf16>, vector<8x32xbf16>, vector<24x32xf32> -> vector<24x32xf32>
      %166 = arith.addf %142, %165 : vector<24x32xf32>
      %167 = arith.addf %29, %166 : vector<24x32xf32>
      %c0_67 = arith.constant 0 : index
      %c0_68 = arith.constant 0 : index
      %168 = vector.load %arg8[%c0_67, %c0_68] : memref<1x32xbf16, #tpu.memory_space<vmem>>, vector<1x32xbf16>
      %169 = arith.extf %168 : vector<1x32xbf16> to vector<1x32xf32>
      %170 = vector.broadcast %169 : vector<1x32xf32> to vector<24x32xf32>
      %171 = arith.addf %167, %170 : vector<24x32xf32>
      %c0_69 = arith.constant 0 : index
      %c0_70 = arith.constant 0 : index
      %172 = vector.load %arg16[%c0_69, %c0_70] : memref<24x32xf32, #tpu.memory_space<vmem>>, vector<24x32xf32>
      tpu.vector_store %arg16[%c0_69, %c0_70], %171 {strides = array<i32>} : memref<24x32xf32, #tpu.memory_space<vmem>>, vector<24x32xf32>,
      %cst_71 = arith.constant dense<0.000000e+00> : vector<24xf32>
      %173 = vector.multi_reduction <add>, %171, %cst_71 [1] : vector<24x32xf32> to vector<24xf32>
      %174 = vector.shape_cast %173 : vector<24xf32> to vector<24x1xf32>
      %cst_72 = arith.constant 3.200000e+01 : f32
      %175 = vector.broadcast %cst_72 : f32 to vector<24x1xf32>
      %176 = arith.divf %174, %175 : vector<24x1xf32>
      %177 = vector.broadcast %176 : vector<24x1xf32> to vector<24x32xf32>
      %178 = arith.subf %171, %177 : vector<24x32xf32>
      %179 = arith.mulf %178, %178 : vector<24x32xf32>
      %cst_73 = arith.constant dense<0.000000e+00> : vector<24xf32>
      %180 = vector.multi_reduction <add>, %179, %cst_73 [1] : vector<24x32xf32> to vector<24xf32>
      %181 = vector.shape_cast %180 : vector<24xf32> to vector<24x1xf32>
      %cst_74 = arith.constant 3.200000e+01 : f32
      %182 = vector.broadcast %cst_74 : f32 to vector<24x1xf32>
      %183 = arith.divf %181, %182 : vector<24x1xf32>
      %184 = vector.broadcast %176 : vector<24x1xf32> to vector<24x32xf32>
      %185 = arith.subf %171, %184 : vector<24x32xf32>
      %cst_75 = arith.constant 9.99999974E-6 : f32
      %186 = vector.broadcast %cst_75 : f32 to vector<24x1xf32>
      %187 = arith.addf %183, %186 : vector<24x1xf32>
      %188 = math.rsqrt %187 : vector<24x1xf32>
      %189 = vector.broadcast %188 : vector<24x1xf32> to vector<24x32xf32>
      %190 = arith.mulf %185, %189 : vector<24x32xf32>
      %c0_76 = arith.constant 0 : index
      %c0_77 = arith.constant 0 : index
      %191 = vector.load %arg9[%c0_76, %c0_77] : memref<1x32xbf16, #tpu.memory_space<vmem>>, vector<1x32xbf16>
      %192 = arith.extf %191 : vector<1x32xbf16> to vector<1x32xf32>
      %193 = vector.broadcast %192 : vector<1x32xf32> to vector<24x32xf32>
      %194 = arith.mulf %190, %193 : vector<24x32xf32>
      %c0_78 = arith.constant 0 : index
      %c0_79 = arith.constant 0 : index
      %195 = vector.load %arg10[%c0_78, %c0_79] : memref<1x32xbf16, #tpu.memory_space<vmem>>, vector<1x32xbf16>
      %196 = arith.extf %195 : vector<1x32xbf16> to vector<1x32xf32>
      %197 = vector.broadcast %196 : vector<1x32xf32> to vector<24x32xf32>
      %198 = arith.addf %194, %197 : vector<24x32xf32>
      %199 = arith.truncf %198 : vector<24x32xf32> to vector<24x32xbf16>
      %c0_80 = arith.constant 0 : index
      %c0_81 = arith.constant 0 : index
      %200 = vector.load %arg17[%c0_80, %c0_81] : memref<24x32xbf16, #tpu.memory_space<vmem>>, vector<24x32xbf16>
      tpu.vector_store %arg17[%c0_80, %c0_81], %199 {strides = array<i32>} : memref<24x32xbf16, #tpu.memory_space<vmem>>, vector<24x32xbf16>,
      %cst_82 = arith.constant 0.000000e+00 : f32
      %201 = vector.broadcast %cst_82 : f32 to vector<24x32xf32>
      %c0_83 = arith.constant 0 : index
      %c0_84 = arith.constant 0 : index
      %202 = vector.load %arg18[%c0_83, %c0_84] : memref<24x32xf32, #tpu.memory_space<vmem>>, vector<24x32xf32>
      tpu.vector_store %arg18[%c0_83, %c0_84], %201 {strides = array<i32>} : memref<24x32xf32, #tpu.memory_space<vmem>>, vector<24x32xf32>,
    } else {
    }
    %c0 = arith.constant 0 : index
    %c0_1 = arith.constant 0 : index
    %3 = vector.load %arg17[%c0, %c0_1] : memref<24x32xbf16, #tpu.memory_space<vmem>>, vector<24x32xbf16>
    %c0_2 = arith.constant 0 : index
    %c0_3 = arith.constant 0 : index
    %4 = vector.load %arg11[%c0_2, %c0_3] : memref<32x128xbf16, #tpu.memory_space<vmem>>, vector<32x128xbf16>
    %cst = arith.constant dense<0.000000e+00> : vector<24x128xf32>
    %5 = tpu.matmul %3, %4, %cst {dimension_numbers = #tpu.dot_dimension_numbers<[1], [0], [0], [1], [0, 0, 1, 1], [], []>} : vector<24x32xbf16>, vector<32x128xbf16>, vector<24x128xf32> -> vector<24x128xf32>
    %c0_4 = arith.constant 0 : index
    %c0_5 = arith.constant 0 : index
    %6 = vector.load %arg12[%c0_4, %c0_5] : memref<1x128xbf16, #tpu.memory_space<vmem>>, vector<1x128xbf16>
    %7 = arith.extf %6 : vector<1x128xbf16> to vector<1x128xf32>
    %8 = vector.broadcast %7 : vector<1x128xf32> to vector<24x128xf32>
    %9 = arith.addf %5, %8 : vector<24x128xf32>
    %cst_6 = arith.constant 5.000000e-01 : f32
    %10 = vector.broadcast %cst_6 : f32 to vector<24x128xf32>
    %11 = arith.mulf %10, %9 : vector<24x128xf32>
    %cst_7 = arith.constant 0.707106769 : f32
    %12 = vector.broadcast %cst_7 : f32 to vector<24x128xf32>
    %13 = arith.mulf %9, %12 : vector<24x128xf32>
    %14 = math.erf %13 : vector<24x128xf32>
    %cst_8 = arith.constant 1.000000e+00 : f32
    %15 = vector.broadcast %cst_8 : f32 to vector<24x128xf32>
    %16 = arith.addf %15, %14 : vector<24x128xf32>
    %17 = arith.mulf %11, %16 : vector<24x128xf32>
    %c0_9 = arith.constant 0 : index
    %c0_10 = arith.constant 0 : index
    %18 = vector.load %arg18[%c0_9, %c0_10] : memref<24x32xf32, #tpu.memory_space<vmem>>, vector<24x32xf32>
    %19 = arith.truncf %17 : vector<24x128xf32> to vector<24x128xbf16>
    %c0_11 = arith.constant 0 : index
    %c0_12 = arith.constant 0 : index
    %20 = vector.load %arg13[%c0_11, %c0_12] : memref<128x32xbf16, #tpu.memory_space<vmem>>, vector<128x32xbf16>
    %cst_13 = arith.constant dense<0.000000e+00> : vector<24x32xf32>
    %21 = tpu.matmul %19, %20, %cst_13 {dimension_numbers = #tpu.dot_dimension_numbers<[1], [0], [0], [1], [0, 0, 1, 1], [], []>} : vector<24x128xbf16>, vector<128x32xbf16>, vector<24x32xf32> -> vector<24x32xf32>
    %22 = arith.addf %18, %21 : vector<24x32xf32>
    %c0_14 = arith.constant 0 : index
    %c0_15 = arith.constant 0 : index
    %23 = vector.load %arg18[%c0_14, %c0_15] : memref<24x32xf32, #tpu.memory_space<vmem>>, vector<24x32xf32>
    tpu.vector_store %arg18[%c0_14, %c0_15], %22 {strides = array<i32>} : memref<24x32xf32, #tpu.memory_space<vmem>>, vector<24x32xf32>,
    %c0_i32_16 = arith.constant 0 : i32
    %24 = arith.cmpi eq, %arg1, %c0_i32_16 : i32
    %25 = arith.extui %24 : i1 to i32
    %c0_i32_17 = arith.constant 0 : i32
    %26 = arith.cmpi ne, %25, %c0_i32_17 : i32
    scf.if %26 {
      %c0_18 = arith.constant 0 : index
      %c0_19 = arith.constant 0 : index
      %27 = vector.load %arg16[%c0_18, %c0_19] : memref<24x32xf32, #tpu.memory_space<vmem>>, vector<24x32xf32>
      %c0_20 = arith.constant 0 : index
      %c0_21 = arith.constant 0 : index
      %28 = vector.load %arg18[%c0_20, %c0_21] : memref<24x32xf32, #tpu.memory_space<vmem>>, vector<24x32xf32>
      %29 = arith.addf %27, %28 : vector<24x32xf32>
      %c0_22 = arith.constant 0 : index
      %c0_23 = arith.constant 0 : index
      %30 = vector.load %arg14[%c0_22, %c0_23] : memref<1x32xbf16, #tpu.memory_space<vmem>>, vector<1x32xbf16>
      %31 = arith.extf %30 : vector<1x32xbf16> to vector<1x32xf32>
      %32 = vector.broadcast %31 : vector<1x32xf32> to vector<24x32xf32>
      %33 = arith.addf %29, %32 : vector<24x32xf32>
      %34 = arith.truncf %33 : vector<24x32xf32> to vector<24x32xbf16>
      %c0_24 = arith.constant 0 : index
      %c0_25 = arith.constant 0 : index
      %c0_26 = arith.constant 0 : index
      %35 = vector.load %arg15[%c0_24, %c0_25, %c0_26] : memref<1x24x32xbf16, #tpu.memory_space<vmem>>, vector<1x24x32xbf16>
      %36 = vector.shape_cast %35 : vector<1x24x32xbf16> to vector<24x32xbf16>
      %37 = vector.shape_cast %34 : vector<24x32xbf16> to vector<1x24x32xbf16>
      tpu.vector_store %arg15[%c0_24, %c0_25, %c0_26], %37 {strides = array<i32>} : memref<1x24x32xbf16, #tpu.memory_space<vmem>>, vector<1x24x32xbf16>,
    } else {
    }
    return
  }
  func.func @transform_0(%arg0: i32, %arg1: i32) -> (i32, i32, i32) {
    %c0_i32 = arith.constant 0 : i32
    %c0_i32_0 = arith.constant 0 : i32
    %c0_i32_1 = arith.constant 0 : i32
    return %arg0, %c0_i32, %c0_i32_0 : i32, i32, i32
  }
  func.func @transform_1(%arg0: i32, %arg1: i32) -> (i32, i32) {
    %c0_i32 = arith.constant 0 : i32
    %c0_i32_0 = arith.constant 0 : i32
    %c0_i32_1 = arith.constant 0 : i32
    return %c0_i32, %c0_i32_0 : i32, i32
  }
  func.func @transform_2(%arg0: i32, %arg1: i32) -> (i32, i32) {
    %c0_i32 = arith.constant 0 : i32
    %c0_i32_0 = arith.constant 0 : i32
    %c0_i32_1 = arith.constant 0 : i32
    return %c0_i32, %c0_i32_0 : i32, i32
  }
  func.func @transform_3(%arg0: i32, %arg1: i32) -> (i32, i32) {
    %c0_i32 = arith.constant 0 : i32
    %c0_i32_0 = arith.constant 0 : i32
    %c0_i32_1 = arith.constant 0 : i32
    return %c0_i32, %c0_i32_0 : i32, i32
  }
  func.func @transform_4(%arg0: i32, %arg1: i32) -> (i32, i32) {
    %c0_i32 = arith.constant 0 : i32
    %c0_i32_0 = arith.constant 0 : i32
    %c0_i32_1 = arith.constant 0 : i32
    return %c0_i32, %c0_i32_0 : i32, i32
  }
  func.func @transform_5(%arg0: i32, %arg1: i32) -> (i32, i32) {
    %c0_i32 = arith.constant 0 : i32
    %c0_i32_0 = arith.constant 0 : i32
    %c0_i32_1 = arith.constant 0 : i32
    return %c0_i32, %c0_i32_0 : i32, i32
  }
  func.func @transform_6(%arg0: i32, %arg1: i32) -> (i32, i32) {
    %c0_i32 = arith.constant 0 : i32
    %c0_i32_0 = arith.constant 0 : i32
    %c0_i32_1 = arith.constant 0 : i32
    return %c0_i32, %c0_i32_0 : i32, i32
  }
  func.func @transform_7(%arg0: i32, %arg1: i32) -> (i32, i32) {
    %c0_i32 = arith.constant 0 : i32
    %c0_i32_0 = arith.constant 0 : i32
    %c0_i32_1 = arith.constant 0 : i32
    return %c0_i32, %c0_i32_0 : i32, i32
  }
  func.func @transform_8(%arg0: i32, %arg1: i32) -> (i32, i32) {
    %c0_i32 = arith.constant 0 : i32
    %c0_i32_0 = arith.constant 0 : i32
    %c0_i32_1 = arith.constant 0 : i32
    return %c0_i32, %c0_i32_0 : i32, i32
  }
  func.func @transform_9(%arg0: i32, %arg1: i32) -> (i32, i32) {
    %c0_i32 = arith.constant 0 : i32
    %c0_i32_0 = arith.constant 0 : i32
    return %c0_i32, %arg1 : i32, i32
  }
  func.func @transform_10(%arg0: i32, %arg1: i32) -> (i32, i32) {
    %c0_i32 = arith.constant 0 : i32
    %c0_i32_0 = arith.constant 0 : i32
    return %c0_i32, %arg1 : i32, i32
  }
  func.func @transform_11(%arg0: i32, %arg1: i32) -> (i32, i32) {
    %c0_i32 = arith.constant 0 : i32
    %c0_i32_0 = arith.constant 0 : i32
    return %arg1, %c0_i32 : i32, i32
  }
  func.func @transform_12(%arg0: i32, %arg1: i32) -> (i32, i32) {
    %c0_i32 = arith.constant 0 : i32
    %c0_i32_0 = arith.constant 0 : i32
    %c0_i32_1 = arith.constant 0 : i32
    return %c0_i32, %c0_i32_0 : i32, i32
  }
  func.func @transform_13(%arg0: i32, %arg1: i32) -> (i32, i32, i32) {
    %c0_i32 = arith.constant 0 : i32
    %c0_i32_0 = arith.constant 0 : i32
    %c0_i32_1 = arith.constant 0 : i32
    return %arg0, %c0_i32, %c0_i32_0 : i32, i32, i32
  }
}

module attributes {stable_mosaic.version = 11 : i64} {
  func.func @ln_kernel(%arg0: i32, %arg1: memref<2x32xbf16, #tpu.memory_space<vmem>>, %arg2: memref<1x32xbf16, #tpu.memory_space<vmem>>, %arg3: memref<1x32xbf16, #tpu.memory_space<vmem>>, %arg4: memref<2x32xf32, #tpu.memory_space<vmem>>) attributes {dimension_semantics = [#tpu.dimension_semantics<arbitrary>], iteration_bounds = array<i64: 1>, scalar_prefetch = 0 : i64, scratch_operands = 0 : i64, tpu.core_type = #tpu.core_type<tc>, window_params = [{pipeline_mode = #tpu.pipeline_mode<synchronous>, transform_indices = @transform_0, window_bounds = array<i64: 2, 32>}, {pipeline_mode = #tpu.pipeline_mode<synchronous>, transform_indices = @transform_1, window_bounds = array<i64: 1, 32>}, {pipeline_mode = #tpu.pipeline_mode<synchronous>, transform_indices = @transform_2, window_bounds = array<i64: 1, 32>}, {pipeline_mode = #tpu.pipeline_mode<synchronous>, transform_indices = @transform_3, window_bounds = array<i64: 2, 32>}]} {
    %c0 = arith.constant 0 : index
    %c0_0 = arith.constant 0 : index
    %0 = vector.load %arg1[%c0, %c0_0] : memref<2x32xbf16, #tpu.memory_space<vmem>>, vector<2x32xbf16>
    %1 = arith.extf %0 : vector<2x32xbf16> to vector<2x32xf32>
    %cst = arith.constant dense<0.000000e+00> : vector<2xf32>
    %2 = vector.multi_reduction <add>, %1, %cst [1] : vector<2x32xf32> to vector<2xf32>
    %3 = vector.shape_cast %2 : vector<2xf32> to vector<2x1xf32>
    %cst_1 = arith.constant 3.200000e+01 : f32
    %4 = vector.broadcast %cst_1 : f32 to vector<2x1xf32>
    %5 = arith.divf %3, %4 : vector<2x1xf32>
    %6 = vector.broadcast %5 : vector<2x1xf32> to vector<2x32xf32>
    %7 = arith.subf %1, %6 : vector<2x32xf32>
    %8 = arith.mulf %7, %7 : vector<2x32xf32>
    %cst_2 = arith.constant dense<0.000000e+00> : vector<2xf32>
    %9 = vector.multi_reduction <add>, %8, %cst_2 [1] : vector<2x32xf32> to vector<2xf32>
    %10 = vector.shape_cast %9 : vector<2xf32> to vector<2x1xf32>
    %cst_3 = arith.constant 3.200000e+01 : f32
    %11 = vector.broadcast %cst_3 : f32 to vector<2x1xf32>
    %12 = arith.divf %10, %11 : vector<2x1xf32>
    %13 = vector.broadcast %5 : vector<2x1xf32> to vector<2x32xf32>
    %14 = arith.subf %1, %13 : vector<2x32xf32>
    %cst_4 = arith.constant 9.99999974E-6 : f32
    %15 = vector.broadcast %cst_4 : f32 to vector<2x1xf32>
    %16 = arith.addf %12, %15 : vector<2x1xf32>
    %17 = math.rsqrt %16 : vector<2x1xf32>
    %18 = vector.broadcast %17 : vector<2x1xf32> to vector<2x32xf32>
    %19 = arith.mulf %14, %18 : vector<2x32xf32>
    %c0_5 = arith.constant 0 : index
    %c0_6 = arith.constant 0 : index
    %20 = vector.load %arg2[%c0_5, %c0_6] : memref<1x32xbf16, #tpu.memory_space<vmem>>, vector<1x32xbf16>
    %21 = arith.extf %20 : vector<1x32xbf16> to vector<1x32xf32>
    %22 = vector.broadcast %21 : vector<1x32xf32> to vector<2x32xf32>
    %23 = arith.mulf %19, %22 : vector<2x32xf32>
    %c0_7 = arith.constant 0 : index
    %c0_8 = arith.constant 0 : index
    %24 = vector.load %arg3[%c0_7, %c0_8] : memref<1x32xbf16, #tpu.memory_space<vmem>>, vector<1x32xbf16>
    %25 = arith.extf %24 : vector<1x32xbf16> to vector<1x32xf32>
    %26 = vector.broadcast %25 : vector<1x32xf32> to vector<2x32xf32>
    %27 = arith.addf %23, %26 : vector<2x32xf32>
    %c0_9 = arith.constant 0 : index
    %c0_10 = arith.constant 0 : index
    %28 = vector.load %arg4[%c0_9, %c0_10] : memref<2x32xf32, #tpu.memory_space<vmem>>, vector<2x32xf32>
    tpu.vector_store %arg4[%c0_9, %c0_10], %27 {strides = array<i32>} : memref<2x32xf32, #tpu.memory_space<vmem>>, vector<2x32xf32>,
    return
  }
  func.func @transform_0(%arg0: i32) -> (i32, i32) {
    %c0_i32 = arith.constant 0 : i32
    %c0_i32_0 = arith.constant 0 : i32
    %c0_i32_1 = arith.constant 0 : i32
    return %c0_i32, %c0_i32_0 : i32, i32
  }
  func.func @transform_1(%arg0: i32) -> (i32, i32) {
    %c0_i32 = arith.constant 0 : i32
    %c0_i32_0 = arith.constant 0 : i32
    %c0_i32_1 = arith.constant 0 : i32
    return %c0_i32, %c0_i32_0 : i32, i32
  }
  func.func @transform_2(%arg0: i32) -> (i32, i32) {
    %c0_i32 = arith.constant 0 : i32
    %c0_i32_0 = arith.constant 0 : i32
    %c0_i32_1 = arith.constant 0 : i32
    return %c0_i32, %c0_i32_0 : i32, i32
  }
  func.func @transform_3(%arg0: i32) -> (i32, i32) {
    %c0_i32 = arith.constant 0 : i32
    %c0_i32_0 = arith.constant 0 : i32
    %c0_i32_1 = arith.constant 0 : i32
    return %c0_i32, %c0_i32_0 : i32, i32
  }
}

</mosaic_0001>

<bundles_post_ra>
// kernel: vit_forward.4
= control target key start
LH: loop header
LB: loop body
LE: loop exit
PB: predicated region body
PF: predicated region fallthrough
CT: control target
= control target key end

     0   :  { %vm19_vm0 = vcmask 261120   ;;  %v222_v1 = vmov 0.0   ;;  %vm74_vm1 = vcmask 523264   ;;  %v148_v7 = vlaneseq  ;;  %s284_s1 = inlined_call_operand.vmem [shape: bf16[64,32], index: 1, kind: input, shape index: {}]   ;;  %s285_s0 = inlined_call_operand.vmem [shape: bf16[32,64], index: 0, kind: input, shape index: {}]   ;;  %s286_s2 = inlined_call_operand.vmem [shape: bf16[1,32], index: 2, kind: input, shape index: {}]   ;;  %s287_s3 = inlined_call_operand.vmem [shape: bf16[32,32], index: 3, kind: output, shape index: {}]  }
   0x1   :  { %v216_v0 = vld [vmem:[%s284_s1] sm:$0xff]   ;;  %22 = vst.msk [vmem:[#allocation2 + $0x10] sm:$0xff] %vm19_vm0, %v222_v1  ;;  %20 = vst.msk [vmem:[#allocation2] sm:$0xff] %vm19_vm0, %v222_v1  ;;  %v217_v2 = vld [vmem:[%s284_s1 + $0x8] sm:$0xff]   ;;  %vm172_vm2 = vcmask 257024  }
   0x2   :  { %21 = vst.msk [vmem:[#allocation2 + $0x8] sm:$0xff] %vm19_vm0, %v222_v1  ;;  %23 = vst.msk [vmem:[#allocation2 + $0x18] sm:$0xff] %vm19_vm0, %v222_v1  ;;  %203 = vmatprep.subr.bf16.mxu0 %v216_v0  ;;  %v218_v3 = vld [vmem:[%s284_s1 + $0x10] sm:$0xff]   ;;  %v220_v4 = vld [vmem:[%s285_s0] sm:$0xff]   ;;  %v149_v9 = vshrl.u32 %v148_v7, 7 }
   0x3   :  { %204 = vmatpush3.bf16.msra.mxu0 %v216_v0  ;;  %211 = vmatprep.mubr.msk.bf16.mxu0 %vm74_vm1, %v220_v4  ;;  %v219_v5 = vld [vmem:[%s284_s1 + $0x18] sm:$0xff]   ;;  %v221_v6 = vld [vmem:[%s285_s0 + $0x8] sm:$0xff]   ;;  %v146_v12 = vld [vmem:[%s286_s2] sm:$0x1] }
   0x4   :  { %205 = vmatprep.subr.bf16.mxu0 %v217_v2  ;;  %v147_v19 = vunpack.c.l.bf16 %v146_v12  ;;  %v150_v20 = vsub.s32 0, %v149_v9 }
   0x6   :  { %v151_v24 = vrot.slane %v147_v19, %v150_v20 }
   0x7   :  { %206 = vmatpush3.bf16.msra.mxu0 %v217_v2 }
   0x8   :  { %207 = vmatprep.subr.bf16.mxu0 %v218_v3  ;;  %v26_v8 = vld [vmem:[#allocation2 + $0x10] sm:$0xff]  ;;  %v24_v10 = vld [vmem:[#allocation2] sm:$0xff] }
   0x9   :  { %v27_v13 = vld [vmem:[#allocation2 + $0x18] sm:$0xff]  ;;  %v25_v16 = vld [vmem:[#allocation2 + $0x8] sm:$0xff] }
   0xb   :  { %208 = vmatpush3.bf16.msra.mxu0 %v218_v3 }
   0xc   :  { %209 = vmatprep.subr.bf16.mxu0 %v219_v5 }
   0xf   :  { %210 = vmatpush3.bf16.msra.mxu0 %v219_v5 }
  0x12   :  { %212 = vmatmul.mubr.msk.bf16.vlgmr.msra.gmra.mrb[0].mxu0 %vm74_vm1, %v221_v6 }
  0xe5   :  { %v213_v11 = vpop.f32.mrb[0].mxu0 }
  0xe6   :  { %v132_v14 = vadd.f32 %v213_v11, %v26_v8  ;;  %v115_v15 = vpop.f32.mrb[1].mxu0 }
  0xe7   :  { %v130_v17 = vadd.f32 %v115_v15, %v24_v10  ;;  %v214_v18 = vpop.f32.mrb[2].mxu0 }
  0xe8   :  { %137 = vst.msk [vmem:[#allocation2 + $0x10] sm:$0xff] %vm19_vm0, %v132_v14  ;;  %v133_v21 = vadd.f32 %v214_v18, %v27_v13  ;;  %v118_v22 = vpop.f32.mrb[3].mxu0 }
  0xe9   :  { %135 = vst.msk [vmem:[#allocation2] sm:$0xff] %vm19_vm0, %v130_v17  ;;  %v131_v23 = vadd.f32 %v118_v22, %v25_v16 }
  0xea   :  { %138 = vst.msk [vmem:[#allocation2 + $0x18] sm:$0xff] %vm19_vm0, %v133_v21 }
  0xeb   :  { %136 = vst.msk [vmem:[#allocation2 + $0x8] sm:$0xff] %vm19_vm0, %v131_v23 }
  0xef   :  { %v144_v25 = vld [vmem:[#allocation2 + $0x10] sm:$0xff] }
  0xf0   :  { %v154_v26 = vadd.f32 %v151_v24, %v144_v25  ;;  %v142_v27 = vld [vmem:[#allocation2] sm:$0xff] }
  0xf1   :  { %v152_v28 = vadd.f32 %v151_v24, %v142_v27  ;;  %v145_v29 = vld [vmem:[#allocation2 + $0x18] sm:$0xff] }
  0xf2   :  { %v195_v30 = vpack.c.bf16 %v154_v26, %v154_v26  ;;  %v155_v31 = vadd.f32 %v151_v24, %v145_v29  ;;  %v143_v32 = vld [vmem:[#allocation2 + $0x8] sm:$0xff] }
  0xf3   :  { %v193_v33 = vpack.c.bf16 %v152_v28, %v152_v28  ;;  %v153_v34 = vadd.f32 %v151_v24, %v143_v32 }
  0xf4   :  { %175 = vst.msk [vmem:[%s287_s3 + $0x8] sm:$0xf] %vm172_vm2, %v195_v30  ;;  %v196_v35 = vpack.c.bf16 %v155_v31, %v155_v31 }
  0xf5   :  { %173 = vst.msk [vmem:[%s287_s3] sm:$0xf] %vm172_vm2, %v193_v33  ;;  %v194_v36 = vpack.c.bf16 %v153_v34, %v153_v34 }
  0xf6   :  { %176 = vst.msk [vmem:[%s287_s3 + $0xc] sm:$0xf] %vm172_vm2, %v196_v35 }
  0xf7   :  { %174 = vst.msk [vmem:[%s287_s3 + $0x4] sm:$0xf] %vm172_vm2, %v194_v36 }

// kernel: vit_forward.7
= control target key start
LH: loop header
LB: loop body
LE: loop exit
PB: predicated region body
PF: predicated region fallthrough
CT: control target
= control target key end

     0   :  { %vm17_vm0 = vcmask 254976   ;;  %s133_s0 = inlined_call_operand.vmem [shape: bf16[2,32], index: 0, kind: input, shape index: {}]   ;;  %s134_s1 = inlined_call_operand.vmem [shape: bf16[1,32], index: 1, kind: input, shape index: {}]   ;;  %s135_s2 = inlined_call_operand.vmem [shape: bf16[1,32], index: 2, kind: input, shape index: {}]   ;;  %s136_s3 = inlined_call_operand.hbm [shape: f32[2,32], index: 3, kind: output, shape index: {}]  }
   0x1   :  { %v15_v0 = vld [vmem:[%s133_s0] sm:$0x1] }
   0x2   :  { %8 = vsyncpa [#allocation3], 0  ;;  %v16_v1 = vunpack.c.l.bf16 %v15_v0  ;;  %v34_v10 = vlaneseq  ;;  %v32_v13 = vld [vmem:[%s134_s1] sm:$0x1]  ;;  %s88_s17 = smov [#allocation2]  }
   0x3   :  { %v39_v14 = vld [vmem:[%s135_s2] sm:$0x1]  ;;  %v33_v15 = vunpack.c.l.bf16 %v32_v13  ;;  %s53_s18 = sshll.u32 %s88_s17, 4  ;;  %s54_s18 = int_to_ptr.vmem [resolvable:$true] %s53_s18 }
   0x4   :  { %v18_v2 = vsel %vm17_vm0, %v16_v1, 0.0  ;;  %v35_v12 = vshrl.u32 %v34_v10, 7  ;;  %v40_v17 = vunpack.c.l.bf16 %v39_v14  ;;  %s64_s19 = scalar_lea.vmem %s54_s18, 32  ;;  %p69_p1 = scmp.lt.s32.totalorder %s54_s18, %s54_s18 }
   0x5   :  { %19 = vadd.xlane.f32.xlu0 %v18_v2  ;;  %p65_p0 = scmp.ne.s32.totalorder %s54_s18, %s64_s19  ;;  %p70_p2 = scmp.lt.s32.totalorder %s64_s19, %s64_s19 }
   0x6   :  { %v36_v16 = vsub.s32 0, %v35_v12 }
   0x7   :  { %p71_p3 = por %p70_p2, %p69_p1 }
   0x8   :  { %v37_v18 = vrot.slane %v33_v15, %v36_v16  ;;  %v44_v21 = vrot.slane %v40_v17, %v36_v16 }
   0x9   :  { %p72_p4 = pnand %p71_p3, %p65_p0 }
  0x92   :  { %v20_v3 = vpop.xlane.xlu0 %19 }
  0x93   :  { %v22_v4 = vmul.f32 0.03125, %v20_v3 }
  0x95   :  { %v23_v5 = vsub.f32 %v16_v1, %v22_v4 }
  0x97   :  { %v24_v6 = vmul.f32 %v23_v5, %v23_v5 }
  0x99   :  { %v25_v7 = vsel %vm17_vm0, %v24_v6, 0.0 }
  0x9a   :  { %26 = vadd.xlane.f32.xlu0 %v25_v7 }
 0x127   :  { %v27_v8 = vpop.xlane.xlu0 %26 }
 0x128   :  { %v28_v9 = vmul.f32 0.03125, %v27_v8 }
 0x12a   :  { %v29_v11 = vadd.f32 1e-05, %v28_v9 }
 0x12c   :  { %62 = vrsqrt.f32 %v29_v11 }
 0x136   :  { %v63_v19 = vpop.eup %62 }
 0x137   :  { %v31_v20 = vmul.f32 %v63_v19, %v23_v5 }
 0x139   :  { %v38_v22 = vmul.f32 %v37_v18, %v31_v20 }
 0x13b   :  { %v45_v23 = vadd.f32 %v44_v21, %v38_v22 }
 0x13d   :  { %46 = vst.msk [vmem:[#allocation2] sm:$0x3] %vm17_vm0, %v45_v23 }
 0x13e   :  { %75 = shalt.err (!%p72_p4)
}
 0x13f   :  { %s76_s20 = scalar_lea.hbm %s136_s3, 32 }
 0x140   :  { %p77_p5 = scmp.ne.s32.totalorder %s136_s3, %s76_s20  ;;  %p80_p6 = scmp.lt.u32.totalorder %s76_s20, %s136_s3 }
 0x142   :  { %p82_p7 = pnand %p80_p6, %p77_p5 }
 0x144   :  { %85 = shalt.err (!%p82_p7)
}
 0x145   :  { %56 = dma.vmem_to_hbm [thread:$0]  %s54_s18, 32, %s136_s3, [#allocation3]  }
 0x146   :  { %86 = dma.done.wait [#allocation3], 32  }
 0x147   :  { %87 = vsyncadd [#allocation3], 4294967264 }
 0x148   :  { %60 = vsyncpa [#allocation3], 1 }

// kernel: vit_forward.5
= control target key start
LH: loop header
LB: loop body
LE: loop exit
PB: predicated region body
PF: predicated region fallthrough
CT: control target
= control target key end

     0   :  { %s4620_s0 = inlined_call_operand.hbm [shape: bf16[1,24,32], index: 0, kind: input, shape index: {}]   ;;  %s4621_s1 = inlined_call_operand.hbm [shape: bf16[1,32], index: 1, kind: input, shape index: {}]   ;;  %s4622_s2 = inlined_call_operand.hbm [shape: bf16[1,32], index: 2, kind: input, shape index: {}]   ;;  %s4623_s3 = inlined_call_operand.hbm [shape: bf16[2,24,32], index: 3, kind: input, shape index: {}]   ;;  %s4624_s4 = inlined_call_operand.hbm [shape: bf16[1,32], index: 4, kind: input, shape index: {}]   ;;  %s4625_s5 = inlined_call_operand.hbm [shape: bf16[1,32], index: 5, kind: input, shape index: {}]   ;;  %s4626_s6 = inlined_call_operand.hbm [shape: bf16[32,96], index: 6, kind: input, shape index: {}]   ;;  %s4627_s7 = inlined_call_operand.hbm [shape: bf16[1,96], index: 7, kind: input, shape index: {}]   ;;  %s4628_s8 = inlined_call_operand.hbm [shape: bf16[32,32], index: 8, kind: input, shape index: {}]   ;;  %s4629_s9 = inlined_call_operand.hbm [shape: bf16[1,32], index: 9, kind: input, shape index: {}]   ;;  %s4630_s10 = inlined_call_operand.hbm [shape: bf16[1,32], index: 10, kind: input, shape index: {}]   ;;  %s4631_s11 = inlined_call_operand.hbm [shape: bf16[1,32], index: 11, kind: input, shape index: {}]   ;;  %s4632_s12 = inlined_call_operand.hbm [shape: bf16[32,128], index: 12, kind: input, shape index: {}]   ;;  %s4633_s13 = inlined_call_operand.hbm [shape: bf16[1,128], index: 13, kind: input, shape index: {}]   ;;  %s4634_s14 = inlined_call_operand.hbm [shape: bf16[128,32], index: 14, kind: input, shape index: {}]   ;;  %s4635_s15 = inlined_call_operand.hbm [shape: bf16[1,32], index: 15, kind: input, shape index: {}]   ;;  %s4636_s16 = inlined_call_operand.hbm [shape: bf16[2,24,32], index: 16, kind: output, shape index: {}]  }
   0x1   :  { %4652 = sst [smem:[#allocation49_spill]] %s4620_s0 }
   0x2   :  { %4653 = sst [smem:[#allocation50_spill]] %s4621_s1 }
   0x3   :  { %4654 = sst [smem:[#allocation51_spill]] %s4622_s2 }
   0x4   :  { %4655 = sst [smem:[#allocation52_spill]] %s4623_s3 }
   0x5   :  { %4656 = sst [smem:[#allocation53_spill]] %s4624_s4 }
   0x6   :  { %4657 = sst [smem:[#allocation54_spill]] %s4625_s5 }
   0x7   :  { %4658 = sst [smem:[#allocation55_spill]] %s4626_s6 }
   0x8   :  { %4659 = sst [smem:[#allocation56_spill]] %s4636_s16 }
   0x9   :  { %21 = vsyncpa [#allocation6], 0 }
   0xa   :  { %22 = vsyncpa [#allocation9], 0 }
   0xb   :  { %23 = vsyncpa [#allocation12], 0 }
   0xc   :  { %25 = vsyncpa [#allocation12 + $0x1], 0 }
   0xd   :  { %26 = vsyncpa [#allocation15], 0 }
   0xe   :  { %27 = vsyncpa [#allocation18], 0 }
   0xf   :  { %28 = vsyncpa [#allocation21], 0 }
  0x10   :  { %29 = vsyncpa [#allocation24], 0 }
  0x11   :  { %30 = vsyncpa [#allocation27], 0 }
  0x12   :  { %31 = vsyncpa [#allocation30], 0 }
  0x13   :  { %32 = vsyncpa [#allocation7], 0 }
  0x14   :  { %34 = vsyncpa [#allocation7 + $0x1], 0  ;;  %s3834_s21 = smov 0   ;;  %s3836_s22 = smov 0  }
  0x15   :  { %s3838_s23 = smov 0   ;;  %s3840_s24 = smov 0  }
  0x16   :  { %s3842_s25 = smov 0   ;;  %s3844_s26 = smov 0  }
  0x17 LB: > { %4660 = sst [smem:[#allocation43_spill]] %s3695_s21  ;;  %s3717_s27 = smov [#allocation8]   ;;  %s3715_s26 = sphi %s3844_s26, %s40_s26   ;;  %s3711_s25 = sphi %s3842_s25, %s4723_s25   ;;  %s3707_s24 = sphi %s3840_s24, %s4722_s24   ;;  %s3703_s23 = sphi %s3838_s23, %s4721_s23   ;;  %s3699_s22 = sphi %s3836_s22, %s4720_s22   ;;  %s3695_s21 = sphi %s3834_s21, %s4717_s21  }
  0x18   : > { %4661 = sst [smem:[#allocation44_spill]] %s3699_s22  ;;  %s465_s28 = sshll.u32 %s3717_s27, 4  ;;  %s3870_s28 = int_to_ptr.vmem [resolvable:$true] %s465_s28 }
  0x19   : > { %4662 = sst [smem:[#allocation45_spill]] %s3703_s23  ;;  %s3865_s29 = sadd.s32 4294967295, %s3715_s26  }
  0x1a   : > { %4663 = sst [smem:[#allocation46_spill]] %s3707_s24  ;;  %p2528_p0 = scmp.ge.s32.totalorder %s3715_s26, 1 }
  0x1b   : > { %4664 = sst [smem:[#allocation47_spill]] %s3865_s29  ;;  %p4647_p1 = scmp.eq.s32.totalorder %s3865_s29, 0 }
  0x1c   : > { %p439_p2 = scmp.lt.s32.totalorder %s3715_s26, 3  ;;  %s3718_s0 = smov [#allocation13]  }
  0x1d   : > { %s487_s17 = sshll.u32 %s3718_s0, 4  ;;  %s3719_s18 = smov [#allocation14]   ;;  %s3879_s17 = int_to_ptr.vmem [resolvable:$true] %s487_s17 }
  0x1e   : > { %p3872_p3 = pnand %p2528_p0, %p439_p2  ;;  %s498_s19 = sshll.u32 %s3719_s18, 4  ;;  %s3887_s19 = int_to_ptr.vmem [resolvable:$true] %s498_s19 }
  0x1f   : > { %s3720_s27 = smov [#allocation17]   ;;  %s4668_s1 = sld [smem:[#allocation50_spill]] }
  0x20   : > { %s4665_s30 = scalar_select %p3872_p3, 1, 0 }
  0x21   : > { %p2897_p5 = pneg %p3872_p3  ;;  %s3889_s16 = sshll.u32 %s3720_s27, 4  ;;  %s523_s16 = int_to_ptr.vmem [resolvable:$true] %s3889_s16 }
  0x22   : > { %4666 = sst [smem:[#allocation48_spill]] %s4665_s30 }
  0x23   : > { %p3883_p6 = pnand %p2897_p5, %p4647_p1 }
  0x25   : > { %s3147_s3 = scalar_lea.hbm %s4668_s1, 16  ;;  %p3899_p8 = pneg %p3883_p6 }
  0x26   : > { %p3148_p7 = scmp.ne.s32.totalorder %s4668_s1, %s3147_s3  ;;  %p3154_p11 = scmp.lt.u32.totalorder %s3147_s3, %s4668_s1 }
  0x28   : > { %p3150_p9 = pnand %p3899_p8, %p3148_p7 }
  0x2a   : > { %p3151_p10 = pneg %p3150_p9 }
  0x2c   : > { %p3156_p12 = pnand %p3154_p11, %p3151_p10 }
  0x2e   : > { %3159 = shalt.err (!%p3156_p12)
}
  0x2f   : > { %s3160_s21 = scalar_lea.vmem %s3870_s28, 16  ;;  %s3167_s24 = scalar_lea.vmem %s3870_s28, 32 }
  0x30   : > { %p3161_p13 = scmp.ne.s32.totalorder %s3870_s28, %s3160_s21  ;;  %p3168_p5 = scmp.lt.s32.totalorder %s3870_s28, %s3870_s28 }
  0x31   : > { %p3169_p7 = scmp.lt.s32.totalorder %s3167_s24, %s3160_s21 }
  0x32   : > { %p3163_p0 = pnand %p3161_p13, %p3899_p8 }
  0x33   : > { %p3170_p9 = por %p3169_p7, %p3168_p5 }
  0x34   : > { %p3164_p2 = pneg %p3163_p0 }
  0x36   : > { %p3171_p4 = pnand %p3170_p9, %p3164_p2 }
  0x38   : > { %3174 = shalt.err (!%p3171_p4)
}
  0x39   : > { %2903 = dma.hbm_to_vmem [thread:$0]  (!%p3883_p6), %s4668_s1, 16, %s3870_s28, [#allocation9]  }
  0x3a   : > { %s4670_s4 = sld [smem:[#allocation53_spill]] }
  0x40   : > { %s3175_s27 = scalar_lea.hbm %s4670_s4, 16 }
  0x41   : > { %p3176_p10 = scmp.ne.s32.totalorder %s4670_s4, %s3175_s27  ;;  %p3182_p4 = scmp.lt.u32.totalorder %s3175_s27, %s4670_s4 }
  0x43   : > { %p3178_p11 = pnand %p3176_p10, %p3899_p8 }
  0x45   : > { %p3179_p12 = pneg %p3178_p11 }
  0x47   : > { %p3184_p13 = pnand %p3182_p4, %p3179_p12 }
  0x49   : > { %3187 = shalt.err (!%p3184_p13)
}
  0x4a   : > { %s3188_s28 = scalar_lea.vmem %s3879_s17, 16  ;;  %s3195_s22 = scalar_lea.vmem %s3879_s17, 32 }
  0x4b   : > { %p3189_p0 = scmp.ne.s32.totalorder %s3879_s17, %s3188_s28  ;;  %p3196_p7 = scmp.lt.s32.totalorder %s3879_s17, %s3879_s17 }
  0x4c   : > { %p3197_p9 = scmp.lt.s32.totalorder %s3195_s22, %s3188_s28 }
  0x4d   : > { %p3191_p2 = pnand %p3189_p0, %p3899_p8 }
  0x4e   : > { %p3198_p10 = por %p3197_p9, %p3196_p7 }
  0x4f   : > { %p3192_p5 = pneg %p3191_p2 }
  0x51   : > { %p3199_p11 = pnand %p3198_p10, %p3192_p5 }
  0x53   : > { %3202 = shalt.err (!%p3199_p11)
}
  0x54   : > { %2909 = dma.hbm_to_vmem [thread:$0]  (!%p3883_p6), %s4670_s4, 16, %s3879_s17, [#allocation12]  }
  0x55   : > { %s4671_s5 = sld [smem:[#allocation54_spill]] }
  0x5b   : > { %s3203_s0 = scalar_lea.hbm %s4671_s5, 16 }
  0x5c   : > { %p3204_p12 = scmp.ne.s32.totalorder %s4671_s5, %s3203_s0  ;;  %p3210_p0 = scmp.lt.u32.totalorder %s3203_s0, %s4671_s5 }
  0x5e   : > { %p3206_p4 = pnand %p3204_p12, %p3899_p8 }
  0x60   : > { %p3207_p13 = pneg %p3206_p4 }
  0x62   : > { %p3212_p2 = pnand %p3210_p0, %p3207_p13 }
  0x64   : > { %3215 = shalt.err (!%p3212_p2)
}
  0x65   : > { %s3216_s17 = scalar_lea.vmem %s3887_s19, 16  ;;  %s3223_s22 = scalar_lea.vmem %s3887_s19, 32 }
  0x66   : > { %p3217_p5 = scmp.ne.s32.totalorder %s3887_s19, %s3216_s17  ;;  %p3224_p10 = scmp.lt.s32.totalorder %s3887_s19, %s3887_s19 }
  0x67   : > { %p3225_p11 = scmp.lt.s32.totalorder %s3223_s22, %s3216_s17 }
  0x68   : > { %p3219_p7 = pnand %p3217_p5, %p3899_p8 }
  0x69   : > { %p3226_p12 = por %p3225_p11, %p3224_p10 }
  0x6a   : > { %p3220_p9 = pneg %p3219_p7 }
  0x6c   : > { %p3227_p4 = pnand %p3226_p12, %p3220_p9 }
  0x6e   : > { %3230 = shalt.err (!%p3227_p4)
}
  0x6f   : > { %2912 = dma.hbm_to_vmem [thread:$0]  (!%p3883_p6), %s4671_s5, 16, %s3887_s19, [#allocation15]  }
  0x70   : > { %s3721_s29 = smov [#allocation20]   ;;  %s3231_s21 = scalar_lea.hbm %s4627_s7, 16 }
  0x71   : > { %s546_s30 = sshll.u32 %s3721_s29, 4  ;;  %p3232_p13 = scmp.ne.s32.totalorder %s4627_s7, %s3231_s21  ;;  %s547_s30 = int_to_ptr.vmem [resolvable:$true] %s546_s30 }
  0x72   : > { %p3238_p5 = scmp.lt.u32.totalorder %s3231_s21, %s4627_s7 }
  0x73   : > { %p3234_p0 = pnand %p3232_p13, %p3899_p8 }
  0x75   : > { %p3235_p2 = pneg %p3234_p0 }
  0x77   : > { %p3240_p7 = pnand %p3238_p5, %p3235_p2 }
  0x79   : > { %3243 = shalt.err (!%p3240_p7)
}
  0x7a   : > { %s3244_s19 = scalar_lea.vmem %s523_s16, 16  ;;  %s3251_s23 = scalar_lea.vmem %s523_s16, 32 }
  0x7b   : > { %p3245_p9 = scmp.ne.s32.totalorder %s523_s16, %s3244_s19  ;;  %p3252_p12 = scmp.lt.s32.totalorder %s523_s16, %s523_s16 }
  0x7c   : > { %p3253_p4 = scmp.lt.s32.totalorder %s3251_s23, %s3244_s19 }
  0x7d   : > { %p3247_p10 = pnand %p3245_p9, %p3899_p8 }
  0x7e   : > { %p3254_p1 = por %p3253_p4, %p3252_p12 }
  0x7f   : > { %p3248_p11 = pneg %p3247_p10 }
  0x81   : > { %p3255_p3 = pnand %p3254_p1, %p3248_p11 }
  0x83   : > { %3258 = shalt.err (!%p3255_p3)
}
  0x84   : > { %2918 = dma.hbm_to_vmem [thread:$0]  (!%p3883_p6), %s4627_s7, 16, %s523_s16, [#allocation18]  }
  0x85   : > { %s3259_s21 = scalar_lea.hbm %s4629_s9, 16 }
  0x86   : > { %p3260_p13 = scmp.ne.s32.totalorder %s4629_s9, %s3259_s21  ;;  %p3266_p3 = scmp.lt.u32.totalorder %s3259_s21, %s4629_s9 }
  0x88   : > { %p3262_p0 = pnand %p3260_p13, %p3899_p8 }
  0x8a   : > { %p3263_p1 = pneg %p3262_p0 }
  0x8c   : > { %p3268_p2 = pnand %p3266_p3, %p3263_p1 }
  0x8e   : > { %3271 = shalt.err (!%p3268_p2)
}
  0x8f   : > { %s3272_s19 = scalar_lea.vmem %s547_s30, 16  ;;  %s3279_s16 = scalar_lea.vmem %s547_s30, 32 }
  0x90   : > { %p3273_p5 = scmp.ne.s32.totalorder %s547_s30, %s3272_s19  ;;  %p3280_p10 = scmp.lt.s32.totalorder %s547_s30, %s547_s30 }
  0x91   : > { %p3281_p11 = scmp.lt.s32.totalorder %s3279_s16, %s3272_s19 }
  0x92   : > { %p3275_p7 = pnand %p3273_p5, %p3899_p8 }
  0x93   : > { %p3282_p12 = por %p3281_p11, %p3280_p10 }
  0x94   : > { %p3276_p9 = pneg %p3275_p7 }
  0x96   : > { %p3283_p4 = pnand %p3282_p12, %p3276_p9 }
  0x98   : > { %3286 = shalt.err (!%p3283_p4)
}
  0x99   : > { %2924 = dma.hbm_to_vmem [thread:$0]  (!%p3883_p6), %s4629_s9, 16, %s547_s30, [#allocation21]  }
  0x9a   : > { %s3722_s29 = smov [#allocation23]   ;;  %s3723_s27 = smov [#allocation26]  }
  0x9b   : > { %s568_s0 = sshll.u32 %s3722_s29, 4  ;;  %s596_s21 = sshll.u32 %s3723_s27, 4  ;;  %s569_s0 = int_to_ptr.vmem [resolvable:$true] %s568_s0  ;;  %s597_s21 = int_to_ptr.vmem [resolvable:$true] %s596_s21 }
  0x9c   : > { %s3287_s17 = scalar_lea.hbm %s4631_s11, 16 }
  0x9d   : > { %p3288_p13 = scmp.ne.s32.totalorder %s4631_s11, %s3287_s17  ;;  %p3294_p3 = scmp.lt.u32.totalorder %s3287_s17, %s4631_s11 }
  0x9f   : > { %p3290_p0 = pnand %p3288_p13, %p3899_p8 }
  0xa1   : > { %p3291_p1 = pneg %p3290_p0 }
  0xa3   : > { %p3296_p2 = pnand %p3294_p3, %p3291_p1 }
  0xa5   : > { %3299 = shalt.err (!%p3296_p2)
}
  0xa6   : > { %s3300_s30 = scalar_lea.vmem %s569_s0, 16  ;;  %s3307_s3 = scalar_lea.vmem %s569_s0, 32 }
  0xa7   : > { %p3301_p5 = scmp.ne.s32.totalorder %s569_s0, %s3300_s30  ;;  %p3308_p10 = scmp.lt.s32.totalorder %s569_s0, %s569_s0 }
  0xa8   : > { %p3309_p11 = scmp.lt.s32.totalorder %s3307_s3, %s3300_s30 }
  0xa9   : > { %p3303_p7 = pnand %p3301_p5, %p3899_p8 }
  0xaa   : > { %p3310_p12 = por %p3309_p11, %p3308_p10 }
  0xab   : > { %p3304_p9 = pneg %p3303_p7 }
  0xad   : > { %p3311_p4 = pnand %p3310_p12, %p3304_p9 }
  0xaf   : > { %3314 = shalt.err (!%p3311_p4)
}
  0xb0   : > { %2930 = dma.hbm_to_vmem [thread:$0]  (!%p3883_p6), %s4631_s11, 16, %s569_s0, [#allocation24]  }
  0xb1   : > { %s3315_s17 = scalar_lea.hbm %s4633_s13, 16 }
  0xb2   : > { %p3316_p13 = scmp.ne.s32.totalorder %s4633_s13, %s3315_s17  ;;  %p3322_p3 = scmp.lt.u32.totalorder %s3315_s17, %s4633_s13 }
  0xb4   : > { %p3318_p0 = pnand %p3316_p13, %p3899_p8 }
  0xb6   : > { %p3319_p1 = pneg %p3318_p0 }
  0xb8   : > { %p3324_p2 = pnand %p3322_p3, %p3319_p1 }
  0xba   : > { %3327 = shalt.err (!%p3324_p2)
}
  0xbb   : > { %s3328_s30 = scalar_lea.vmem %s597_s21, 16  ;;  %s3335_s0 = scalar_lea.vmem %s597_s21, 32 }
  0xbc   : > { %p3329_p5 = scmp.ne.s32.totalorder %s597_s21, %s3328_s30  ;;  %p3336_p10 = scmp.lt.s32.totalorder %s597_s21, %s597_s21 }
  0xbd   : > { %p3337_p11 = scmp.lt.s32.totalorder %s3335_s0, %s3328_s30 }
  0xbe   : > { %p3331_p7 = pnand %p3329_p5, %p3899_p8 }
  0xbf   : > { %p3338_p12 = por %p3337_p11, %p3336_p10 }
  0xc0   : > { %p3332_p9 = pneg %p3331_p7 }
  0xc2   : > { %p3339_p4 = pnand %p3338_p12, %p3332_p9 }
  0xc4   : > { %3342 = shalt.err (!%p3339_p4)
}
  0xc5   : > { %2936 = dma.hbm_to_vmem [thread:$0]  (!%p3883_p6), %s4633_s13, 16, %s597_s21, [#allocation27]  }
  0xc6   : > { %s3724_s27 = smov [#allocation5]   ;;  %s4672_s22 = sld [smem:[#allocation49_spill]] }
  0xc7   : > { %s451_s24 = sshll.u32 %s3724_s27, 4  ;;  %s452_s24 = int_to_ptr.vmem [resolvable:$true] %s451_s24 }
  0xcc   : > { %s4673_s19 = smov %s4672_s22  ;;  %s3343_s16 = scalar_lea.hbm %s4672_s22, 192 }
  0xcd   : > { %p3344_p13 = scmp.ne.s32.totalorder %s4673_s19, %s3343_s16  ;;  %p3350_p3 = scmp.lt.u32.totalorder %s3343_s16, %s4673_s19 }
  0xcf   : > { %p3346_p0 = pnand %p3344_p13, %p3899_p8 }
  0xd1   : > { %p3347_p1 = pneg %p3346_p0 }
  0xd3   : > { %p3352_p2 = pnand %p3350_p3, %p3347_p1 }
  0xd5   : > { %3355 = shalt.err (!%p3352_p2)
}
  0xd6   : > { %s3356_s21 = scalar_lea.vmem %s452_s24, 192  ;;  %p3364_p10 = scmp.lt.s32.totalorder %s452_s24, %s452_s24 }
  0xd7   : > { %p3357_p5 = scmp.ne.s32.totalorder %s452_s24, %s3356_s21  ;;  %p3365_p11 = scmp.lt.s32.totalorder %s3356_s21, %s3356_s21 }
  0xd9   : > { %p3359_p7 = pnand %p3357_p5, %p3899_p8  ;;  %p3366_p12 = por %p3365_p11, %p3364_p10 }
  0xdb   : > { %p3360_p9 = pneg %p3359_p7 }
  0xdd   : > { %p3367_p4 = pnand %p3366_p12, %p3360_p9 }
  0xdf   : > { %3370 = shalt.err (!%p3367_p4)
}
  0xe0   : > { %s4649_s1 = smov 64   ;;  %s4650_s3 = smov 4  }
  0xe1   : > { %2900 = dma.hbm_to_vmem [thread:$0]  (!%p3883_p6), %s4673_s19, 192, %s452_s24, [#allocation6], %s4649_s1, %s4649_s1, %s4650_s3  }
  0xe2   : > { %s3727_s28 = smov [#allocation10]   ;;  %s3728_s22 = smov [#allocation16]  }
  0xe3   : > { %s476_s17 = sshll.u32 %s3727_s28, 4  ;;  %s508_s16 = sshll.u32 %s3728_s22, 4  ;;  %s477_s17 = int_to_ptr.vmem [resolvable:$true] %s476_s17  ;;  %s4063_s16 = int_to_ptr.vmem [resolvable:$true] %s508_s16 }
  0xe4   : > { %s4674_s2 = sld [smem:[#allocation51_spill]] }
  0xea   : > { %s3371_s0 = scalar_lea.hbm %s4674_s2, 16 }
  0xeb   : > { %p3372_p13 = scmp.ne.s32.totalorder %s4674_s2, %s3371_s0  ;;  %p3378_p3 = scmp.lt.u32.totalorder %s3371_s0, %s4674_s2 }
  0xed   : > { %p3374_p0 = pnand %p3372_p13, %p3899_p8 }
  0xef   : > { %p3375_p1 = pneg %p3374_p0 }
  0xf1   : > { %p3380_p2 = pnand %p3378_p3, %p3375_p1 }
  0xf3   : > { %3383 = shalt.err (!%p3380_p2)
}
  0xf4   : > { %s3384_s27 = scalar_lea.vmem %s477_s17, 16  ;;  %s3391_s28 = scalar_lea.vmem %s477_s17, 32 }
  0xf5   : > { %p3385_p5 = scmp.ne.s32.totalorder %s477_s17, %s3384_s27  ;;  %p3392_p10 = scmp.lt.s32.totalorder %s477_s17, %s477_s17 }
  0xf6   : > { %p3393_p11 = scmp.lt.s32.totalorder %s3391_s28, %s3384_s27 }
  0xf7   : > { %p3387_p7 = pnand %p3385_p5, %p3899_p8 }
  0xf8   : > { %p3394_p12 = por %p3393_p11, %p3392_p10 }
  0xf9   : > { %p3388_p9 = pneg %p3387_p7 }
  0xfb   : > { %p3395_p4 = pnand %p3394_p12, %p3388_p9 }
  0xfd   : > { %3398 = shalt.err (!%p3395_p4)
}
  0xfe   : > { %2906 = dma.hbm_to_vmem [thread:$0]  (!%p3883_p6), %s4674_s2, 16, %s477_s17, [#allocation9]  }
  0xff   : > { %s4675_s6 = sld [smem:[#allocation55_spill]] }
 0x105   : > { %s3399_s0 = scalar_lea.hbm %s4675_s6, 256 }
 0x106   : > { %p3400_p13 = scmp.ne.s32.totalorder %s4675_s6, %s3399_s0  ;;  %p3406_p3 = scmp.lt.u32.totalorder %s3399_s0, %s4675_s6 }
 0x108   : > { %p3402_p0 = pnand %p3400_p13, %p3899_p8 }
 0x10a   : > { %p3403_p1 = pneg %p3402_p0 }
 0x10c   : > { %p3408_p2 = pnand %p3406_p3, %p3403_p1 }
 0x10e   : > { %3411 = shalt.err (!%p3408_p2)
}
 0x10f   : > { %s3412_s17 = scalar_lea.vmem %s4063_s16, 256  ;;  %p3420_p10 = scmp.lt.s32.totalorder %s4063_s16, %s4063_s16 }
 0x110   : > { %p3413_p5 = scmp.ne.s32.totalorder %s4063_s16, %s3412_s17  ;;  %p3421_p11 = scmp.lt.s32.totalorder %s3412_s17, %s3412_s17 }
 0x112   : > { %p3415_p7 = pnand %p3413_p5, %p3899_p8  ;;  %p3422_p12 = por %p3421_p11, %p3420_p10 }
 0x114   : > { %p3416_p9 = pneg %p3415_p7 }
 0x116   : > { %p3423_p4 = pnand %p3422_p12, %p3416_p9 }
 0x118   : > { %3426 = shalt.err (!%p3423_p4)
}
 0x119   : > { %2915 = dma.hbm_to_vmem [thread:$0]  (!%p3883_p6), %s4675_s6, 256, %s4063_s16, [#allocation15], %s4649_s1, %s4649_s1, %s4650_s3  }
 0x11a   : > { %s3729_s22 = smov [#allocation19]   ;;  %s3730_s30 = smov [#allocation22]  }
 0x11b   : > { %s532_s23 = sshll.u32 %s3729_s22, 4  ;;  %s557_s0 = sshll.u32 %s3730_s30, 4  ;;  %s533_s23 = int_to_ptr.vmem [resolvable:$true] %s532_s23  ;;  %s4109_s0 = int_to_ptr.vmem [resolvable:$true] %s557_s0 }
 0x11c   : > { %s3427_s24 = scalar_lea.hbm %s4628_s8, 256 }
 0x11d   : > { %p3428_p13 = scmp.ne.s32.totalorder %s4628_s8, %s3427_s24  ;;  %p3434_p3 = scmp.lt.u32.totalorder %s3427_s24, %s4628_s8 }
 0x11f   : > { %p3430_p0 = pnand %p3428_p13, %p3899_p8 }
 0x121   : > { %p3431_p1 = pneg %p3430_p0 }
 0x123   : > { %p3436_p2 = pnand %p3434_p3, %p3431_p1 }
 0x125   : > { %3439 = shalt.err (!%p3436_p2)
}
 0x126   : > { %s3440_s4 = scalar_lea.vmem %s533_s23, 256  ;;  %p3448_p10 = scmp.lt.s32.totalorder %s533_s23, %s533_s23 }
 0x127   : > { %p3441_p5 = scmp.ne.s32.totalorder %s533_s23, %s3440_s4  ;;  %p3449_p11 = scmp.lt.s32.totalorder %s3440_s4, %s3440_s4 }
 0x129   : > { %p3443_p7 = pnand %p3441_p5, %p3899_p8  ;;  %p3450_p12 = por %p3449_p11, %p3448_p10 }
 0x12b   : > { %p3444_p9 = pneg %p3443_p7 }
 0x12d   : > { %p3451_p4 = pnand %p3450_p12, %p3444_p9 }
 0x12f   : > { %3454 = shalt.err (!%p3451_p4)
}
 0x130   : > { %2921 = dma.hbm_to_vmem [thread:$0]  (!%p3883_p6), %s4628_s8, 256, %s533_s23, [#allocation18], %s4649_s1, %s4649_s1, %s4650_s3  }
 0x131   : > { %s3455_s24 = scalar_lea.hbm %s4630_s10, 16 }
 0x132   : > { %p3456_p13 = scmp.ne.s32.totalorder %s4630_s10, %s3455_s24  ;;  %p3462_p3 = scmp.lt.u32.totalorder %s3455_s24, %s4630_s10 }
 0x134   : > { %p3458_p0 = pnand %p3456_p13, %p3899_p8 }
 0x136   : > { %p3459_p1 = pneg %p3458_p0 }
 0x138   : > { %p3464_p2 = pnand %p3462_p3, %p3459_p1 }
 0x13a   : > { %3467 = shalt.err (!%p3464_p2)
}
 0x13b   : > { %s3468_s23 = scalar_lea.vmem %s4109_s0, 16  ;;  %s3475_s4 = scalar_lea.vmem %s4109_s0, 32 }
 0x13c   : > { %p3469_p5 = scmp.ne.s32.totalorder %s4109_s0, %s3468_s23  ;;  %p3476_p10 = scmp.lt.s32.totalorder %s4109_s0, %s4109_s0 }
 0x13d   : > { %p3477_p11 = scmp.lt.s32.totalorder %s3475_s4, %s3468_s23 }
 0x13e   : > { %p3471_p7 = pnand %p3469_p5, %p3899_p8 }
 0x13f   : > { %p3478_p12 = por %p3477_p11, %p3476_p10 }
 0x140   : > { %p3472_p9 = pneg %p3471_p7 }
 0x142   : > { %p3479_p4 = pnand %p3478_p12, %p3472_p9 }
 0x144   : > { %3482 = shalt.err (!%p3479_p4)
}
 0x145   : > { %2927 = dma.hbm_to_vmem [thread:$0]  (!%p3883_p6), %s4630_s10, 16, %s4109_s0, [#allocation21]  }
 0x146   : > { %s3731_s21 = smov [#allocation25]   ;;  %s3732_s24 = smov [#allocation28]  }
 0x147   : > { %s580_s29 = sshll.u32 %s3731_s21, 4  ;;  %s609_s27 = sshll.u32 %s3732_s24, 4  ;;  %s581_s29 = int_to_ptr.vmem [resolvable:$true] %s580_s29  ;;  %s4156_s27 = int_to_ptr.vmem [resolvable:$true] %s609_s27 }
 0x148   : > { %s3483_s16 = scalar_lea.hbm %s4632_s12, 256 }
 0x149   : > { %p3484_p13 = scmp.ne.s32.totalorder %s4632_s12, %s3483_s16  ;;  %p3490_p3 = scmp.lt.u32.totalorder %s3483_s16, %s4632_s12 }
 0x14b   : > { %p3486_p0 = pnand %p3484_p13, %p3899_p8 }
 0x14d   : > { %p3487_p1 = pneg %p3486_p0 }
 0x14f   : > { %p3492_p2 = pnand %p3490_p3, %p3487_p1 }
 0x151   : > { %3495 = shalt.err (!%p3492_p2)
}
 0x152   : > { %s3496_s30 = scalar_lea.vmem %s581_s29, 256  ;;  %p3504_p10 = scmp.lt.s32.totalorder %s581_s29, %s581_s29 }
 0x153   : > { %p3497_p5 = scmp.ne.s32.totalorder %s581_s29, %s3496_s30  ;;  %p3505_p11 = scmp.lt.s32.totalorder %s3496_s30, %s3496_s30 }
 0x155   : > { %p3499_p7 = pnand %p3497_p5, %p3899_p8  ;;  %p3506_p12 = por %p3505_p11, %p3504_p10 }
 0x157   : > { %p3500_p9 = pneg %p3499_p7 }
 0x159   : > { %p3507_p4 = pnand %p3506_p12, %p3500_p9 }
 0x15b   : > { %3510 = shalt.err (!%p3507_p4)
}
 0x15c   : > { %2933 = dma.hbm_to_vmem [thread:$0]  (!%p3883_p6), %s4632_s12, 256, %s581_s29, [#allocation24], %s4649_s1, %s4649_s1, %s4650_s3  }
 0x15d   : > { %s3511_s16 = scalar_lea.hbm %s4634_s14, 1024 }
 0x15e   : > { %p3512_p13 = scmp.ne.s32.totalorder %s4634_s14, %s3511_s16  ;;  %p3518_p3 = scmp.lt.u32.totalorder %s3511_s16, %s4634_s14 }
 0x160   : > { %p3514_p0 = pnand %p3512_p13, %p3899_p8 }
 0x162   : > { %p3515_p1 = pneg %p3514_p0 }
 0x164   : > { %p3520_p2 = pnand %p3518_p3, %p3515_p1 }
 0x166   : > { %3523 = shalt.err (!%p3520_p2)
}
 0x167   : > { %s3524_s29 = scalar_lea.vmem %s4156_s27, 1024  ;;  %p3532_p10 = scmp.lt.s32.totalorder %s4156_s27, %s4156_s27 }
 0x168   : > { %p3525_p5 = scmp.ne.s32.totalorder %s4156_s27, %s3524_s29  ;;  %p3533_p11 = scmp.lt.s32.totalorder %s3524_s29, %s3524_s29 }
 0x16a   : > { %p3527_p7 = pnand %p3525_p5, %p3899_p8  ;;  %p3534_p12 = por %p3533_p11, %p3532_p10 }
 0x16c   : > { %p3528_p9 = pneg %p3527_p7 }
 0x16e   : > { %p3535_p4 = pnand %p3534_p12, %p3528_p9 }
 0x170   : > { %3538 = shalt.err (!%p3535_p4)
}
 0x171   : > { %2939 = dma.hbm_to_vmem [thread:$0]  (!%p3883_p6), %s4634_s14, 1024, %s4156_s27, [#allocation27], %s4649_s1, %s4649_s1, %s4650_s3  }
 0x172   : > { %s3733_s24 = smov [#allocation29]   ;;  %s3539_s23 = scalar_lea.hbm %s4635_s15, 16 }
 0x173   : > { %s623_s17 = sshll.u32 %s3733_s24, 4  ;;  %p3540_p13 = scmp.ne.s32.totalorder %s4635_s15, %s3539_s23  ;;  %s624_s17 = int_to_ptr.vmem [resolvable:$true] %s623_s17 }
 0x174   : > { %p3546_p3 = scmp.lt.u32.totalorder %s3539_s23, %s4635_s15 }
 0x175   : > { %p3542_p0 = pnand %p3540_p13, %p3899_p8 }
 0x177   : > { %p3543_p1 = pneg %p3542_p0 }
 0x179   : > { %p3548_p2 = pnand %p3546_p3, %p3543_p1 }
 0x17b   : > { %3551 = shalt.err (!%p3548_p2)
}
 0x17c   : > { %s3552_s27 = scalar_lea.vmem %s624_s17, 16  ;;  %s3559_s30 = scalar_lea.vmem %s624_s17, 32 }
 0x17d   : > { %p3553_p5 = scmp.ne.s32.totalorder %s624_s17, %s3552_s27  ;;  %p3560_p10 = scmp.lt.s32.totalorder %s624_s17, %s624_s17 }
 0x17e   : > { %p3561_p11 = scmp.lt.s32.totalorder %s3559_s30, %s3552_s27 }
 0x17f   : > { %p3555_p7 = pnand %p3553_p5, %p3899_p8 }
 0x180   : > { %p3562_p12 = por %p3561_p11, %p3560_p10 }
 0x181   : > { %p3556_p9 = pneg %p3555_p7 }
 0x183   : > { %p3563_p4 = pnand %p3562_p12, %p3556_p9 }
 0x185   : > { %3566 = shalt.err (!%p3563_p4)
}
 0x186   : > { %s4676_s28 = sld [smem:[#allocation45_spill]]  ;;  %s4677_s16 = sld [smem:[#allocation44_spill]] }
 0x187   : > { %s4678_s18 = sld [smem:[#allocation43_spill]]  ;;  %s4679_s23 = sld [smem:[#allocation47_spill]] }
 0x188   : > { %2942 = dma.hbm_to_vmem [thread:$0]  (!%p3883_p6), %s4635_s15, 16, %s624_s17, [#allocation30]  }
 0x189   : > { %s2527_s4 = sadd.s32 4294967294, %s3715_s26   ;;  %s52_s22 = sadd.s32 1, %s3711_s25 }
 0x18a   : > { %p54_p8 = scmp.ge.s32.totalorder %s52_s22, 2  ;;  %p130_p0 = scmp.eq.s32.totalorder %s3715_s26, 0 }
 0x18b   : > { %p432_p9 = scmp.eq.s32.totalorder %s2527_s4, 1  ;;  %p2966_p11 = scmp.lt.s32.totalorder %s3715_s26, 2 }
 0x18c   : > { %s122_s20 = sadd.s32 1, %s4676_s28  ;;  %p129_p13 = scmp.ne.s32.totalorder %s4676_s28, %s4677_s16 }
 0x18d   : > { %p135_p1 = scmp.ne.s32.totalorder %s4677_s16, %s4678_s18  ;;  %s4725_s22 = smov (%p54_p8, %s52_s22), 0 }
 0x18e   : > { %p4233_p3 = por %p130_p0, %p129_p13  ;;  %p4681_p6 = scmp.eq.s32.totalorder %s4679_s23, 0 }
 0x18f   : > { %s119_s29 = ssub.s32 %s3711_s25, %s4725_s22  ;;  %p426_p5 = scmp.eq.s32.totalorder %s4679_s23, 1 }
 0x190   : > { %p4239_p2 = por %p4681_p6, %p135_p1  ;;  %p120_p7 = scmp.eq.s32.totalorder %s119_s29, 0 }
 0x191   : > { %p4246_p10 = por %p426_p5, %p129_p13  ;;  %p4254_p12 = por %p432_p9, %p135_p1 }
 0x192   : > { %s4252_s30 = scalar_select %p120_p7, %s4676_s28, %s122_s20  }
 0x193   : > { %s4683_s27 = scalar_select %p4246_p10, 1, 0 }
 0x194   : > { %s4684_s21 = scalar_select %p4254_p12, 1, 0 }
 0x195   : > { %s634_s24 = sand.u32 1, %s3715_s26   ;;  %s636_s16 = sand.u32 1, %s4676_s28  }
 0x196   : > { %s2829_s18 = smul.u32 12, %s636_s16  ;;  %p4262_p4 = pnand %p2966_p11, %p4233_p3 }
 0x197   : > { %s2830_s23 = smul.u32 192, %s3711_s25  ;;  %s4686_s3 = sld [smem:[#allocation52_spill]] }
 0x198   : > { %s638_s2 = scalar_lea.vmem [#allocation11], %s2829_s18  ;;  %s4274_s0 = scalar_lea.sflag [#allocation12], %s634_s24 }
 0x199   : > { %s645_s28 = sshll.u32 %s638_s2, 4  ;;  %p3569_p13 = pneg %p4262_p4  ;;  %s4272_s28 = int_to_ptr.vmem [resolvable:$true] %s645_s28 }
 0x19d   : > { %s4270_s20 = scalar_lea.hbm %s4686_s3, %s2830_s23  ;;  %s3572_s29 = scalar_lea.hbm %s4686_s3, 384 }
 0x19e   : > { %s3567_s16 = scalar_lea.hbm %s4270_s20, 192  ;;  %p3573_p3 = scmp.lt.u32.totalorder %s4270_s20, %s4686_s3 }
 0x19f   : > { %p3568_p8 = scmp.ne.s32.totalorder %s4270_s20, %s3567_s16  ;;  %p3574_p6 = scmp.lt.u32.totalorder %s3572_s29, %s3567_s16 }
 0x1a0   : > { %p3576_p7 = scmp.lt.u32.totalorder %s3567_s16, %s4270_s20 }
 0x1a1   : > { %p3570_p0 = pnand %p3569_p13, %p3568_p8  ;;  %p3575_p5 = por %p3574_p6, %p3573_p3 }
 0x1a3   : > { %p3571_p1 = pneg %p3570_p0  ;;  %p3577_p9 = por %p3576_p7, %p3575_p5 }
 0x1a5   : > { %p3578_p11 = pnand %p3577_p9, %p3571_p1 }
 0x1a7   : > { %3581 = shalt.err (!%p3578_p11)
}
 0x1a8   : > { %s3582_s2 = scalar_lea.vmem %s4272_s28, 192  ;;  %s3734_s24 = smov [#allocation11]  }
 0x1a9   : > { %p3583_p8 = scmp.ne.s32.totalorder %s4272_s28, %s3582_s2  ;;  %s3587_s18 = sshll.u32 %s3734_s24, 4  ;;  %s3588_s18 = int_to_ptr.vmem [resolvable:$false] %s3587_s18 }
 0x1aa   : > { %s3589_s5 = scalar_lea.vmem %s3588_s18, 384  ;;  %p3590_p10 = scmp.lt.s32.totalorder %s4272_s28, %s3588_s18 }
 0x1ab   : > { %p3585_p0 = pnand %p3583_p8, %p3569_p13  ;;  %p3591_p3 = scmp.lt.s32.totalorder %s3589_s5, %s3582_s2 }
 0x1ad   : > { %p3586_p12 = pneg %p3585_p0  ;;  %p3592_p6 = por %p3591_p3, %p3590_p10 }
 0x1af   : > { %p3593_p5 = pnand %p3592_p6, %p3586_p12 }
 0x1b1   : > { %3596 = shalt.err (!%p3593_p5)
}
 0x1b2   : > { %s4687_s6 = smov 4   ;;  %s4688_s16 = smov 64  }
 0x1b3   : > { %2946 = dma.hbm_to_vmem [thread:$0]  (!%p4262_p4), %s4270_s20, 192, %s4272_s28, %s4274_s0, %s4688_s16, %s4688_s16, %s4687_s6  }
 0x1b4   : > { %s4689_s23 = sld [smem:[#allocation48_spill]] }
 0x1ba   : > { %p4690_p13 = scmp.ne.s32.totalorder %s4689_s23, 0 }
 0x1bb   : > { %s4691_s4 = sld [smem:[#allocation47_spill]] (!%p4690_p13) }
 0x1bc   : > { %657 = sbr.rel (%p4690_p13) target bundleno = 4278 (0x10b6), region = 84 }
 0x1c1   : > { %p4692_p1 = scmp.eq.s32.totalorder (!%p4690_p13), %s4691_s4, 0 }
 0x1c3   : > { %3650 = dma.done.wait (%p4692_p1), [#allocation6], 192   ;;  %p4693_p7 = pmov %p4692_p1 }
 0x1c4   : > { %p4694_p10 = pmov %p4692_p1 }
 0x1c5   : > { %3652 = vsyncadd (%p4693_p7), [#allocation6], 4294967104 }
 0x1c6   : > { %3654 = dma.done.wait (%p4694_p10), [#allocation9], 32   ;;  %p4695_p12 = pmov %p4692_p1 }
 0x1c7   : > { %s4696_s1 = sld [smem:[#allocation44_spill]]  ;;  %s671_s20 = sand.u32 1, %s4691_s4  }
 0x1c8   : > { %3656 = vsyncadd (%p4695_p12), [#allocation9], 4294967264  ;;  %s672_s29 = scalar_lea.sflag [#allocation12], %s671_s20 }
 0x1cd   : > { %s673_s28 = sand.u32 1, %s4696_s1  }
 0x1ce   : > { %s4319_s0 = smul.u32 12, %s673_s28 }
 0x1d0   : > { %s675_s2 = scalar_lea.vmem [#allocation11], %s4319_s0 }
 0x1d1   : > { %3658 = dma.done.wait (%p4239_p2), %s672_s29, 192  }
 0x1d2   : > { %3660 = vsyncadd (%p4239_p2), %s672_s29, 4294967104  ;;  %p4697_p4 = pmov %p4692_p1 }
 0x1d3   : > { %p4698_p9 = pmov %p4692_p1 }
 0x1d4   : > { %3662 = dma.done.wait (%p4697_p4), [#allocation12], 16  }
 0x1d5   : > { %3664 = vsyncadd (%p4698_p9), [#allocation12], 4294967280  ;;  %p4699_p11 = pmov %p4692_p1 }
 0x1d6   : > { %p4700_p8 = pmov %p4692_p1 }
 0x1d7   : > { %3666 = dma.done.wait (%p4699_p11), [#allocation15], 272  }
 0x1d8   : > { %3668 = vsyncadd (%p4700_p8), [#allocation15], 4294967024  ;;  %p4701_p0 = pmov %p4692_p1 }
 0x1da   : > { %3670 = dma.done.wait (%p4701_p0), [#allocation18], 272   ;;  %p4702_p3 = pmov %p4701_p0 }
 0x1db   : > { %p4703_p2 = pmov %p4701_p0 }
 0x1dc   : > { %3672 = vsyncadd (%p4702_p3), [#allocation18], 4294967024 }
 0x1dd   : > { %3674 = dma.done.wait (%p4703_p2), [#allocation21], 32   ;;  %p4704_p6 = pmov %p4701_p0 }
 0x1de   : > { %p4705_p5 = pmov %p4701_p0 }
 0x1df   : > { %3676 = vsyncadd (%p4704_p6), [#allocation21], 4294967264 }
 0x1e0   : > { %3678 = dma.done.wait (%p4705_p5), [#allocation24], 272   ;;  %p4706_p13 = pmov %p4701_p0 }
 0x1e1   : > { %p4707_p1 = pmov %p4701_p0 }
 0x1e2   : > { %3680 = vsyncadd (%p4706_p13), [#allocation24], 4294967024 }
 0x1e3   : > { %3682 = dma.done.wait (%p4707_p1), [#allocation27], 1040   ;;  %p4708_p7 = pmov %p4701_p0 }
 0x1e4   : > { %p4709_p10 = pmov %p4701_p0 }
 0x1e5   : > { %3684 = vsyncadd (%p4708_p7), [#allocation27], 4294966256 }
 0x1e6   : > { %3686 = dma.done.wait (%p4709_p10), [#allocation30], 16   ;;  %p4710_p12 = pmov %p4701_p0 }
 0x1e7   : > { %v2620_v0 = vld [vmem:[%s675_s2] sm:$0xff]   ;;  %vm793_vm0 = vcmask 261120   ;;  %v780_v2 = vld [vmem:[%s675_s2 + $0x8] sm:$0xf]  ;;  %v786_v6 = vld [vmem:[#allocation5 + $0x8] sm:$0xf]  ;;  %v836_v33 = vlaneseq }
 0x1e8   : > { %3688 = vsyncadd (%p4710_p12), [#allocation30], 4294967280  ;;  %v2624_v1 = vld [vmem:[#allocation5] sm:$0xff]   ;;  %v2621_v3 = vunpack.c.l.bf16 %v2620_v0  ;;  %v783_v5 = vunpack.c.l.bf16 %v780_v2  ;;  %v2622_v7 = vunpack.c.h.bf16 %v2620_v0  ;;  %v789_v8 = vunpack.c.l.bf16 %v786_v6  ;;  %v834_v42 = vld [vmem:[#allocation8] sm:$0x1]  ;;  %s3735_s17 = smov 96  }
 0x1e9   : > { %v2625_v4 = vunpack.c.l.bf16 %v2624_v1  ;;  %v2626_v9 = vunpack.c.h.bf16 %v2624_v1  ;;  %v837_v39 = vshrl.u32 %v836_v33, 7  ;;  %v843_v43 = vld [vmem:[#allocation10] sm:$0x1]  ;;  %v835_v44 = vunpack.c.l.bf16 %v834_v42  ;;  %s3736_s24 = smov 88   ;;  %s3737_s18 = smov 120  }
 0x1ea   : > { %v792_v11 = vadd.f32 %v789_v8, %v783_v5  ;;  %v844_v46 = vunpack.c.l.bf16 %v843_v43  ;;  %vm999_vm1 = vcmask 64512   ;;  %vm1066_vm3 = vcmask 195584   ;;  %s3739_s5 = smov 56   ;;  %s3740_s6 = smov 80  }
 0x1eb   : > { %v790_v10 = vadd.f32 %v2625_v4, %v2621_v3  ;;  %v791_v12 = vadd.f32 %v2626_v9, %v2622_v7  ;;  %v4361_v45 = vsub.s32 0, %v837_v39  ;;  %s3741_s16 = smov 112   ;;  %vm1113_vm4 = vcmask 1043456   ;;  %s3742_s23 = smov 64  }
 0x1ec   : > { %v800_v14 = vsel %vm793_vm0, %v792_v11, 0.0  ;;  %s3743_s4 = smov 72   ;;  %s3744_s20 = smov 104   ;;  %vm2009_vm5 = vcmask 257024  }
 0x1ed   : > { %v794_v13 = vsel %vm793_vm0, %v790_v10, 0.0  ;;  %v797_v15 = vsel %vm793_vm0, %v791_v12, 0.0  ;;  %801 = vadd.xlane.f32.xlu1 %v800_v14  ;;  %v839_v47 = vrot.slane %v835_v44, %v4361_v45  ;;  %v848_v50 = vrot.slane %v844_v46, %v4361_v45  ;;  %s3745_s29 = smov 48   ;;  %s3746_s2 = smov 40  }
 0x1ee   : > { %795 = vadd.xlane.f32.xlu0 %v794_v13  ;;  %p4713_p9 = scmp.ne.s32.totalorder %s4683_s27, 0 }
 0x1f2   : > { %798 = vadd.xlane.f32.xlu0 %v797_v15  ;;  %v3061_v15 = vld [vmem:[#allocation16] sm:$0xff]  }
 0x1f3   : > { %2689 = vmatprep.subr.bf16.mxu0 %v3061_v15 }
 0x1f4   : > { %2690 = vmatpush3.bf16.msra.mxu0 %v3061_v15 }
 0x27a   : > { %v802_v18 = vpop.xlane.xlu1 %801 }
 0x27b   : > { %v796_v16 = vpop.xlane.xlu0 %795  ;;  %v806_v19 = vmul.f32 0.03125, %v802_v18 }
 0x27c   : > { %v804_v17 = vmul.f32 0.03125, %v796_v16  ;;  %v3062_v16 = vld [vmem:[#allocation16 + $0x8] sm:$0xff]  }
 0x27d   : > { %v809_v21 = vsub.f32 %v792_v11, %v806_v19  ;;  %2691 = vmatprep.subr.bf16.mxu0 %v3062_v16 }
 0x27e   : > { %v807_v20 = vsub.f32 %v790_v10, %v804_v17  ;;  %2692 = vmatpush3.bf16.msra.mxu0 %v3062_v16 }
 0x27f   : > { %v799_v22 = vpop.xlane.xlu0 %798  ;;  %v812_v25 = vmul.f32 %v809_v21, %v809_v21 }
 0x280   : > { %v805_v23 = vmul.f32 0.03125, %v799_v22  ;;  %v810_v24 = vmul.f32 %v807_v20, %v807_v20 }
 0x281   : > { %v819_v28 = vsel %vm793_vm0, %v812_v25, 0.0 }
 0x282   : > { %v808_v26 = vsub.f32 %v791_v12, %v805_v23  ;;  %v813_v27 = vsel %vm793_vm0, %v810_v24, 0.0 }
 0x283   : > { %814 = vadd.xlane.f32.xlu1 %v813_v27 }
 0x284   : > { %v811_v29 = vmul.f32 %v808_v26, %v808_v26 }
 0x286   : > { %v816_v30 = vsel %vm793_vm0, %v811_v29, 0.0 }
 0x287   : > { %820 = vadd.xlane.f32.xlu1 %v819_v28  ;;  %817 = vadd.xlane.f32.xlu0 %v816_v30  ;;  %v900_v28 = vld [vmem:[#allocation14] sm:$0x1] }
 0x310   : > { %v815_v31 = vpop.xlane.xlu1 %814 }
 0x311   : > { %v822_v32 = vmul.f32 0.03125, %v815_v31 }
 0x313   : > { %v825_v34 = vadd.f32 1e-05, %v822_v32  ;;  %v901_v32 = vunpack.c.l.bf16 %v900_v28 }
 0x314   : > { %v821_v35 = vpop.xlane.xlu1 %820  ;;  %v818_v36 = vpop.xlane.xlu0 %817 }
 0x315   : > { %3075 = vrsqrt.f32 %v825_v34  ;;  %v824_v37 = vmul.f32 0.03125, %v821_v35  ;;  %v823_v38 = vmul.f32 0.03125, %v818_v36  ;;  %v905_v39 = vrot.slane %v901_v32, %v4361_v45 }
 0x317   : > { %v827_v40 = vadd.f32 1e-05, %v824_v37  ;;  %v826_v41 = vadd.f32 1e-05, %v823_v38 }
 0x319   : > { %3077 = vrsqrt.f32 %v827_v40 }
 0x31a   : > { %3079 = vrsqrt.f32 %v826_v41 }
 0x31f   : > { %v3076_v48 = vpop.eup %3075 }
 0x320   : > { %v831_v49 = vmul.f32 %v3076_v48, %v807_v20  ;;  %v915_v48 = vld [vmem:[#allocation17] sm:$0x1] }
 0x322   : > { %v840_v51 = vmul.f32 %v839_v47, %v831_v49  ;;  %v916_v49 = vunpack.c.l.bf16 %v915_v48 }
 0x323   : > { %v3078_v52 = vpop.eup %3077 }
 0x324   : > { %v3080_v53 = vpop.eup %3079  ;;  %v4365_v54 = vadd.f32 %v848_v50, %v840_v51  ;;  %v833_v55 = vmul.f32 %v3078_v52, %v809_v21 }
 0x325   : > { %v832_v56 = vmul.f32 %v3080_v53, %v808_v26  ;;  %v891_v26 = vld [vmem:[#allocation13] sm:$0x1] }
 0x326   : > { %v852_v57 = vsel %vm793_vm0, %v4365_v54, 0.0  ;;  %v842_v58 = vmul.f32 %v839_v47, %v833_v55  ;;  %v892_v27 = vunpack.c.l.bf16 %v891_v26 }
 0x327   : > { %853 = vadd.xlane.f32.xlu0 %v852_v57  ;;  %v841_v59 = vmul.f32 %v839_v47, %v832_v56 }
 0x328   : > { %v4369_v60 = vadd.f32 %v848_v50, %v842_v58  ;;  %v896_v31 = vrot.slane %v892_v27, %v4361_v45 }
 0x329   : > { %v4371_v61 = vadd.f32 %v848_v50, %v841_v59  ;;  %v920_v50 = vrot.slane %v916_v49, %v4361_v45 }
 0x32a   : > { %v858_v62 = vsel %vm793_vm0, %v4369_v60, 0.0 }
 0x32b   : > { %859 = vadd.xlane.f32.xlu0 %v858_v62  ;;  %v855_v63 = vsel %vm793_vm0, %v4371_v61, 0.0 }
 0x32c   : > { %856 = vadd.xlane.f32.xlu1 %v855_v63 }
 0x3b4   : > { %v854_v0 = vpop.xlane.xlu0 %853 }
 0x3b5   : > { %v861_v1 = vmul.f32 0.03125, %v854_v0 }
 0x3b7   : > { %v864_v2 = vsub.f32 %v4365_v54, %v861_v1 }
 0x3b8   : > { %v860_v3 = vpop.xlane.xlu0 %859 }
 0x3b9   : > { %v857_v4 = vpop.xlane.xlu1 %856  ;;  %v863_v5 = vmul.f32 0.03125, %v860_v3  ;;  %v867_v6 = vmul.f32 %v864_v2, %v864_v2 }
 0x3ba   : > { %v862_v7 = vmul.f32 0.03125, %v857_v4 }
 0x3bb   : > { %v866_v8 = vsub.f32 %v4369_v60, %v863_v5  ;;  %v870_v9 = vsel %vm793_vm0, %v867_v6, 0.0 }
 0x3bc   : > { %v865_v10 = vsub.f32 %v4371_v61, %v862_v7  ;;  %871 = vadd.xlane.f32.xlu1 %v870_v9  ;;  %v3738_v9 = vmov 0.0  }
 0x3bd   : > { %v869_v11 = vmul.f32 %v866_v8, %v866_v8  ;;  %2013 = vst.msk [vmem:[#allocation4] sm:$0xff] %vm793_vm0, %v3738_v9  ;;  %2014 = vst.msk [vmem:[#allocation4 + $0x8] sm:$0xff] %vm793_vm0, %v3738_v9 }
 0x3be   : > { %v868_v12 = vmul.f32 %v865_v10, %v865_v10  ;;  %2015 = vst.msk [vmem:[#allocation4 + $0x10] sm:$0xff] %vm793_vm0, %v3738_v9 }
 0x3bf   : > { %v876_v13 = vsel %vm793_vm0, %v869_v11, 0.0 }
 0x3c0   : > { %v873_v14 = vsel %vm793_vm0, %v868_v12, 0.0  ;;  %877 = vadd.xlane.f32.xlu1 %v876_v13 }
 0x3c1   : > { %874 = vadd.xlane.f32.xlu0 %v873_v14  ;;  %v990_v14 = vand.u32 127, %v836_v33 }
 0x3c3   : > { %vm991_vm2 = vcmp.ge.s32.totalorder %v990_v14, 17 }
 0x449   : > { %v872_v17 = vpop.xlane.xlu1 %871 }
 0x44a   : > { %v879_v18 = vmul.f32 0.03125, %v872_v17 }
 0x44c   : > { %v882_v19 = vadd.f32 1e-05, %v879_v18 }
 0x44d   : > { %v878_v20 = vpop.xlane.xlu1 %877 }
 0x44e   : > { %3081 = vrsqrt.f32 %v882_v19  ;;  %v881_v21 = vmul.f32 0.03125, %v878_v20  ;;  %v875_v22 = vpop.xlane.xlu0 %874 }
 0x44f   : > { %v880_v23 = vmul.f32 0.03125, %v875_v22 }
 0x450   : > { %v884_v24 = vadd.f32 1e-05, %v881_v21  ;;  %v4416_v21 = vsel %vm991_vm2, -1e+30, %v3738_v9 }
 0x451   : > { %v883_v25 = vadd.f32 1e-05, %v880_v23 }
 0x452   : > { %3083 = vrsqrt.f32 %v884_v24 }
 0x453   : > { %3085 = vrsqrt.f32 %v883_v25 }
 0x458   : > { %v3082_v29 = vpop.eup %3081 }
 0x459   : > { %v888_v30 = vmul.f32 %v3082_v29, %v864_v2 }
 0x45b   : > { %v897_v38 = vmul.f32 %v896_v31, %v888_v30 }
 0x45c   : > { %v3084_v34 = vpop.eup %3083 }
 0x45d   : > { %v3086_v35 = vpop.eup %3085  ;;  %v890_v36 = vmul.f32 %v3084_v34, %v866_v8  ;;  %v906_v43 = vadd.f32 %v905_v39, %v897_v38 }
 0x45e   : > { %v889_v37 = vmul.f32 %v3086_v35, %v865_v10 }
 0x45f   : > { %v899_v40 = vmul.f32 %v896_v31, %v890_v36 }
 0x460   : > { %v898_v41 = vmul.f32 %v896_v31, %v889_v37 }
 0x461   : > { %v908_v42 = vadd.f32 %v905_v39, %v899_v40 }
 0x462   : > { %v907_v44 = vadd.f32 %v905_v39, %v898_v41 }
 0x463   : > { %v910_v46 = vpack.c.bf16 %v908_v42, %v908_v42 }
 0x464   : > { %v909_v47 = vpack.c.bf16 %v907_v44, %v906_v43 }
 0x466   : > { %2693 = vmatprep.mubr.msk.bf16.mxu0 %vm793_vm0, %v909_v47 }
 0x467   : > { %2694 = vmatmul.mubr.msk.bf16.vlgmr.msra.gmra.mrb[0].mxu0 %vm793_vm0, %v910_v46 }
 0x53a   : > { %v2695_v51 = vpop.f32.mrb[0].mxu0 }
 0x53b   : > { %v982_v52 = vadd.f32 %v2695_v51, %v920_v50  ;;  %v973_v53 = vpop.f32.mrb[1].mxu0 }
 0x53c   : > { %v2696_v55 = vpop.f32.mrb[2].mxu0  ;;  %v974_v58 = vadd.f32 %v973_v53, %v920_v50 }
 0x53d   : > { %v4388_v56 = vpack.c.bf16 %v982_v52, %v982_v52  ;;  %v976_v57 = vpop.f32.mrb[3].mxu0 }
 0x53e   : > { %v977_v59 = vadd.f32 %v976_v57, %v920_v50 }
 0x53f   : > { %997 = vrot.lane.b32.xlu1 %v4388_v56, %s3735_s17 }
 0x540   : > { %v4391_v62 = vpack.c.bf16 %v977_v59, %v974_v58 }
 0x542   : > { %995 = vrot.lane.b32.xlu0 %v4391_v62, %s3735_s17  ;;  %2701 = vmatprep.mubr.msk.bf16.mxu1 %vm999_vm1, %v4391_v62  ;;  %s4711_s17 = sld [smem:[#allocation46_spill]] }
 0x543   : > { %1172 = vrot.lane.b32.xlu1 %v4391_v62, %s3736_s24 }
 0x546   : > { %1168 = vrot.lane.b32.xlu0 %v4391_v62, %s3737_s18 }
 0x547   : > { %1174 = vrot.lane.b32.xlu1 %v4388_v56, %s3736_s24 }
 0x548   : > { %s2832_s24 = smul.u32 192, %s4711_s17 }
 0x54b   : > { %1170 = vrot.lane.b32.xlu1 %v4388_v56, %s3737_s18  ;;  %s771_s18 = scalar_lea.vmem [#allocation31], %s4319_s0  ;;  %s4571_s0 = scalar_lea.sflag [#allocation7], %s673_s28 }
 0x5b1   : > { %v998_v1 = vpop.permute.xlu1 %997 }
 0x5b2   : > { %v1010_v2 = vsel %vm999_vm1, %v998_v1, 0 }
 0x5b4   : > { %v996_v63 = vpop.permute.xlu0 %995 }
 0x5b5   : > { %2813 = vmatprep.subr.msk.bf16.mxu1 %vm999_vm1, %v996_v63  ;;  %v1007_v0 = vsel %vm999_vm1, %v996_v63, 0  ;;  %v1173_v3 = vpop.permute.xlu1 %1172 }
 0x5b6   : > { %2698 = vmatpush3.bf16.xpose.msra.mxu1 %v1007_v0  ;;  %v1183_v4 = vsel %vm999_vm1, %v1173_v3, 0  ;;  %v1341_v0 = vld [vmem:[#allocation19 + $0x4] sm:$0xf] }
 0x5b7   : > { %2814 = vmatprep.subr.msk.bf16.mxu1 %vm999_vm1, %v998_v1 }
 0x5b8   : > { %v1169_v5 = vpop.permute.xlu0 %1168 }
 0x5b9   : > { %v1175_v6 = vpop.permute.xlu1 %1174 }
 0x5ba   : > { %v1186_v7 = vsel %vm999_vm1, %v1175_v6, 0 }
 0x5bd   : > { %v1171_v8 = vpop.permute.xlu1 %1170 }
 0x5be   : > { %2700 = vmatpush3.bf16.xpose.msra.mxu1 %v1010_v2 }
 0x5bf   : > { %2816 = vmatprep.subr.msk.bf16.mxu1 %vm999_vm1, %v1173_v3 }
 0x5c5   : > { %2702 = vmatmul.mubr.msk.bf16.vlgmr.msra.gmra.mrb[0].mxu1 %vm999_vm1, %v4388_v56 }
 0x5c6   : > { %2714 = vmatpush3.bf16.xpose.msra.mxu1 %v1183_v4  ;;  %2717 = vmatprep.mubr.msk.bf16.mxu1 %vm999_vm1, %v1169_v5 }
 0x5c7   : > { %2817 = vmatprep.subr.msk.bf16.mxu1 %vm999_vm1, %v1175_v6 }
 0x5ce   : > { %2716 = vmatpush3.bf16.xpose.msra.mxu1 %v1186_v7 }
 0x5d5   : > { %2718 = vmatmul.mubr.msk.bf16.vlgmr.msra.gmra.mrb[4].mxu1 %vm999_vm1, %v1171_v8 }
 0x698   : > { %v2703_v10 = vpop.f32.mrb[0].mxu1 }
 0x699   : > { %v1046_v11 = vpop.f32.mrb[1].mxu1  ;;  %v1062_v46 = vmul.f32 0.35355338, %v2703_v10  ;;  %v1349_v10 = vsel %vm1113_vm4, %v1341_v0, 0 }
 0x69a   : > { %v2704_v12 = vpop.f32.mrb[2].mxu1  ;;  %v1060_v44 = vmul.f32 0.35355338, %v1046_v11 }
 0x69b   : > { %v1049_v13 = vpop.f32.mrb[3].mxu1  ;;  %v1065_v50 = vadd.f32 %v1062_v46, %v4416_v21 }
 0x69c   : > { %v1063_v47 = vadd.f32 %v1060_v44, %v4416_v21  ;;  %v1061_v48 = vmul.f32 0.35355338, %v1049_v13 }
 0x69d   : > { %v1073_v51 = vsel %vm1066_vm3, %v1065_v50, -inf }
 0x69e   : > { %v1067_v49 = vsel %vm1066_vm3, %v1063_v47, -inf  ;;  %v1064_v52 = vadd.f32 %v1061_v48, %v4416_v21 }
 0x6a0   : > { %v1070_v53 = vsel %vm1066_vm3, %v1064_v52, -inf }
 0x6a8   : > { %v2719_v15 = vpop.f32.mrb[4].mxu1 }
 0x6a9   : > { %v1222_v16 = vpop.f32.mrb[5].mxu1  ;;  %v1238_v17 = vmul.f32 0.35355338, %v2719_v15 }
 0x6aa   : > { %v1236_v18 = vmul.f32 0.35355338, %v1222_v16  ;;  %v2720_v19 = vpop.f32.mrb[6].mxu1 }
 0x6ab   : > { %v1225_v20 = vpop.f32.mrb[7].mxu1  ;;  %v1241_v26 = vadd.f32 %v1238_v17, %v4416_v21 }
 0x6ac   : > { %v1237_v22 = vmul.f32 0.35355338, %v1225_v20  ;;  %v1239_v23 = vadd.f32 %v1236_v18, %v4416_v21 }
 0x6ad   : > { %v1248_v27 = vsel %vm1066_vm3, %v1241_v26, -inf }
 0x6ae   : > { %v1242_v24 = vsel %vm1066_vm3, %v1239_v23, -inf  ;;  %v1240_v25 = vadd.f32 %v1237_v22, %v4416_v21 }
 0x6af   : > { %1243 = vmax.xlane.f32.xlu0 %v1242_v24 }
 0x6b0   : > { %v1245_v33 = vsel %vm1066_vm3, %v1240_v25, -inf }
 0x6b1   : > { %1246 = vmax.xlane.f32.xlu1 %v1245_v33 }
 0x6b3   : > { %1249 = vmax.xlane.f32.xlu0 %v1248_v27 }
 0x73c   : > { %v1244_v28 = vpop.xlane.xlu0 %1243 }
 0x73d   : > { %v1251_v29 = vsub.f32 %v1239_v23, %v1244_v28 }
 0x73e   : > { %v1247_v30 = vpop.xlane.xlu1 %1246 }
 0x73f   : > { %v1254_v31 = vmul.f32 1.442695, %v1251_v29  ;;  %v1252_v32 = vsub.f32 %v1240_v25, %v1247_v30 }
 0x740   : > { %v1250_v34 = vpop.xlane.xlu0 %1249 }
 0x741   : > { %3087 = vpow2.f32 %v1254_v31  ;;  %v1256_v35 = vmul.f32 1.442695, %v1252_v32  ;;  %v1253_v36 = vsub.f32 %v1241_v26, %v1250_v34 }
 0x743   : > { %3089 = vpow2.f32 %v1256_v35  ;;  %v1258_v37 = vmul.f32 1.442695, %v1253_v36 }
 0x745   : > { %3091 = vpow2.f32 %v1258_v37 }
 0x74b   : > { %v3088_v38 = vpop.eup %3087 }
 0x74c   : > { %v1260_v39 = vsel %vm1066_vm3, %v3088_v38, 0.0 }
 0x74d   : > { %v3090_v40 = vpop.eup %3089  ;;  %1261 = vadd.xlane.f32.xlu0 %v1260_v39 }
 0x74e   : > { %v1263_v43 = vsel %vm1066_vm3, %v3090_v40, 0.0 }
 0x74f   : > { %v3092_v41 = vpop.eup %3091 }
 0x750   : > { %v1266_v42 = vsel %vm1066_vm3, %v3092_v41, 0.0 }
 0x751   : > { %1267 = vadd.xlane.f32.xlu1 %v1266_v42  ;;  %1264 = vadd.xlane.f32.xlu0 %v1263_v43 }
 0x762   : > { %1279 = vrot.lane.b32.xlu1 %v4388_v56, %s3739_s5 }
 0x766   : > { %1460 = vrot.lane.b32.xlu1 %v4391_v62, %s3740_s6 }
 0x767   : > { %1277 = vrot.lane.b32.xlu0 %v4391_v62, %s3739_s5  ;;  %s2294_s5 = sshll.u32 %s771_s18, 4  ;;  %s4566_s5 = int_to_ptr.vmem [resolvable:$true] %s2294_s5 }
 0x76a   : > { %1462 = vrot.lane.b32.xlu1 %v4388_v56, %s3740_s6 }
 0x76b   : > { %1456 = vrot.lane.b32.xlu0 %v4391_v62, %s3741_s16 }
 0x76e   : > { %1458 = vrot.lane.b32.xlu1 %v4388_v56, %s3741_s16 }
 0x78a   : > { %1068 = vmax.xlane.f32.xlu0 %v1067_v49 }
 0x78e   : > { %1074 = vmax.xlane.f32.xlu0 %v1073_v51 }
 0x792   : > { %1071 = vmax.xlane.f32.xlu1 %v1070_v53 }
 0x7da   : > { %v1262_v55 = vpop.xlane.xlu0 %1261 }
 0x7db   : > { %3093 = vrcp.f32 %v1262_v55 }
 0x7de   : > { %v1265_v57 = vpop.xlane.xlu0 %1264  ;;  %v1268_v58 = vpop.xlane.xlu1 %1267 }
 0x7df   : > { %3095 = vrcp.f32 %v1265_v57 }
 0x7e0   : > { %3097 = vrcp.f32 %v1268_v58 }
 0x7e2   : > { %v1278_v59 = vpop.permute.xlu0 %1277  ;;  %v1280_v63 = vpop.permute.xlu1 %1279 }
 0x7e3   : > { %2721 = vmatprep.subr.bf16.mxu1 %v1278_v59  ;;  %v1289_v2 = vsel %vm1113_vm4, %v1280_v63, 0 }
 0x7e4   : > { %2722 = vmatpush3.bf16.msra.mxu1 %v1278_v59 }
 0x7e5   : > { %2818 = vmatprep.subr.msk.bf16.mxu1 %vm1113_vm4, %v1280_v63  ;;  %v3094_v1 = vpop.eup %3093 }
 0x7e6   : > { %v1272_v5 = vmul.f32 %v3094_v1, %v3088_v38  ;;  %v1461_v11 = vpop.permute.xlu1 %1460  ;;  %v1457_v12 = vpop.permute.xlu0 %1456  ;;  %v1167_v1 = vld [vmem:[#allocation19] sm:$0xf] }
 0x7e7   : > { %v1471_v48 = vsel %vm999_vm1, %v1461_v11, 0 }
 0x7e8   : > { %2724 = vmatpush3.bf16.msra.mxu1 %v1289_v2  ;;  %v1406_v2 = vsel %vm1113_vm4, %v1167_v1, 0 }
 0x7e9   : > { %v3096_v3 = vpop.eup %3095  ;;  %2819 = vmatprep.subr.msk.bf16.mxu1 %vm1113_vm4, %v1341_v0 }
 0x7ea   : > { %v3098_v4 = vpop.eup %3097  ;;  %v1273_v6 = vmul.f32 %v3096_v3, %v3090_v40  ;;  %v4446_v13 = vpop.permute.xlu1 %1462 }
 0x7eb   : > { %v1274_v7 = vmul.f32 %v3098_v4, %v3092_v41  ;;  %v1474_v53 = vsel %vm999_vm1, %v4446_v13, 0 }
 0x7ec   : > { %v1275_v8 = vpack.c.bf16 %v1273_v6, %v1272_v5 }
 0x7ed   : > { %v1276_v9 = vpack.c.bf16 %v1274_v7, %v1274_v7 }
 0x7ee   : > { %2725 = vmatprep.mubr.msk.bf16.mxu1 %vm1066_vm3, %v1275_v8  ;;  %v4448_v17 = vpop.permute.xlu1 %1458 }
 0x7ef   : > { %2726 = vmatmul.mubr.msk.bf16.vlgmr.msra.gmra.mrb[8].mxu1 %vm1066_vm3, %v1276_v9 }
 0x7f0   : > { %2730 = vmatpush3.bf16.msra.mxu1 %v1349_v10 }
 0x7f1   : > { %2821 = vmatprep.subr.msk.bf16.mxu1 %vm999_vm1, %v1461_v11 }
 0x817   : > { %v1069_v14 = vpop.xlane.xlu0 %1068 }
 0x818   : > { %v1076_v15 = vsub.f32 %v1063_v47, %v1069_v14 }
 0x81a   : > { %v1079_v16 = vmul.f32 1.442695, %v1076_v15 }
 0x81b   : > { %v1075_v18 = vpop.xlane.xlu0 %1074 }
 0x81c   : > { %3099 = vpow2.f32 %v1079_v16  ;;  %v1078_v19 = vsub.f32 %v1065_v50, %v1075_v18 }
 0x81e   : > { %v1083_v20 = vmul.f32 1.442695, %v1078_v19 }
 0x81f   : > { %v1072_v22 = vpop.xlane.xlu1 %1071 }
 0x820   : > { %3101 = vpow2.f32 %v1083_v20  ;;  %v1077_v23 = vsub.f32 %v1064_v52, %v1072_v22 }
 0x822   : > { %v1081_v24 = vmul.f32 1.442695, %v1077_v23 }
 0x824   : > { %3103 = vpow2.f32 %v1081_v24 }
 0x826   : > { %v3100_v25 = vpop.eup %3099 }
 0x827   : > { %v1085_v26 = vsel %vm1066_vm3, %v3100_v25, 0.0 }
 0x828   : > { %1086 = vadd.xlane.f32.xlu0 %v1085_v26 }
 0x82a   : > { %v3102_v33 = vpop.eup %3101 }
 0x82b   : > { %v1091_v27 = vsel %vm1066_vm3, %v3102_v33, 0.0 }
 0x82c   : > { %1092 = vadd.xlane.f32.xlu1 %v1091_v27 }
 0x82e   : > { %v3104_v28 = vpop.eup %3103 }
 0x82f   : > { %v1088_v29 = vsel %vm1066_vm3, %v3104_v28, 0.0 }
 0x830   : > { %1089 = vadd.xlane.f32.xlu0 %v1088_v29 }
 0x83d   : > { %1104 = vrot.lane.b32.xlu1 %v4388_v56, %s3742_s23 }
 0x841   : > { %1694 = vrot.lane.b32.xlu1 %v4391_v62, %s3743_s4 }
 0x845   : > { %1696 = vrot.lane.b32.xlu1 %v4388_v56, %s3743_s4  ;;  %s4712_s4 = sld [smem:[#allocation56_spill]] }
 0x846   : > { %1102 = vrot.lane.b32.xlu0 %v4391_v62, %s3742_s23 }
 0x849   : > { %1692 = vrot.lane.b32.xlu1 %v4388_v56, %s3744_s20 }
 0x84a   : > { %1690 = vrot.lane.b32.xlu0 %v4391_v62, %s3744_s20 }
 0x84b   : > { %s4563_s20 = scalar_lea.hbm %s4712_s4, %s2832_s24 }
 0x8b5   : > { %v1087_v30 = vpop.xlane.xlu0 %1086 }
 0x8b9   : > { %v1093_v31 = vpop.xlane.xlu1 %1092 }
 0x8ba   : > { %3105 = vrcp.f32 %v1093_v31 }
 0x8bb   : > { %3107 = vrcp.f32 %v1087_v30 }
 0x8bd   : > { %v1090_v32 = vpop.xlane.xlu0 %1089  ;;  %v1105_v36 = vpop.permute.xlu1 %1104 }
 0x8be   : > { %3109 = vrcp.f32 %v1090_v32  ;;  %v1115_v42 = vsel %vm1113_vm4, %v1105_v36, 0 }
 0x8c1   : > { %v1103_v34 = vpop.permute.xlu0 %1102  ;;  %v1695_v55 = vpop.permute.xlu1 %1694 }
 0x8c2   : > { %2705 = vmatprep.subr.bf16.mxu0 %v1103_v34  ;;  %v2727_v35 = vpop.f32.mrb[8].mxu1  ;;  %v1705_v57 = vsel %vm999_vm1, %v1695_v55, 0 }
 0x8c3   : > { %2706 = vmatpush3.bf16.msra.mxu0 %v1103_v34  ;;  %v1325_v37 = vpop.f32.mrb[9].mxu1  ;;  %v1340_v44 = vpack.c.bf16 %v2727_v35, %v2727_v35 }
 0x8c4   : > { %2815 = vmatprep.subr.msk.bf16.mxu0 %vm1113_vm4, %v1105_v36  ;;  %v2728_v38 = vpop.f32.mrb[10].mxu1  ;;  %v3106_v39 = vpop.eup %3105 }
 0x8c5   : > { %v1328_v40 = vpop.f32.mrb[11].mxu1  ;;  %v3108_v41 = vpop.eup %3107  ;;  %v1099_v47 = vmul.f32 %v3106_v39, %v3102_v33 }
 0x8c6   : > { %v1339_v43 = vpack.c.bf16 %v1328_v40, %v1325_v37  ;;  %v1097_v49 = vmul.f32 %v3108_v41, %v3100_v25  ;;  %v1691_v58 = vpop.permute.xlu0 %1690  ;;  %v1697_v59 = vpop.permute.xlu1 %1696 }
 0x8c7   : > { %2708 = vmatpush3.bf16.msra.mxu0 %v1115_v42  ;;  %v1101_v52 = vpack.c.bf16 %v1099_v47, %v1099_v47  ;;  %v1708_v63 = vsel %vm999_vm1, %v1697_v59, 0 }
 0x8c8   : > { %v3110_v46 = vpop.eup %3109  ;;  %2731 = vmatprep.mubr.msk.bf16.mxu1 %vm999_vm1, %v1339_v43  ;;  %2820 = vmatprep.subr.msk.bf16.mxu0 %vm1113_vm4, %v1167_v1 }
 0x8c9   : > { %2732 = vmatmul.mubr.msk.bf16.vlgmr.msra.gmra.mrb[12].mxu1 %vm999_vm1, %v1340_v44  ;;  %v1098_v50 = vmul.f32 %v3110_v46, %v3104_v28 }
 0x8ca   : > { %2742 = vmatpush3.bf16.xpose.msra.mxu1 %v1471_v48  ;;  %2745 = vmatprep.mubr.msk.bf16.mxu1 %vm999_vm1, %v1457_v12  ;;  %v1693_v0 = vpop.permute.xlu1 %1692 }
 0x8cb   : > { %2822 = vmatprep.subr.msk.bf16.mxu1 %vm999_vm1, %v4446_v13  ;;  %v1100_v51 = vpack.c.bf16 %v1098_v50, %v1097_v49 }
 0x8cd   : > { %2709 = vmatprep.mubr.msk.bf16.mxu0 %vm1066_vm3, %v1100_v51 }
 0x8ce   : > { %2710 = vmatmul.mubr.msk.bf16.vlgmr.msra.gmra.mrb[4].mxu0 %vm1066_vm3, %v1101_v52 }
 0x8cf   : > { %2736 = vmatpush3.bf16.msra.mxu0 %v1406_v2 }
 0x8d2   : > { %2744 = vmatpush3.bf16.xpose.msra.mxu1 %v1474_v53 }
 0x8d3   : > { %2825 = vmatprep.subr.msk.bf16.mxu1 %vm999_vm1, %v1695_v55 }
 0x8d9   : > { %2746 = vmatmul.mubr.msk.bf16.vlgmr.msra.gmra.mrb[16].mxu1 %vm999_vm1, %v4448_v17 }
 0x8da   : > { %2764 = vmatpush3.bf16.xpose.msra.mxu1 %v1705_v57  ;;  %2767 = vmatprep.mubr.msk.bf16.mxu1 %vm999_vm1, %v1691_v58 }
 0x8db   : > { %2826 = vmatprep.subr.msk.bf16.mxu1 %vm999_vm1, %v1697_v59 }
 0x8e2   : > { %2766 = vmatpush3.bf16.xpose.msra.mxu1 %v1708_v63 }
 0x8e9   : > { %2768 = vmatmul.mubr.msk.bf16.vlgmr.msra.gmra.mrb[20].mxu1 %vm999_vm1, %v1693_v0 }
 0x99c   : > { %v2733_v3 = vpop.f32.mrb[12].mxu1 }
 0x99d   : > { %v1385_v4 = vpop.f32.mrb[13].mxu1 }
 0x99e   : > { %v2734_v5 = vpop.f32.mrb[14].mxu1 }
 0x99f   : > { %v1388_v6 = vpop.f32.mrb[15].mxu1 }
 0x9a1   : > { %v2711_v7 = vpop.f32.mrb[4].mxu0 }
 0x9a2   : > { %v1151_v8 = vpop.f32.mrb[5].mxu0  ;;  %v1166_v12 = vpack.c.bf16 %v2711_v7, %v2711_v7 }
 0x9a3   : > { %v2712_v9 = vpop.f32.mrb[6].mxu0 }
 0x9a4   : > { %v1154_v10 = vpop.f32.mrb[7].mxu0 }
 0x9a5   : > { %v1165_v11 = vpack.c.bf16 %v1154_v10, %v1151_v8 }
 0x9a7   : > { %2737 = vmatprep.mubr.msk.bf16.mxu0 %vm999_vm1, %v1165_v11 }
 0x9a8   : > { %2738 = vmatmul.mubr.msk.bf16.vlgmr.msra.gmra.mrb[8].mxu0 %vm999_vm1, %v1166_v12 }
 0x9ac   : > { %v2747_v13 = vpop.f32.mrb[16].mxu1 }
 0x9ad   : > { %v1510_v14 = vpop.f32.mrb[17].mxu1  ;;  %v1526_v15 = vmul.f32 0.35355338, %v2747_v13 }
 0x9ae   : > { %v1524_v16 = vmul.f32 0.35355338, %v1510_v14  ;;  %v2748_v17 = vpop.f32.mrb[18].mxu1 }
 0x9af   : > { %v1513_v18 = vpop.f32.mrb[19].mxu1  ;;  %v1529_v24 = vadd.f32 %v1526_v15, %v4416_v21 }
 0x9b0   : > { %v1525_v19 = vmul.f32 0.35355338, %v1513_v18  ;;  %v1527_v20 = vadd.f32 %v1524_v16, %v4416_v21 }
 0x9b1   : > { %v1536_v26 = vsel %vm1066_vm3, %v1529_v24, -inf }
 0x9b2   : > { %v1530_v22 = vsel %vm1066_vm3, %v1527_v20, -inf  ;;  %v1528_v23 = vadd.f32 %v1525_v19, %v4416_v21 }
 0x9b3   : > { %1531 = vmax.xlane.f32.xlu0 %v1530_v22 }
 0x9b4   : > { %v1533_v25 = vsel %vm1066_vm3, %v1528_v23, -inf }
 0x9b5   : > { %1534 = vmax.xlane.f32.xlu1 %v1533_v25 }
 0x9b7   : > { %1537 = vmax.xlane.f32.xlu0 %v1536_v26 }
 0x9bc   : > { %v2769_v33 = vpop.f32.mrb[20].mxu1 }
 0x9bd   : > { %v1744_v27 = vpop.f32.mrb[21].mxu1  ;;  %v1760_v58 = vmul.f32 0.35355338, %v2769_v33 }
 0x9be   : > { %v2770_v28 = vpop.f32.mrb[22].mxu1  ;;  %v1758_v55 = vmul.f32 0.35355338, %v1744_v27 }
 0x9bf   : > { %v1747_v29 = vpop.f32.mrb[23].mxu1  ;;  %v1763_v2 = vadd.f32 %v1760_v58, %v4416_v21 }
 0x9c0   : > { %v1759_v57 = vmul.f32 0.35355338, %v1747_v29  ;;  %v1761_v59 = vadd.f32 %v1758_v55, %v4416_v21 }
 0x9c2   : > { %v1762_v63 = vadd.f32 %v1759_v57, %v4416_v21  ;;  %v1764_v0 = vsel %vm1066_vm3, %v1761_v59, -inf }
 0x9c4   : > { %v1767_v1 = vsel %vm1066_vm3, %v1762_v63, -inf }
 0xa40   : > { %v1532_v30 = vpop.xlane.xlu0 %1531 }
 0xa41   : > { %v1539_v31 = vsub.f32 %v1527_v20, %v1532_v30 }
 0xa42   : > { %v1535_v32 = vpop.xlane.xlu1 %1534 }
 0xa43   : > { %v1542_v34 = vmul.f32 1.442695, %v1539_v31  ;;  %v1540_v35 = vsub.f32 %v1528_v23, %v1535_v32  ;;  %v1629_v32 = vld [vmem:[#allocation19 + $0x8] sm:$0xf] }
 0xa44   : > { %v1538_v36 = vpop.xlane.xlu0 %1537 }
 0xa45   : > { %3111 = vpow2.f32 %v1542_v34  ;;  %v1544_v37 = vmul.f32 1.442695, %v1540_v35  ;;  %v1541_v38 = vsub.f32 %v1529_v24, %v1538_v36  ;;  %v1637_v34 = vsel %vm1113_vm4, %v1629_v32, 0 }
 0xa47   : > { %3113 = vpow2.f32 %v1544_v37  ;;  %v1546_v39 = vmul.f32 1.442695, %v1541_v38 }
 0xa49   : > { %3115 = vpow2.f32 %v1546_v39 }
 0xa4f   : > { %v3112_v40 = vpop.eup %3111 }
 0xa50   : > { %v1548_v41 = vsel %vm1066_vm3, %v3112_v40, 0.0 }
 0xa51   : > { %v3114_v42 = vpop.eup %3113  ;;  %1549 = vadd.xlane.f32.xlu0 %v1548_v41 }
 0xa52   : > { %v1551_v46 = vsel %vm1066_vm3, %v3114_v42, 0.0 }
 0xa53   : > { %v3116_v43 = vpop.eup %3115 }
 0xa54   : > { %v1554_v44 = vsel %vm1066_vm3, %v3116_v43, 0.0 }
 0xa55   : > { %1555 = vadd.xlane.f32.xlu1 %v1554_v44  ;;  %1552 = vadd.xlane.f32.xlu0 %v1551_v46 }
 0xa66   : > { %1567 = vrot.lane.b32.xlu1 %v4388_v56, %s3745_s29 }
 0xa6b   : > { %1565 = vrot.lane.b32.xlu0 %v4391_v62, %s3745_s29  ;;  %s3597_s29 = scalar_lea.vmem %s4566_s5, 192 }
 0xa6c   : > { %p3598_p4 = scmp.ne.s32.totalorder %s4566_s5, %s3597_s29 }
 0xa6e   : > { %p3599_p11 = pnand %p3598_p4, %p4713_p9 }
 0xa70   : > { %p3600_p8 = pneg %p3599_p11 }
 0xa7b   : > { %v2739_v47 = vpop.f32.mrb[8].mxu0 }
 0xa7c   : > { %v4496_v48 = vadd.f32 %v2739_v47, %v2733_v3  ;;  %v1442_v49 = vpop.f32.mrb[9].mxu0  ;;  %v1770_v3 = vsel %vm1066_vm3, %v1763_v2, -inf }
 0xa7d   : > { %v4498_v50 = vadd.f32 %v1442_v49, %v1385_v4  ;;  %v2740_v51 = vpop.f32.mrb[10].mxu0 }
 0xa7e   : > { %v1445_v52 = vpop.f32.mrb[11].mxu0 }
 0xa7f   : > { %v4500_v53 = vadd.f32 %v1445_v52, %v1388_v6 }
 0xa8a   : > { %1765 = vmax.xlane.f32.xlu1 %v1764_v0  ;;  %1768 = vmax.xlane.f32.xlu0 %v1767_v1 }
 0xa8e   : > { %1771 = vmax.xlane.f32.xlu0 %v1770_v3 }
 0xade   : > { %v1550_v4 = vpop.xlane.xlu0 %1549 }
 0xadf   : > { %3117 = vrcp.f32 %v1550_v4 }
 0xae2   : > { %v1553_v5 = vpop.xlane.xlu0 %1552  ;;  %v1556_v6 = vpop.xlane.xlu1 %1555 }
 0xae3   : > { %3119 = vrcp.f32 %v1553_v5 }
 0xae4   : > { %3121 = vrcp.f32 %v1556_v6 }
 0xae6   : > { %v1566_v7 = vpop.permute.xlu0 %1565  ;;  %v1568_v8 = vpop.permute.xlu1 %1567 }
 0xae7   : > { %2749 = vmatprep.subr.bf16.mxu0 %v1566_v7  ;;  %v1577_v21 = vsel %vm1113_vm4, %v1568_v8, 0 }
 0xae8   : > { %2750 = vmatpush3.bf16.msra.mxu0 %v1566_v7 }
 0xae9   : > { %2823 = vmatprep.subr.msk.bf16.mxu0 %vm1113_vm4, %v1568_v8  ;;  %v3118_v9 = vpop.eup %3117 }
 0xaea   : > { %v1560_v12 = vmul.f32 %v3118_v9, %v3112_v40 }
 0xaec   : > { %2752 = vmatpush3.bf16.msra.mxu0 %v1577_v21 }
 0xaed   : > { %v3120_v10 = vpop.eup %3119  ;;  %2824 = vmatprep.subr.msk.bf16.mxu0 %vm1113_vm4, %v1629_v32 }
 0xaee   : > { %v3122_v11 = vpop.eup %3121  ;;  %v1561_v13 = vmul.f32 %v3120_v10, %v3114_v42 }
 0xaef   : > { %v1562_v14 = vmul.f32 %v3122_v11, %v3116_v43 }
 0xaf0   : > { %v1563_v15 = vpack.c.bf16 %v1561_v13, %v1560_v12  ;;  %v1927_v12 = vld [vmem:[#allocation20] sm:$0x1] }
 0xaf1   : > { %v1564_v16 = vpack.c.bf16 %v1562_v14, %v1562_v14  ;;  %v1928_v13 = vunpack.c.l.bf16 %v1927_v12 }
 0xaf2   : > { %2753 = vmatprep.mubr.msk.bf16.mxu0 %vm1066_vm3, %v1563_v15 }
 0xaf3   : > { %2754 = vmatmul.mubr.msk.bf16.vlgmr.msra.gmra.mrb[12].mxu0 %vm1066_vm3, %v1564_v16 }
 0xaf4   : > { %2758 = vmatpush3.bf16.msra.mxu0 %v1637_v34 }
 0xb17   : > { %v1769_v17 = vpop.xlane.xlu0 %1768  ;;  %v1766_v18 = vpop.xlane.xlu1 %1765 }
 0xb18   : > { %v1774_v19 = vsub.f32 %v1762_v63, %v1769_v17  ;;  %v1773_v22 = vsub.f32 %v1761_v59, %v1766_v18  ;;  %v1863_v59 = vld [vmem:[#allocation19 + $0xc] sm:$0xf] }
 0xb19   : > { %v1871_v63 = vsel %vm1113_vm4, %v1863_v59, 0 }
 0xb1a   : > { %v1778_v20 = vmul.f32 1.442695, %v1774_v19  ;;  %v1776_v25 = vmul.f32 1.442695, %v1773_v22 }
 0xb1b   : > { %v1772_v23 = vpop.xlane.xlu0 %1771 }
 0xb1c   : > { %3123 = vpow2.f32 %v1778_v20  ;;  %v1775_v24 = vsub.f32 %v1763_v2, %v1772_v23 }
 0xb1e   : > { %v1780_v26 = vmul.f32 1.442695, %v1775_v24 }
 0xb20   : > { %3125 = vpow2.f32 %v1780_v26 }
 0xb21   : > { %3127 = vpow2.f32 %v1776_v25 }
 0xb26   : > { %v3124_v33 = vpop.eup %3123 }
 0xb27   : > { %v1785_v27 = vsel %vm1066_vm3, %v3124_v33, 0.0 }
 0xb28   : > { %1786 = vadd.xlane.f32.xlu0 %v1785_v27 }
 0xb2a   : > { %v3126_v28 = vpop.eup %3125 }
 0xb2b   : > { %v1788_v29 = vsel %vm1066_vm3, %v3126_v28, 0.0  ;;  %v3128_v30 = vpop.eup %3127 }
 0xb2c   : > { %1789 = vadd.xlane.f32.xlu1 %v1788_v29  ;;  %v1782_v31 = vsel %vm1066_vm3, %v3128_v30, 0.0 }
 0xb30   : > { %1783 = vadd.xlane.f32.xlu1 %v1782_v31 }
 0xb3e   : > { %1799 = vrot.lane.b32.xlu0 %v4391_v62, %s3746_s2 }
 0xb41   : > { %1801 = vrot.lane.b32.xlu1 %v4388_v56, %s3746_s2  ;;  %s3747_s2 = smov [#allocation31]  }
 0xb42   : > { %s3601_s17 = sshll.u32 %s3747_s2, 4  ;;  %s3602_s17 = int_to_ptr.vmem [resolvable:$false] %s3601_s17 }
 0xb43   : > { %s3603_s24 = scalar_lea.vmem %s3602_s17, 384  ;;  %p3604_p0 = scmp.lt.s32.totalorder %s4566_s5, %s3602_s17 }
 0xb44   : > { %p3605_p3 = scmp.lt.s32.totalorder %s3603_s24, %s3597_s29 }
 0xb46   : > { %p3606_p2 = por %p3605_p3, %p3604_p0 }
 0xb48   : > { %p3607_p6 = pnand %p3606_p2, %p3600_p8 }
 0xbb5   : > { %v1787_v35 = vpop.xlane.xlu0 %1786 }
 0xbb6   : > { %3129 = vrcp.f32 %v1787_v35 }
 0xbb9   : > { %v1800_v36 = vpop.permute.xlu0 %1799  ;;  %v1790_v37 = vpop.xlane.xlu1 %1789 }
 0xbba   : > { %2771 = vmatprep.subr.bf16.mxu0 %v1800_v36 }
 0xbbd   : > { %v1784_v38 = vpop.xlane.xlu1 %1783 }
 0xbbe   : > { %3131 = vrcp.f32 %v1784_v38 }
 0xbbf   : > { %3133 = vrcp.f32 %v1790_v37 }
 0xbc0   : > { %v3130_v39 = vpop.eup %3129 }
 0xbc1   : > { %v1795_v47 = vmul.f32 %v3130_v39, %v3124_v33  ;;  %v1802_v52 = vpop.permute.xlu1 %1801 }
 0xbc2   : > { %v1811_v57 = vsel %vm1113_vm4, %v1802_v52, 0 }
 0xbc6   : > { %v2755_v40 = vpop.f32.mrb[12].mxu0 }
 0xbc7   : > { %v1613_v41 = vpop.f32.mrb[13].mxu0  ;;  %v1628_v62 = vpack.c.bf16 %v2755_v40, %v2755_v40 }
 0xbc8   : > { %v3132_v42 = vpop.eup %3131  ;;  %v2756_v43 = vpop.f32.mrb[14].mxu0 }
 0xbc9   : > { %v1616_v44 = vpop.f32.mrb[15].mxu0  ;;  %v1794_v46 = vmul.f32 %v3132_v42, %v3128_v30  ;;  %v3134_v56 = vpop.eup %3133  ;;  %v3064_v42 = vld [vmem:[#allocation25 + $0x8] sm:$0xff]   ;;  %v3067_v43 = vld [vmem:[#allocation28] sm:$0xff]  }
 0xbca   : > { %v1627_v49 = vpack.c.bf16 %v1616_v44, %v1613_v41  ;;  %v1796_v55 = vmul.f32 %v3134_v56, %v3126_v28  ;;  %v3063_v41 = vld [vmem:[#allocation25] sm:$0xff]  }
 0xbcb   : > { %v1797_v51 = vpack.c.bf16 %v1795_v47, %v1794_v46  ;;  %2785 = vmatprep.subr.bf16.mxu1 %v3063_v41  ;;  %v3068_v44 = vld [vmem:[#allocation28 + $0x8] sm:$0xff]  }
 0xbcc   : > { %2759 = vmatprep.mubr.msk.bf16.mxu0 %vm999_vm1, %v1627_v49  ;;  %v1798_v58 = vpack.c.bf16 %v1796_v55, %v1796_v55  ;;  %2786 = vmatpush3.bf16.msra.mxu1 %v3063_v41  ;;  %v1978_v55 = vld [vmem:[#allocation22] sm:$0x1] }
 0xbcd   : > { %2760 = vmatmul.mubr.msk.bf16.vlgmr.msra.gmra.mrb[16].mxu0 %vm999_vm1, %v1628_v62  ;;  %2787 = vmatprep.subr.bf16.mxu1 %v3064_v42 }
 0xbce   : > { %2772 = vmatpush3.bf16.msra.mxu0 %v1800_v36  ;;  %2775 = vmatprep.mubr.msk.bf16.mxu0 %vm1066_vm3, %v1797_v51 }
 0xbcf   : > { %2827 = vmatprep.subr.msk.bf16.mxu0 %vm1113_vm4, %v1802_v52 }
 0xbd0   : > { %2788 = vmatpush3.bf16.msra.mxu1 %v3064_v42 }
 0xbd2   : > { %2774 = vmatpush3.bf16.msra.mxu0 %v1811_v57 }
 0xbd3   : > { %2828 = vmatprep.subr.msk.bf16.mxu0 %vm1113_vm4, %v1863_v59 }
 0xbd5   : > { %2776 = vmatmul.mubr.msk.bf16.vlgmr.msra.gmra.mrb[20].mxu0 %vm1066_vm3, %v1798_v58  ;;  %v1987_v58 = vld [vmem:[#allocation23] sm:$0x1] }
 0xbd6   : > { %2780 = vmatpush3.bf16.msra.mxu0 %v1871_v63  ;;  %v1979_v63 = vunpack.c.l.bf16 %v1978_v55  ;;  %v2120_v55 = vld [vmem:[#allocation4 + $0x8] sm:$0xff] }
 0xbd7   : > { %2793 = vmatprep.subr.bf16.mxu0 %v3067_v43 }
 0xca0   : > { %v2761_v0 = vpop.f32.mrb[16].mxu0 }
 0xca1   : > { %v1689_v1 = vadd.f32 %v2761_v0, %v4496_v48  ;;  %v1673_v2 = vpop.f32.mrb[17].mxu0  ;;  %v1988_v0 = vunpack.c.l.bf16 %v1987_v58 }
 0xca2   : > { %v1687_v3 = vadd.f32 %v1673_v2, %v4498_v50  ;;  %v2762_v4 = vpop.f32.mrb[18].mxu0  ;;  %v1932_v50 = vrot.slane %v1928_v13, %v4361_v45 }
 0xca3   : > { %v1676_v5 = vpop.f32.mrb[19].mxu0 }
 0xca4   : > { %v1688_v6 = vadd.f32 %v1676_v5, %v4500_v53 }
 0xca8   : > { %v2777_v7 = vpop.f32.mrb[20].mxu0 }
 0xca9   : > { %v1847_v8 = vpop.f32.mrb[21].mxu0  ;;  %v1862_v11 = vpack.c.bf16 %v2777_v7, %v2777_v7 }
 0xcaa   : > { %v2778_v9 = vpop.f32.mrb[22].mxu0 }
 0xcab   : > { %v1850_v21 = vpop.f32.mrb[23].mxu0 }
 0xcac   : > { %v1861_v10 = vpack.c.bf16 %v1850_v21, %v1847_v8 }
 0xcae   : > { %2781 = vmatprep.mubr.msk.bf16.mxu0 %vm999_vm1, %v1861_v10 }
 0xcaf   : > { %2782 = vmatmul.mubr.msk.bf16.vlgmr.msra.gmra.mrb[24].mxu0 %vm999_vm1, %v1862_v11 }
 0xcb0   : > { %2794 = vmatpush3.bf16.msra.mxu0 %v3067_v43 }
 0xcb1   : > { %2795 = vmatprep.subr.bf16.mxu0 %v3068_v44 }
 0xcb4   : > { %2796 = vmatpush3.bf16.msra.mxu0 %v3068_v44 }
 0xd82   : > { %v2783_v48 = vpop.f32.mrb[24].mxu0 }
 0xd83   : > { %v1923_v14 = vadd.f32 %v2783_v48, %v1689_v1  ;;  %v1907_v15 = vpop.f32.mrb[25].mxu0  ;;  %v1983_v1 = vrot.slane %v1979_v63, %v4361_v45 }
 0xd84   : > { %v1921_v16 = vadd.f32 %v1907_v15, %v1687_v3  ;;  %v2784_v17 = vpop.f32.mrb[26].mxu0  ;;  %v1992_v3 = vrot.slane %v1988_v0, %v4361_v45 }
 0xd85   : > { %v1926_v53 = vadd.f32 %v1923_v14, %v4369_v60  ;;  %v1910_v18 = vpop.f32.mrb[27].mxu0  ;;  %v3069_v17 = vld [vmem:[#allocation28 + $0x10] sm:$0xff]  }
 0xd86   : > { %v1924_v19 = vadd.f32 %v1921_v16, %v4365_v54  ;;  %v1922_v20 = vadd.f32 %v1910_v18, %v1688_v6  ;;  %2797 = vmatprep.subr.bf16.mxu0 %v3069_v17  ;;  %v3071_v18 = vld [vmem:[#allocation28 + $0x20] sm:$0xff]  }
 0xd87   : > { %v1935_v22 = vadd.f32 %v1932_v50, %v1926_v53  ;;  %2798 = vmatpush3.bf16.msra.mxu0 %v3069_v17  ;;  %v3070_v53 = vld [vmem:[#allocation28 + $0x18] sm:$0xff]  }
 0xd88   : > { %v1933_v23 = vadd.f32 %v1932_v50, %v1924_v19  ;;  %v1925_v24 = vadd.f32 %v1922_v20, %v4371_v61  ;;  %2799 = vmatprep.subr.bf16.mxu0 %v3070_v53  ;;  %v3072_v19 = vld [vmem:[#allocation28 + $0x28] sm:$0xff]   ;;  %v3073_v20 = vld [vmem:[#allocation28 + $0x30] sm:$0xff]  }
 0xd89   : > { %1938 = vst.msk [vmem:[#allocation2 + $0x10] sm:$0xff] %vm793_vm0, %v1935_v22  ;;  %v1945_v54 = vsel %vm793_vm0, %v1935_v22, 0.0 }
 0xd8a   : > { %1936 = vst.msk [vmem:[#allocation2] sm:$0xff] %vm793_vm0, %v1933_v23  ;;  %v1934_v25 = vadd.f32 %v1932_v50, %v1925_v24  ;;  %v1939_v26 = vsel %vm793_vm0, %v1933_v23, 0.0 }
 0xd8b   : > { %1940 = vadd.xlane.f32.xlu1 %v1939_v26  ;;  %2800 = vmatpush3.bf16.msra.mxu0 %v3070_v53 }
 0xd8c   : > { %1937 = vst.msk [vmem:[#allocation2 + $0x8] sm:$0xff] %vm793_vm0, %v1934_v25  ;;  %v1942_v60 = vsel %vm793_vm0, %v1934_v25, 0.0  ;;  %2801 = vmatprep.subr.bf16.mxu0 %v3071_v18 }
 0xd8d   : > { %1943 = vadd.xlane.f32.xlu0 %v1942_v60 }
 0xd8f   : > { %2802 = vmatpush3.bf16.msra.mxu0 %v3071_v18 }
 0xd90   : > { %2803 = vmatprep.subr.bf16.mxu0 %v3072_v19 }
 0xd91   : > { %1946 = vadd.xlane.f32.xlu0 %v1945_v54 }
 0xd93   : > { %2804 = vmatpush3.bf16.msra.mxu0 %v3072_v19 }
 0xd94   : > { %2805 = vmatprep.subr.bf16.mxu0 %v3073_v20 }
 0xd97   : > { %2806 = vmatpush3.bf16.msra.mxu0 %v3073_v20 }
 0xe18   : > { %v1941_v33 = vpop.xlane.xlu1 %1940 }
 0xe19   : > { %v1948_v27 = vmul.f32 0.03125, %v1941_v33 }
 0xe1a   : > { %v1944_v28 = vpop.xlane.xlu0 %1943 }
 0xe1b   : > { %v1951_v61 = vsub.f32 %v1933_v23, %v1948_v27  ;;  %v1949_v29 = vmul.f32 0.03125, %v1944_v28  ;;  %v2023_v23 = vld [vmem:[#allocation26] sm:$0x1] }
 0xe1c   : > { %v2024_v24 = vunpack.c.l.bf16 %v2023_v23 }
 0xe1d   : > { %v1952_v30 = vsub.f32 %v1934_v25, %v1949_v29  ;;  %v1954_v31 = vmul.f32 %v1951_v61, %v1951_v61 }
 0xe1e   : > { %v1947_v32 = vpop.xlane.xlu0 %1946  ;;  %v2028_v25 = vrot.slane %v2024_v24, %v4361_v45 }
 0xe1f   : > { %v1950_v34 = vmul.f32 0.03125, %v1947_v32  ;;  %v1957_v35 = vsel %vm793_vm0, %v1954_v31, 0.0  ;;  %v1955_v36 = vmul.f32 %v1952_v30, %v1952_v30 }
 0xe20   : > { %1958 = vadd.xlane.f32.xlu1 %v1957_v35 }
 0xe21   : > { %v1953_v37 = vsub.f32 %v1935_v22, %v1950_v34  ;;  %v1960_v38 = vsel %vm793_vm0, %v1955_v36, 0.0  ;;  %v3074_v22 = vld [vmem:[#allocation28 + $0x38] sm:$0xff]  }
 0xe22   : > { %1961 = vadd.xlane.f32.xlu0 %v1960_v38  ;;  %2807 = vmatprep.subr.bf16.mxu0 %v3074_v22 }
 0xe23   : > { %v1956_v39 = vmul.f32 %v1953_v37, %v1953_v37  ;;  %2808 = vmatpush3.bf16.msra.mxu0 %v3074_v22 }
 0xe25   : > { %v1963_v40 = vsel %vm793_vm0, %v1956_v39, 0.0 }
 0xe26   : > { %1964 = vadd.xlane.f32.xlu1 %v1963_v40 }
 0xead   : > { %v1959_v46 = vpop.xlane.xlu1 %1958 }
 0xeae   : > { %v1966_v47 = vmul.f32 0.03125, %v1959_v46 }
 0xeaf   : > { %v1962_v49 = vpop.xlane.xlu0 %1961 }
 0xeb0   : > { %v1969_v62 = vadd.f32 1e-05, %v1966_v47  ;;  %v1967_v51 = vmul.f32 0.03125, %v1962_v49  ;;  %v2121_v49 = vld [vmem:[#allocation4 + $0x10] sm:$0xff] }
 0xeb2   : > { %3135 = vrsqrt.f32 %v1969_v62  ;;  %v1970_v56 = vadd.f32 1e-05, %v1967_v51  ;;  %v2119_v62 = vld [vmem:[#allocation4] sm:$0xff] }
 0xeb3   : > { %v1965_v52 = vpop.xlane.xlu1 %1964 }
 0xeb4   : > { %3137 = vrsqrt.f32 %v1970_v56  ;;  %v1968_v57 = vmul.f32 0.03125, %v1965_v52 }
 0xeb6   : > { %v1971_v59 = vadd.f32 1e-05, %v1968_v57 }
 0xeb8   : > { %3139 = vrsqrt.f32 %v1971_v59  ;;  %v2254_v59 = vld [vmem:[#allocation29] sm:$0x1] }
 0xebc   : > { %v3136_v2 = vpop.eup %3135 }
 0xebd   : > { %v1975_v4 = vmul.f32 %v3136_v2, %v1951_v61 }
 0xebe   : > { %v3138_v5 = vpop.eup %3137 }
 0xebf   : > { %v1984_v6 = vmul.f32 %v1983_v1, %v1975_v4  ;;  %v1976_v7 = vmul.f32 %v3138_v5, %v1952_v30  ;;  %v2245_v5 = vld [vmem:[#allocation2] sm:$0xff] }
 0xec1   : > { %v1993_v8 = vadd.f32 %v1992_v3, %v1984_v6  ;;  %v1985_v9 = vmul.f32 %v1983_v1, %v1976_v7 }
 0xec2   : > { %v3140_v21 = vpop.eup %3139 }
 0xec3   : > { %v2613_v10 = vpack.c.bf16 %v1993_v8, %v1993_v8  ;;  %v1994_v11 = vadd.f32 %v1992_v3, %v1985_v9  ;;  %v1977_v12 = vmul.f32 %v3140_v21, %v1953_v37  ;;  %v2246_v9 = vld [vmem:[#allocation2 + $0x8] sm:$0xff] }
 0xec5   : > { %2010 = vst.msk [vmem:[#allocation3] sm:$0xf] %vm2009_vm5, %v2613_v10  ;;  %v2614_v13 = vpack.c.bf16 %v1994_v11, %v1994_v11  ;;  %v1986_v48 = vmul.f32 %v1983_v1, %v1977_v12  ;;  %v2255_v1 = vunpack.c.l.bf16 %v2254_v59 }
 0xec7   : > { %2011 = vst.msk [vmem:[#allocation3 + $0x4] sm:$0xf] %vm2009_vm5, %v2614_v13  ;;  %v1995_v14 = vadd.f32 %v1992_v3, %v1986_v48  ;;  %v2259_v2 = vrot.slane %v2255_v1, %v4361_v45  ;;  %v2247_v3 = vld [vmem:[#allocation2 + $0x10] sm:$0xff] }
 0xec9   : > { %v2615_v50 = vpack.c.bf16 %v1995_v14, %v1995_v14 }
 0xecb   : > { %2012 = vst.msk [vmem:[#allocation3 + $0x8] sm:$0xf] %vm2009_vm5, %v2615_v50 }
 0xece   : > { %v3065_v15 = vld [vmem:[#allocation3] sm:$0xff]  }
 0xecf   : > { %2789 = vmatprep.mubr.msk.bf16.mxu1 %vm793_vm0, %v3065_v15 }
 0xed2   : > { %v3066_v16 = vld [vmem:[#allocation3 + $0x8] ss:$0 sps:$4 sm:$0xff]  }
 0xed3   : > { %2790 = vmatmul.mubr.msk.bf16.vlgmr.msra.gmra.mrb[24].mxu1 %vm793_vm0, %v3066_v16 }
 0xfa6   : > { %v2791_v26 = vpop.f32.mrb[24].mxu1 }
 0xfa7   : > { %v2099_v60 = vadd.f32 %v2791_v26, %v2028_v25  ;;  %v2090_v54 = vpop.f32.mrb[25].mxu1 }
 0xfa8   : > { %v2091_v33 = vadd.f32 %v2090_v54, %v2028_v25  ;;  %v2792_v27 = vpop.f32.mrb[26].mxu1 }
 0xfa9   : > { %v2109_v28 = vmul.f32 0.70710677, %v2099_v60  ;;  %v2093_v61 = vpop.f32.mrb[27].mxu1  ;;  %v2106_v38 = vmul.f32 0.5, %v2099_v60 }
 0xfaa   : > { %v2107_v29 = vmul.f32 0.70710677, %v2091_v33  ;;  %v2094_v30 = vadd.f32 %v2093_v61, %v2028_v25  ;;  %v2104_v39 = vmul.f32 0.5, %v2091_v33 }
 0xfab   : > { %3141 = verf.f32 %v2109_v28 }
 0xfac   : > { %3143 = verf.f32 %v2107_v29  ;;  %v2108_v31 = vmul.f32 0.70710677, %v2094_v30  ;;  %v2105_v40 = vmul.f32 0.5, %v2094_v30 }
 0xfae   : > { %3145 = verf.f32 %v2108_v31 }
 0xfb5   : > { %v3142_v32 = vpop.eup %3141 }
 0xfb6   : > { %v3144_v34 = vpop.eup %3143  ;;  %v2115_v35 = vadd.f32 1.0, %v3142_v32 }
 0xfb7   : > { %v2113_v36 = vadd.f32 1.0, %v3144_v34 }
 0xfb8   : > { %v3146_v37 = vpop.eup %3145  ;;  %v2118_v42 = vmul.f32 %v2115_v35, %v2106_v38 }
 0xfb9   : > { %v2114_v41 = vadd.f32 1.0, %v3146_v37  ;;  %v2116_v43 = vmul.f32 %v2113_v36, %v2104_v39 }
 0xfba   : > { %v2123_v47 = vpack.c.bf16 %v2118_v42, %v2118_v42 }
 0xfbb   : > { %v2117_v44 = vmul.f32 %v2114_v41, %v2105_v40 }
 0xfbd   : > { %v2122_v46 = vpack.c.bf16 %v2117_v44, %v2116_v43 }
 0xfbf   : > { %2809 = vmatprep.mubr.bf16.mxu0 %v2122_v46 }
 0xfc0   : > { %2810 = vmatmul.mubr.bf16.vlgmr.msra.gmra.mrb[28].mxu0 %v2123_v47 }
0x1093   : > { %v2811_v51 = vpop.f32.mrb[28].mxu0 }
0x1094   : > { %v2238_v56 = vadd.f32 %v2811_v51, %v2121_v49  ;;  %v2222_v52 = vpop.f32.mrb[29].mxu0 }
0x1095   : > { %v2236_v57 = vadd.f32 %v2222_v52, %v2119_v62  ;;  %v2812_v58 = vpop.f32.mrb[30].mxu0 }
0x1096   : > { %2241 = vst.msk [vmem:[#allocation4 + $0x10] sm:$0xff] %vm793_vm0, %v2238_v56  ;;  %v2225_v63 = vpop.f32.mrb[31].mxu0 }
0x1097   : > { %2239 = vst.msk [vmem:[#allocation4] sm:$0xff] %vm793_vm0, %v2236_v57  ;;  %v2237_v0 = vadd.f32 %v2225_v63, %v2120_v55 }
0x1099   : > { %2240 = vst.msk [vmem:[#allocation4 + $0x8] sm:$0xff] %vm793_vm0, %v2237_v0 }
0x109d   : > { %v2250_v4 = vld [vmem:[#allocation4 + $0x10] sm:$0xff] }
0x109e   : > { %v2248_v6 = vld [vmem:[#allocation4] sm:$0xff]  ;;  %v2253_v7 = vadd.f32 %v2250_v4, %v2247_v3 }
0x109f   : > { %v2251_v8 = vadd.f32 %v2248_v6, %v2245_v5 }
0x10a0   : > { %v2249_v21 = vld [vmem:[#allocation4 + $0x8] sm:$0xff]  ;;  %v2262_v10 = vadd.f32 %v2259_v2, %v2253_v7 }
0x10a1   : > { %v2252_v11 = vadd.f32 %v2249_v21, %v2246_v9  ;;  %v2260_v12 = vadd.f32 %v2259_v2, %v2251_v8 }
0x10a2   : > { %v2618_v13 = vpack.c.bf16 %v2262_v10, %v2262_v10 }
0x10a3   : > { %v2261_v48 = vadd.f32 %v2259_v2, %v2252_v11  ;;  %v2616_v14 = vpack.c.bf16 %v2260_v12, %v2260_v12 }
0x10a4   : > { %2279 = vst.msk [vmem:[%s771_s18 + $0x8] sm:$0xf] %vm2009_vm5, %v2618_v13 }
0x10a5   : > { %v2617_v45 = vpack.c.bf16 %v2261_v48, %v2261_v48  ;;  %2277 = vst.msk [vmem:[%s771_s18] sm:$0xf] %vm2009_vm5, %v2616_v14 }
0x10a7   : > { %2278 = vst.msk [vmem:[%s771_s18 + $0x4] sm:$0xf] %vm2009_vm5, %v2617_v45 }
0x10a8   : > { %3610 = shalt.err (!%p3607_p6)
}
0x10a9   : > { %s3611_s1 = scalar_lea.hbm %s4563_s20, 192  ;;  %s3615_s6 = scalar_lea.hbm %s4712_s4, 384 }
0x10aa   : > { %p3612_p5 = scmp.ne.s32.totalorder %s4563_s20, %s3611_s1  ;;  %p3616_p7 = scmp.lt.u32.totalorder %s4563_s20, %s4712_s4 }
0x10ab   : > { %p3617_p10 = scmp.lt.u32.totalorder %s3615_s6, %s3611_s1  ;;  %p3619_p4 = scmp.lt.u32.totalorder %s3611_s1, %s4563_s20 }
0x10ac   : > { %p3613_p13 = pnand %p3612_p5, %p4713_p9 }
0x10ad   : > { %p3618_p12 = por %p3617_p10, %p3616_p7 }
0x10ae   : > { %p3614_p1 = pneg %p3613_p13 }
0x10af   : > { %p3620_p11 = por %p3619_p4, %p3618_p12 }
0x10b1   : > { %p3621_p8 = pnand %p3620_p11, %p3614_p1 }
0x10b3   : > { %3624 = shalt.err (!%p3621_p8)
}
0x10b4   : > { %s3748_s29 = smov 4  }
0x10b5   : > { %2895 = dma.vmem_to_hbm [thread:$0]  (%p4713_p9), %s4566_s5, 192, %s4563_s20, %s4571_s0, %s3742_s23, %s3742_s23, %s3748_s29  }
0x10b6 PF: > { %s4714_s17 = sld [smem:[#allocation43_spill]]  ;;  %p4715_p0 = scmp.ne.s32.totalorder %s4684_s21, 0 }
0x10b7   : > { %p4716_p3 = scmp.ge.s32.totalorder %s3715_s26, 2 }
0x10b9   : > { %p2948_p2 = pnand %p4716_p3, %p4715_p0 }
0x10bc   : > { %s2309_s24 = sand.u32 1, %s4714_s17  }
0x10bd   : > { %s2310_s1 = scalar_lea.sflag [#allocation7], %s2309_s24 }
0x10be   : > { %3690 = dma.done.wait (!%p2948_p2), %s2310_s1, 192  }
0x10bf   : > { %3692 = vsyncadd (!%p2948_p2), %s2310_s1, 4294967104  ;;  %s40_s26 = sadd.s32 1, %s3715_s26   ;;  %s4717_s21 = sld [smem:[#allocation44_spill]] }
0x10c0   : > { %p37_p6 = scmp.ge.s32.totalorder %s40_s26, 4   ;;  %s4718_s27 = sld [smem:[#allocation45_spill]] }
0x10c1   : > { %s4719_s28 = smov %s4725_s22  ;;  %s4721_s23 = smov %s4252_s30 }
0x10c2   : > { %s4722_s24 = smov %s3711_s25  ;;  %s4723_s25 = smov %s4719_s28 }
0x10c3   :  { %39 = sbr.rel (!%p37_p6) target bundleno = 23 (0x17), region = 201 }
0x10c6   : > { %s4720_s22 = smov %s4718_s27 }
0x10ca   :  { %2315 = vsyncpa [#allocation6], 1 }
0x10cb   :  { %2317 = vsyncpa [#allocation6 + $0x1], 1 }
0x10cc   :  { %2318 = vsyncpa [#allocation9], 1 }
0x10cd   :  { %2319 = vsyncpa [#allocation12], 1 }
0x10ce   :  { %2321 = vsyncpa [#allocation12 + $0x1], 1 }
0x10cf   :  { %2322 = vsyncpa [#allocation15], 1 }
0x10d0   :  { %2323 = vsyncpa [#allocation18], 1 }
0x10d1   :  { %2324 = vsyncpa [#allocation21], 1 }
0x10d2   :  { %2325 = vsyncpa [#allocation24], 1 }
0x10d3   :  { %2326 = vsyncpa [#allocation27], 1 }
0x10d4   :  { %2327 = vsyncpa [#allocation30], 1 }
0x10d5   :  { %2328 = vsyncpa [#allocation7], 1 }
0x10d6   :  { %2330 = vsyncpa [#allocation7 + $0x1], 1 }

// kernel: vit_forward.6
= control target key start
LH: loop header
LB: loop body
LE: loop exit
PB: predicated region body
PF: predicated region fallthrough
CT: control target
= control target key end

     0   :  { %s4128_s0 = inlined_call_operand.hbm [shape: bf16[2,24,32], index: 0, kind: input, shape index: {}]   ;;  %s4129_s1 = inlined_call_operand.hbm [shape: bf16[1,32], index: 1, kind: input, shape index: {}]   ;;  %s4130_s2 = inlined_call_operand.hbm [shape: bf16[1,32], index: 2, kind: input, shape index: {}]   ;;  %s4131_s3 = inlined_call_operand.hbm [shape: bf16[32,96], index: 3, kind: input, shape index: {}]   ;;  %s4132_s4 = inlined_call_operand.hbm [shape: bf16[1,96], index: 4, kind: input, shape index: {}]   ;;  %s4133_s5 = inlined_call_operand.hbm [shape: bf16[32,32], index: 5, kind: input, shape index: {}]   ;;  %s4134_s6 = inlined_call_operand.hbm [shape: bf16[1,32], index: 6, kind: input, shape index: {}]   ;;  %s4135_s7 = inlined_call_operand.hbm [shape: bf16[1,32], index: 7, kind: input, shape index: {}]   ;;  %s4136_s8 = inlined_call_operand.hbm [shape: bf16[1,32], index: 8, kind: input, shape index: {}]   ;;  %s4137_s9 = inlined_call_operand.hbm [shape: bf16[32,128], index: 9, kind: input, shape index: {}]   ;;  %s4138_s10 = inlined_call_operand.hbm [shape: bf16[1,128], index: 10, kind: input, shape index: {}]   ;;  %s4139_s11 = inlined_call_operand.hbm [shape: bf16[128,32], index: 11, kind: input, shape index: {}]   ;;  %s4140_s12 = inlined_call_operand.hbm [shape: bf16[1,32], index: 12, kind: input, shape index: {}]   ;;  %s4141_s13 = inlined_call_operand.hbm [shape: bf16[2,24,32], index: 13, kind: output, shape index: {}]  }
   0x1   :  { %4154 = sst [smem:[#allocation39_spill]] %s4128_s0 }
   0x2   :  { %4155 = sst [smem:[#allocation40_spill]] %s4129_s1 }
   0x3   :  { %4156 = sst [smem:[#allocation41_spill]] %s4130_s2 }
   0x4   :  { %4157 = sst [smem:[#allocation42_spill]] %s4131_s3 }
   0x5   :  { %4158 = sst [smem:[#allocation43_spill]] %s4132_s4 }
   0x6   :  { %4159 = sst [smem:[#allocation44_spill]] %s4141_s13 }
   0x7   :  { %18 = vsyncpa [#allocation6], 0 }
   0x8   :  { %20 = vsyncpa [#allocation6 + $0x1], 0 }
   0x9   :  { %21 = vsyncpa [#allocation9], 0 }
   0xa   :  { %22 = vsyncpa [#allocation12], 0 }
   0xb   :  { %23 = vsyncpa [#allocation15], 0 }
   0xc   :  { %24 = vsyncpa [#allocation18], 0 }
   0xd   :  { %25 = vsyncpa [#allocation21], 0 }
   0xe   :  { %26 = vsyncpa [#allocation24], 0 }
   0xf   :  { %27 = vsyncpa [#allocation7], 0 }
  0x10   :  { %29 = vsyncpa [#allocation7 + $0x1], 0  ;;  %s3456_s25 = smov 0   ;;  %s3458_s26 = smov 0  }
  0x11   :  { %s3460_s27 = smov 0   ;;  %s3462_s28 = smov 0  }
  0x12   :  { %s3464_s29 = smov 0   ;;  %s3466_s30 = smov 0  }
  0x13 LB: > { %4160 = sst [smem:[#allocation35_spill]] %s3335_s25  ;;  %s4142_s14 = sadd.s32 4294967295, %s3355_s30   ;;  %s3355_s30 = sphi %s3466_s30, %s35_s30   ;;  %s3351_s29 = sphi %s3464_s29, %s4198_s29   ;;  %s3347_s28 = sphi %s3462_s28, %s4197_s28   ;;  %s3343_s27 = sphi %s3460_s27, %s4196_s27   ;;  %s3339_s26 = sphi %s3458_s26, %s4195_s26   ;;  %s3335_s25 = sphi %s3456_s25, %s4194_s25  }
  0x14   : > { %4161 = sst [smem:[#allocation36_spill]] %s3347_s28  ;;  %p2310_p0 = scmp.ge.s32.totalorder %s3355_s30, 1 }
  0x15   : > { %p3490_p1 = scmp.eq.s32.totalorder %s4142_s14, 0  ;;  %p371_p2 = scmp.lt.s32.totalorder %s3355_s30, 3 }
  0x16   : > { %s3357_s17 = smov [#allocation8]   ;;  %s3358_s19 = smov [#allocation11]  }
  0x17   : > { %s4162_s15 = scalar_select %p3490_p1, 1, 0 }
  0x18   : > { %p3495_p3 = pnand %p2310_p0, %p371_p2  ;;  %s384_s18 = sshll.u32 %s3357_s17, 4  ;;  %s385_s18 = int_to_ptr.vmem [resolvable:$true] %s384_s18 }
  0x19   : > { %4163 = sst [smem:[#allocation37_spill]] %s4162_s15  ;;  %s405_s20 = sshll.u32 %s3358_s19, 4  ;;  %s3508_s20 = int_to_ptr.vmem [resolvable:$true] %s405_s20 }
  0x1a   : > { %s4164_s16 = scalar_select %p3495_p3, 1, 0 }
  0x1b   : > { %p2657_p5 = pneg %p3495_p3  ;;  %s3359_s22 = smov [#allocation14]  }
  0x1c   : > { %4165 = sst [smem:[#allocation38_spill]] %s4164_s16  ;;  %s3510_s23 = sshll.u32 %s3359_s22, 4  ;;  %s430_s23 = int_to_ptr.vmem [resolvable:$true] %s3510_s23 }
  0x1d   : > { %p3504_p6 = pnand %p2657_p5, %p3490_p1  ;;  %s4167_s1 = sld [smem:[#allocation40_spill]] }
  0x1f   : > { %p3520_p8 = pneg %p3504_p6 }
  0x23   : > { %s2883_s17 = scalar_lea.hbm %s4167_s1, 16 }
  0x24   : > { %p2884_p7 = scmp.ne.s32.totalorder %s4167_s1, %s2883_s17  ;;  %p2890_p11 = scmp.lt.u32.totalorder %s2883_s17, %s4167_s1 }
  0x26   : > { %p2886_p9 = pnand %p3520_p8, %p2884_p7 }
  0x28   : > { %p2887_p10 = pneg %p2886_p9 }
  0x2a   : > { %p2892_p12 = pnand %p2890_p11, %p2887_p10 }
  0x2c   : > { %2895 = shalt.err (!%p2892_p12)
}
  0x2d   : > { %s2896_s14 = scalar_lea.vmem %s385_s18, 16  ;;  %s2903_s13 = scalar_lea.vmem %s385_s18, 32 }
  0x2e   : > { %p2897_p13 = scmp.ne.s32.totalorder %s385_s18, %s2896_s14  ;;  %p2904_p5 = scmp.lt.s32.totalorder %s385_s18, %s385_s18 }
  0x2f   : > { %p2905_p4 = scmp.lt.s32.totalorder %s2903_s13, %s2896_s14 }
  0x30   : > { %p2899_p0 = pnand %p2897_p13, %p3520_p8 }
  0x31   : > { %p2906_p3 = por %p2905_p4, %p2904_p5 }
  0x32   : > { %p2900_p2 = pneg %p2899_p0 }
  0x34   : > { %p2907_p1 = pnand %p2906_p3, %p2900_p2 }
  0x36   : > { %2910 = shalt.err (!%p2907_p1)
}
  0x37   : > { %2660 = dma.hbm_to_vmem [thread:$0]  (!%p3504_p6), %s4167_s1, 16, %s385_s18, [#allocation9]  }
  0x38   : > { %s4169_s3 = sld [smem:[#allocation42_spill]] }
  0x3e   : > { %s2911_s22 = scalar_lea.hbm %s4169_s3, 256 }
  0x3f   : > { %p2912_p7 = scmp.ne.s32.totalorder %s4169_s3, %s2911_s22  ;;  %p2918_p1 = scmp.lt.u32.totalorder %s2911_s22, %s4169_s3 }
  0x41   : > { %p2914_p9 = pnand %p2912_p7, %p3520_p8 }
  0x43   : > { %p2915_p4 = pneg %p2914_p9 }
  0x45   : > { %p2920_p3 = pnand %p2918_p1, %p2915_p4 }
  0x47   : > { %2923 = shalt.err (!%p2920_p3)
}
  0x48   : > { %s2924_s18 = scalar_lea.vmem %s3508_s20, 256  ;;  %p2932_p13 = scmp.lt.s32.totalorder %s3508_s20, %s3508_s20 }
  0x49   : > { %p2925_p10 = scmp.ne.s32.totalorder %s3508_s20, %s2924_s18  ;;  %p2933_p0 = scmp.lt.s32.totalorder %s2924_s18, %s2924_s18 }
  0x4b   : > { %p2927_p11 = pnand %p2925_p10, %p3520_p8  ;;  %p2934_p2 = por %p2933_p0, %p2932_p13 }
  0x4d   : > { %p2928_p12 = pneg %p2927_p11 }
  0x4f   : > { %p2935_p5 = pnand %p2934_p2, %p2928_p12 }
  0x51   : > { %2938 = shalt.err (!%p2935_p5)
}
  0x52   : > { %s4151_s0 = smov 64   ;;  %s4152_s15 = smov 4  }
  0x53   : > { %2666 = dma.hbm_to_vmem [thread:$0]  (!%p3504_p6), %s4169_s3, 256, %s3508_s20, [#allocation12], %s4151_s0, %s4151_s0, %s4152_s15  }
  0x54   : > { %s2939_s22 = scalar_lea.hbm %s4133_s5, 256 }
  0x55   : > { %p2940_p7 = scmp.ne.s32.totalorder %s4133_s5, %s2939_s22  ;;  %p2946_p1 = scmp.lt.u32.totalorder %s2939_s22, %s4133_s5 }
  0x57   : > { %p2942_p9 = pnand %p2940_p7, %p3520_p8 }
  0x59   : > { %p2943_p4 = pneg %p2942_p9 }
  0x5b   : > { %p2948_p3 = pnand %p2946_p1, %p2943_p4 }
  0x5d   : > { %2951 = shalt.err (!%p2948_p3)
}
  0x5e   : > { %s2952_s28 = scalar_lea.vmem %s430_s23, 256  ;;  %p2960_p13 = scmp.lt.s32.totalorder %s430_s23, %s430_s23 }
  0x5f   : > { %p2953_p10 = scmp.ne.s32.totalorder %s430_s23, %s2952_s28  ;;  %p2961_p0 = scmp.lt.s32.totalorder %s2952_s28, %s2952_s28 }
  0x61   : > { %p2955_p11 = pnand %p2953_p10, %p3520_p8  ;;  %p2962_p2 = por %p2961_p0, %p2960_p13 }
  0x63   : > { %p2956_p12 = pneg %p2955_p11 }
  0x65   : > { %p2963_p5 = pnand %p2962_p2, %p2956_p12 }
  0x67   : > { %2966 = shalt.err (!%p2963_p5)
}
  0x68   : > { %2672 = dma.hbm_to_vmem [thread:$0]  (!%p3504_p6), %s4133_s5, 256, %s430_s23, [#allocation15], %s4151_s0, %s4151_s0, %s4152_s15  }
  0x69   : > { %s3362_s24 = smov [#allocation17]   ;;  %s3363_s17 = smov [#allocation20]  }
  0x6a   : > { %s454_s16 = sshll.u32 %s3362_s24, 4  ;;  %s477_s22 = sshll.u32 %s3363_s17, 4  ;;  %s455_s16 = int_to_ptr.vmem [resolvable:$true] %s454_s16  ;;  %s478_s22 = int_to_ptr.vmem [resolvable:$true] %s477_s22 }
  0x6b   : > { %s2967_s18 = scalar_lea.hbm %s4135_s7, 16 }
  0x6c   : > { %p2968_p7 = scmp.ne.s32.totalorder %s4135_s7, %s2967_s18  ;;  %p2974_p1 = scmp.lt.u32.totalorder %s2967_s18, %s4135_s7 }
  0x6e   : > { %p2970_p9 = pnand %p2968_p7, %p3520_p8 }
  0x70   : > { %p2971_p4 = pneg %p2970_p9 }
  0x72   : > { %p2976_p3 = pnand %p2974_p1, %p2971_p4 }
  0x74   : > { %2979 = shalt.err (!%p2976_p3)
}
  0x75   : > { %s2980_s23 = scalar_lea.vmem %s455_s16, 16  ;;  %s2987_s20 = scalar_lea.vmem %s455_s16, 32 }
  0x76   : > { %p2981_p10 = scmp.ne.s32.totalorder %s455_s16, %s2980_s23  ;;  %p2988_p13 = scmp.lt.s32.totalorder %s455_s16, %s455_s16 }
  0x77   : > { %p2989_p0 = scmp.lt.s32.totalorder %s2987_s20, %s2980_s23 }
  0x78   : > { %p2983_p11 = pnand %p2981_p10, %p3520_p8 }
  0x79   : > { %p2990_p2 = por %p2989_p0, %p2988_p13 }
  0x7a   : > { %p2984_p12 = pneg %p2983_p11 }
  0x7c   : > { %p2991_p5 = pnand %p2990_p2, %p2984_p12 }
  0x7e   : > { %2994 = shalt.err (!%p2991_p5)
}
  0x7f   : > { %2678 = dma.hbm_to_vmem [thread:$0]  (!%p3504_p6), %s4135_s7, 16, %s455_s16, [#allocation18]  }
  0x80   : > { %s2995_s14 = scalar_lea.hbm %s4137_s9, 256 }
  0x81   : > { %p2996_p7 = scmp.ne.s32.totalorder %s4137_s9, %s2995_s14  ;;  %p3002_p1 = scmp.lt.u32.totalorder %s2995_s14, %s4137_s9 }
  0x83   : > { %p2998_p9 = pnand %p2996_p7, %p3520_p8 }
  0x85   : > { %p2999_p4 = pneg %p2998_p9 }
  0x87   : > { %p3004_p3 = pnand %p3002_p1, %p2999_p4 }
  0x89   : > { %3007 = shalt.err (!%p3004_p3)
}
  0x8a   : > { %s3008_s23 = scalar_lea.vmem %s478_s22, 256  ;;  %p3016_p13 = scmp.lt.s32.totalorder %s478_s22, %s478_s22 }
  0x8b   : > { %p3009_p10 = scmp.ne.s32.totalorder %s478_s22, %s3008_s23  ;;  %p3017_p0 = scmp.lt.s32.totalorder %s3008_s23, %s3008_s23 }
  0x8d   : > { %p3011_p11 = pnand %p3009_p10, %p3520_p8  ;;  %p3018_p2 = por %p3017_p0, %p3016_p13 }
  0x8f   : > { %p3012_p12 = pneg %p3011_p11 }
  0x91   : > { %p3019_p5 = pnand %p3018_p2, %p3012_p12 }
  0x93   : > { %3022 = shalt.err (!%p3019_p5)
}
  0x94   : > { %2684 = dma.hbm_to_vmem [thread:$0]  (!%p3504_p6), %s4137_s9, 256, %s478_s22, [#allocation21], %s4151_s0, %s4151_s0, %s4152_s15  }
  0x95   : > { %s3364_s3 = smov [#allocation23]   ;;  %s3365_s25 = smov [#allocation10]  }
  0x96   : > { %s506_s24 = sshll.u32 %s3364_s3, 4  ;;  %s395_s17 = sshll.u32 %s3365_s25, 4  ;;  %s507_s24 = int_to_ptr.vmem [resolvable:$true] %s506_s24  ;;  %s396_s17 = int_to_ptr.vmem [resolvable:$true] %s395_s17 }
  0x97   : > { %s3023_s18 = scalar_lea.hbm %s4139_s11, 1024 }
  0x98   : > { %p3024_p7 = scmp.ne.s32.totalorder %s4139_s11, %s3023_s18  ;;  %p3030_p1 = scmp.lt.u32.totalorder %s3023_s18, %s4139_s11 }
  0x9a   : > { %p3026_p9 = pnand %p3024_p7, %p3520_p8 }
  0x9c   : > { %p3027_p4 = pneg %p3026_p9 }
  0x9e   : > { %p3032_p3 = pnand %p3030_p1, %p3027_p4 }
  0xa0   : > { %3035 = shalt.err (!%p3032_p3)
}
  0xa1   : > { %s3036_s22 = scalar_lea.vmem %s507_s24, 1024  ;;  %p3044_p13 = scmp.lt.s32.totalorder %s507_s24, %s507_s24 }
  0xa2   : > { %p3037_p10 = scmp.ne.s32.totalorder %s507_s24, %s3036_s22  ;;  %p3045_p0 = scmp.lt.s32.totalorder %s3036_s22, %s3036_s22 }
  0xa4   : > { %p3039_p11 = pnand %p3037_p10, %p3520_p8  ;;  %p3046_p2 = por %p3045_p0, %p3044_p13 }
  0xa6   : > { %p3040_p12 = pneg %p3039_p11 }
  0xa8   : > { %p3047_p5 = pnand %p3046_p2, %p3040_p12 }
  0xaa   : > { %3050 = shalt.err (!%p3047_p5)
}
  0xab   : > { %2690 = dma.hbm_to_vmem [thread:$0]  (!%p3504_p6), %s4139_s11, 1024, %s507_s24, [#allocation24], %s4151_s0, %s4151_s0, %s4152_s15  }
  0xac   : > { %s4170_s2 = sld [smem:[#allocation41_spill]] }
  0xb2   : > { %s3051_s13 = scalar_lea.hbm %s4170_s2, 16 }
  0xb3   : > { %p3052_p7 = scmp.ne.s32.totalorder %s4170_s2, %s3051_s13  ;;  %p3058_p1 = scmp.lt.u32.totalorder %s3051_s13, %s4170_s2 }
  0xb5   : > { %p3054_p9 = pnand %p3052_p7, %p3520_p8 }
  0xb7   : > { %p3055_p4 = pneg %p3054_p9 }
  0xb9   : > { %p3060_p3 = pnand %p3058_p1, %p3055_p4 }
  0xbb   : > { %3063 = shalt.err (!%p3060_p3)
}
  0xbc   : > { %s3064_s16 = scalar_lea.vmem %s396_s17, 16  ;;  %s3071_s24 = scalar_lea.vmem %s396_s17, 32 }
  0xbd   : > { %p3065_p10 = scmp.ne.s32.totalorder %s396_s17, %s3064_s16  ;;  %p3072_p13 = scmp.lt.s32.totalorder %s396_s17, %s396_s17 }
  0xbe   : > { %p3073_p0 = scmp.lt.s32.totalorder %s3071_s24, %s3064_s16 }
  0xbf   : > { %p3067_p11 = pnand %p3065_p10, %p3520_p8 }
  0xc0   : > { %p3074_p2 = por %p3073_p0, %p3072_p13 }
  0xc1   : > { %p3068_p12 = pneg %p3067_p11 }
  0xc3   : > { %p3075_p5 = pnand %p3074_p2, %p3068_p12 }
  0xc5   : > { %3078 = shalt.err (!%p3075_p5)
}
  0xc6   : > { %2663 = dma.hbm_to_vmem [thread:$0]  (!%p3504_p6), %s4170_s2, 16, %s396_s17, [#allocation9]  }
  0xc7   : > { %s3366_s3 = smov [#allocation13]   ;;  %s3367_s14 = smov [#allocation16]  }
  0xc8   : > { %s419_s25 = sshll.u32 %s3366_s3, 4  ;;  %s443_s13 = sshll.u32 %s3367_s14, 4  ;;  %s420_s25 = int_to_ptr.vmem [resolvable:$true] %s419_s25  ;;  %s444_s13 = int_to_ptr.vmem [resolvable:$true] %s443_s13 }
  0xc9   : > { %s4171_s4 = sld [smem:[#allocation43_spill]] }
  0xcf   : > { %s3079_s1 = scalar_lea.hbm %s4171_s4, 16 }
  0xd0   : > { %p3080_p7 = scmp.ne.s32.totalorder %s4171_s4, %s3079_s1  ;;  %p3086_p1 = scmp.lt.u32.totalorder %s3079_s1, %s4171_s4 }
  0xd2   : > { %p3082_p9 = pnand %p3080_p7, %p3520_p8 }
  0xd4   : > { %p3083_p4 = pneg %p3082_p9 }
  0xd6   : > { %p3088_p3 = pnand %p3086_p1, %p3083_p4 }
  0xd8   : > { %3091 = shalt.err (!%p3088_p3)
}
  0xd9   : > { %s3092_s17 = scalar_lea.vmem %s420_s25, 16  ;;  %s3099_s20 = scalar_lea.vmem %s420_s25, 32 }
  0xda   : > { %p3093_p10 = scmp.ne.s32.totalorder %s420_s25, %s3092_s17  ;;  %p3100_p13 = scmp.lt.s32.totalorder %s420_s25, %s420_s25 }
  0xdb   : > { %p3101_p0 = scmp.lt.s32.totalorder %s3099_s20, %s3092_s17 }
  0xdc   : > { %p3095_p11 = pnand %p3093_p10, %p3520_p8 }
  0xdd   : > { %p3102_p2 = por %p3101_p0, %p3100_p13 }
  0xde   : > { %p3096_p12 = pneg %p3095_p11 }
  0xe0   : > { %p3103_p5 = pnand %p3102_p2, %p3096_p12 }
  0xe2   : > { %3106 = shalt.err (!%p3103_p5)
}
  0xe3   : > { %2669 = dma.hbm_to_vmem [thread:$0]  (!%p3504_p6), %s4171_s4, 16, %s420_s25, [#allocation12]  }
  0xe4   : > { %s3107_s1 = scalar_lea.hbm %s4134_s6, 16 }
  0xe5   : > { %p3108_p7 = scmp.ne.s32.totalorder %s4134_s6, %s3107_s1  ;;  %p3114_p1 = scmp.lt.u32.totalorder %s3107_s1, %s4134_s6 }
  0xe7   : > { %p3110_p9 = pnand %p3108_p7, %p3520_p8 }
  0xe9   : > { %p3111_p4 = pneg %p3110_p9 }
  0xeb   : > { %p3116_p3 = pnand %p3114_p1, %p3111_p4 }
  0xed   : > { %3119 = shalt.err (!%p3116_p3)
}
  0xee   : > { %s3120_s17 = scalar_lea.vmem %s444_s13, 16  ;;  %s3127_s25 = scalar_lea.vmem %s444_s13, 32 }
  0xef   : > { %p3121_p10 = scmp.ne.s32.totalorder %s444_s13, %s3120_s17  ;;  %p3128_p13 = scmp.lt.s32.totalorder %s444_s13, %s444_s13 }
  0xf0   : > { %p3129_p0 = scmp.lt.s32.totalorder %s3127_s25, %s3120_s17 }
  0xf1   : > { %p3123_p11 = pnand %p3121_p10, %p3520_p8 }
  0xf2   : > { %p3130_p2 = por %p3129_p0, %p3128_p13 }
  0xf3   : > { %p3124_p12 = pneg %p3123_p11 }
  0xf5   : > { %p3131_p5 = pnand %p3130_p2, %p3124_p12 }
  0xf7   : > { %3134 = shalt.err (!%p3131_p5)
}
  0xf8   : > { %2675 = dma.hbm_to_vmem [thread:$0]  (!%p3504_p6), %s4134_s6, 16, %s444_s13, [#allocation15]  }
  0xf9   : > { %s3368_s14 = smov [#allocation19]   ;;  %s3369_s28 = smov [#allocation22]  }
  0xfa   : > { %s465_s18 = sshll.u32 %s3368_s14, 4  ;;  %s493_s1 = sshll.u32 %s3369_s28, 4  ;;  %s466_s18 = int_to_ptr.vmem [resolvable:$true] %s465_s18  ;;  %s494_s1 = int_to_ptr.vmem [resolvable:$true] %s493_s1 }
  0xfb   : > { %s3135_s24 = scalar_lea.hbm %s4136_s8, 16 }
  0xfc   : > { %p3136_p7 = scmp.ne.s32.totalorder %s4136_s8, %s3135_s24  ;;  %p3142_p1 = scmp.lt.u32.totalorder %s3135_s24, %s4136_s8 }
  0xfe   : > { %p3138_p9 = pnand %p3136_p7, %p3520_p8 }
 0x100   : > { %p3139_p4 = pneg %p3138_p9 }
 0x102   : > { %p3144_p3 = pnand %p3142_p1, %p3139_p4 }
 0x104   : > { %3147 = shalt.err (!%p3144_p3)
}
 0x105   : > { %s3148_s13 = scalar_lea.vmem %s466_s18, 16  ;;  %s3155_s3 = scalar_lea.vmem %s466_s18, 32 }
 0x106   : > { %p3149_p10 = scmp.ne.s32.totalorder %s466_s18, %s3148_s13  ;;  %p3156_p13 = scmp.lt.s32.totalorder %s466_s18, %s466_s18 }
 0x107   : > { %p3157_p0 = scmp.lt.s32.totalorder %s3155_s3, %s3148_s13 }
 0x108   : > { %p3151_p11 = pnand %p3149_p10, %p3520_p8 }
 0x109   : > { %p3158_p2 = por %p3157_p0, %p3156_p13 }
 0x10a   : > { %p3152_p12 = pneg %p3151_p11 }
 0x10c   : > { %p3159_p5 = pnand %p3158_p2, %p3152_p12 }
 0x10e   : > { %3162 = shalt.err (!%p3159_p5)
}
 0x10f   : > { %2681 = dma.hbm_to_vmem [thread:$0]  (!%p3504_p6), %s4136_s8, 16, %s466_s18, [#allocation18]  }
 0x110   : > { %s3163_s24 = scalar_lea.hbm %s4138_s10, 16 }
 0x111   : > { %p3164_p7 = scmp.ne.s32.totalorder %s4138_s10, %s3163_s24  ;;  %p3170_p1 = scmp.lt.u32.totalorder %s3163_s24, %s4138_s10 }
 0x113   : > { %p3166_p9 = pnand %p3164_p7, %p3520_p8 }
 0x115   : > { %p3167_p4 = pneg %p3166_p9 }
 0x117   : > { %p3172_p3 = pnand %p3170_p1, %p3167_p4 }
 0x119   : > { %3175 = shalt.err (!%p3172_p3)
}
 0x11a   : > { %s3176_s13 = scalar_lea.vmem %s494_s1, 16  ;;  %s3183_s18 = scalar_lea.vmem %s494_s1, 32 }
 0x11b   : > { %p3177_p10 = scmp.ne.s32.totalorder %s494_s1, %s3176_s13  ;;  %p3184_p13 = scmp.lt.s32.totalorder %s494_s1, %s494_s1 }
 0x11c   : > { %p3185_p0 = scmp.lt.s32.totalorder %s3183_s18, %s3176_s13 }
 0x11d   : > { %p3179_p11 = pnand %p3177_p10, %p3520_p8 }
 0x11e   : > { %p3186_p2 = por %p3185_p0, %p3184_p13 }
 0x11f   : > { %p3180_p12 = pneg %p3179_p11 }
 0x121   : > { %p3187_p5 = pnand %p3186_p2, %p3180_p12 }
 0x123   : > { %3190 = shalt.err (!%p3187_p5)
}
 0x124   : > { %2687 = dma.hbm_to_vmem [thread:$0]  (!%p3504_p6), %s4138_s10, 16, %s494_s1, [#allocation21]  }
 0x125   : > { %s3370_s28 = smov [#allocation25]   ;;  %s3191_s22 = scalar_lea.hbm %s4140_s12, 16 }
 0x126   : > { %s520_s23 = sshll.u32 %s3370_s28, 4  ;;  %p3192_p7 = scmp.ne.s32.totalorder %s4140_s12, %s3191_s22  ;;  %s521_s23 = int_to_ptr.vmem [resolvable:$true] %s520_s23 }
 0x127   : > { %p3198_p1 = scmp.lt.u32.totalorder %s3191_s22, %s4140_s12 }
 0x128   : > { %p3194_p9 = pnand %p3192_p7, %p3520_p8 }
 0x12a   : > { %p3195_p4 = pneg %p3194_p9 }
 0x12c   : > { %p3200_p3 = pnand %p3198_p1, %p3195_p4 }
 0x12e   : > { %3203 = shalt.err (!%p3200_p3)
}
 0x12f   : > { %s3204_s1 = scalar_lea.vmem %s521_s23, 16  ;;  %s3211_s18 = scalar_lea.vmem %s521_s23, 32 }
 0x130   : > { %p3205_p10 = scmp.ne.s32.totalorder %s521_s23, %s3204_s1  ;;  %p3212_p13 = scmp.lt.s32.totalorder %s521_s23, %s521_s23 }
 0x131   : > { %p3213_p0 = scmp.lt.s32.totalorder %s3211_s18, %s3204_s1 }
 0x132   : > { %p3207_p11 = pnand %p3205_p10, %p3520_p8 }
 0x133   : > { %p3214_p2 = por %p3213_p0, %p3212_p13 }
 0x134   : > { %p3208_p12 = pneg %p3207_p11 }
 0x136   : > { %p3215_p5 = pnand %p3214_p2, %p3208_p12 }
 0x138   : > { %3218 = shalt.err (!%p3215_p5)
}
 0x139   : > { %s4172_s19 = sld [smem:[#allocation35_spill]]  ;;  %s4173_s28 = sld [smem:[#allocation37_spill]] }
 0x13a   : > { %2693 = dma.hbm_to_vmem [thread:$0]  (!%p3504_p6), %s4140_s12, 16, %s521_s23, [#allocation24]  }
 0x13b   : > { %s2309_s16 = sadd.s32 4294967294, %s3355_s30   ;;  %s47_s24 = sadd.s32 1, %s3351_s29 }
 0x13c   : > { %p49_p8 = scmp.ge.s32.totalorder %s47_s24, 2  ;;  %s54_s21 = sadd.s32 1, %s3343_s27 }
 0x13d   : > { %p61_p7 = scmp.ne.s32.totalorder %s3343_s27, %s3339_s26  ;;  %p62_p9 = scmp.eq.s32.totalorder %s3355_s30, 0 }
 0x13e   : > { %s4200_s24 = smov (%p49_p8, %s47_s24), 0  ;;  %s4175_s17 = sadd.s32 4294967295, %s3355_s30  }
 0x13f   : > { %p3760_p4 = por %p62_p9, %p61_p7  ;;  %p67_p1 = scmp.ne.s32.totalorder %s3339_s26, %s4172_s19 }
 0x140   : > { %s51_s23 = ssub.s32 %s3351_s29, %s4200_s24  ;;  %p358_p6 = scmp.eq.s32.totalorder %s4175_s17, 1 }
 0x141   : > { %p52_p3 = scmp.eq.s32.totalorder %s51_s23, 0  ;;  %p4176_p10 = scmp.ne.s32.totalorder %s4173_s28, 0 }
 0x142   : > { %p3776_p12 = por %p358_p6, %p61_p7  ;;  %p364_p13 = scmp.eq.s32.totalorder %s2309_s16, 1 }
 0x143   : > { %p3772_p11 = por %p4176_p10, %p67_p1  ;;  %p2714_p2 = scmp.lt.s32.totalorder %s3355_s30, 2 }
 0x144   : > { %s4178_s20 = scalar_select %p3776_p12, 1, 0 }
 0x145   : > { %s3781_s13 = scalar_select %p52_p3, %s3343_s27, %s54_s21  }
 0x146   : > { %p3783_p0 = por %p364_p13, %p67_p1  ;;  %s531_s18 = sand.u32 1, %s3343_s27  }
 0x147   : > { %s2602_s3 = smul.u32 192, %s3351_s29  ;;  %p3792_p5 = pnand %p2714_p2, %p3760_p4 }
 0x148   : > { %s4179_s1 = scalar_select %p3783_p0, 1, 0 }
 0x149   : > { %s2601_s14 = smul.u32 12, %s531_s18  ;;  %s4181_s17 = sld [smem:[#allocation39_spill]] }
 0x14a   : > { %s3803_s22 = scalar_lea.sflag [#allocation6], %s531_s18  ;;  %p3221_p7 = pneg %p3792_p5 }
 0x14b   : > { %s535_s21 = scalar_lea.vmem [#allocation5], %s2601_s14 }
 0x14c   : > { %s542_s0 = sshll.u32 %s535_s21, 4  ;;  %s3801_s0 = int_to_ptr.vmem [resolvable:$true] %s542_s0 }
 0x14f   : > { %s3799_s16 = scalar_lea.hbm %s4181_s17, %s2602_s3  ;;  %s3224_s23 = scalar_lea.hbm %s4181_s17, 384 }
 0x150   : > { %s3219_s15 = scalar_lea.hbm %s3799_s16, 192  ;;  %p3225_p1 = scmp.lt.u32.totalorder %s3799_s16, %s4181_s17 }
 0x151   : > { %p3220_p8 = scmp.ne.s32.totalorder %s3799_s16, %s3219_s15  ;;  %p3226_p6 = scmp.lt.u32.totalorder %s3224_s23, %s3219_s15 }
 0x152   : > { %p3228_p10 = scmp.lt.u32.totalorder %s3219_s15, %s3799_s16 }
 0x153   : > { %p3222_p9 = pnand %p3221_p7, %p3220_p8  ;;  %p3227_p3 = por %p3226_p6, %p3225_p1 }
 0x155   : > { %p3223_p4 = pneg %p3222_p9  ;;  %p3229_p13 = por %p3228_p10, %p3227_p3 }
 0x157   : > { %p3230_p2 = pnand %p3229_p13, %p3223_p4 }
 0x159   : > { %3233 = shalt.err (!%p3230_p2)
}
 0x15a   : > { %s3234_s18 = scalar_lea.vmem %s3801_s0, 192  ;;  %s3371_s14 = smov [#allocation5]  }
 0x15b   : > { %p3235_p8 = scmp.ne.s32.totalorder %s3801_s0, %s3234_s18  ;;  %s3239_s21 = sshll.u32 %s3371_s14, 4  ;;  %s3240_s21 = int_to_ptr.vmem [resolvable:$false] %s3239_s21 }
 0x15c   : > { %s3241_s2 = scalar_lea.vmem %s3240_s21, 384  ;;  %p3242_p12 = scmp.lt.s32.totalorder %s3801_s0, %s3240_s21 }
 0x15d   : > { %p3237_p9 = pnand %p3235_p8, %p3221_p7  ;;  %p3243_p1 = scmp.lt.s32.totalorder %s3241_s2, %s3234_s18 }
 0x15f   : > { %p3238_p0 = pneg %p3237_p9  ;;  %p3244_p6 = por %p3243_p1, %p3242_p12 }
 0x161   : > { %p3245_p3 = pnand %p3244_p6, %p3238_p0 }
 0x163   : > { %3248 = shalt.err (!%p3245_p3)
}
 0x164   : > { %s4182_s4 = smov 4   ;;  %s4183_s15 = smov 64  }
 0x165   : > { %2697 = dma.hbm_to_vmem [thread:$0]  (!%p3792_p5), %s3799_s16, 192, %s3801_s0, %s3803_s22, %s4183_s15, %s4183_s15, %s4182_s4  }
 0x166   : > { %s4184_s3 = sld [smem:[#allocation38_spill]] }
 0x16c   : > { %p4185_p7 = scmp.ne.s32.totalorder %s4184_s3, 0 }
 0x16d   : > { %s3837_s28 = sand.u32 (!%p4185_p7), 1, %s3339_s26  }
 0x16e   : > { %554 = sbr.rel (%p4185_p7) target bundleno = 3868 (0xf1c), region = 72  ;;  %s557_s18 = scalar_lea.sflag (!%p4185_p7), [#allocation6], %s3837_s28 }
 0x16f   : > { %s2603_s23 = smul.u32 (!%p4185_p7), 12, %s3837_s28 }
 0x171   : > { %s560_s19 = scalar_lea.vmem (!%p4185_p7), [#allocation5], %s2603_s23 }
 0x175   : > { %3302 = dma.done.wait (%p3772_p11), %s557_s18, 192  }
 0x176   : > { %3304 = vsyncadd (%p3772_p11), %s557_s18, 4294967104  ;;  %s4186_s0 = sld [smem:[#allocation37_spill]] }
 0x17c   : > { %p4187_p12 = scmp.ne.s32.totalorder %s4186_s0, 0 }
 0x17e   : > { %3306 = dma.done.wait (%p4187_p12), [#allocation9], 32  }
 0x17f   : > { %3308 = vsyncadd (%p4187_p12), [#allocation9], 4294967264 }
 0x180   : > { %3310 = dma.done.wait (%p4187_p12), [#allocation12], 272  }
 0x181   : > { %3312 = vsyncadd (%p4187_p12), [#allocation12], 4294967024 }
 0x182   : > { %3314 = dma.done.wait (%p4187_p12), [#allocation15], 272  }
 0x183   : > { %3316 = vsyncadd (%p4187_p12), [#allocation15], 4294967024 }
 0x184   : > { %3318 = dma.done.wait (%p4187_p12), [#allocation18], 32  }
 0x185   : > { %3320 = vsyncadd (%p4187_p12), [#allocation18], 4294967264 }
 0x186   : > { %3322 = dma.done.wait (%p4187_p12), [#allocation21], 272  }
 0x187   : > { %3324 = vsyncadd (%p4187_p12), [#allocation21], 4294967024 }
 0x188   : > { %3326 = dma.done.wait (%p4187_p12), [#allocation24], 1040  }
 0x189   : > { %3328 = vsyncadd (%p4187_p12), [#allocation24], 4294966256  ;;  %v2396_v0 = vld [vmem:[%s560_s19] sm:$0xff]   ;;  %vm663_vm0 = vcmask 261120   ;;  %v659_v1 = vld [vmem:[%s560_s19 + $0x8] sm:$0xf]  ;;  %v706_v32 = vlaneseq }
 0x18a   : > { %v3871_v2 = vunpack.c.l.bf16 %v2396_v0  ;;  %v3873_v3 = vunpack.c.l.bf16 %v659_v1  ;;  %v3875_v4 = vunpack.c.h.bf16 %v2396_v0  ;;  %v2803_v23 = vld [vmem:[#allocation11] sm:$0xff]   ;;  %v2804_v24 = vld [vmem:[#allocation11 + $0x8] sm:$0xff]   ;;  %v704_v36 = vld [vmem:[#allocation8] sm:$0x1]  ;;  %s3372_s25 = smov 96   ;;  %vm812_vm1 = vcmask 64512  }
 0x18b   : > { %2461 = vmatprep.subr.bf16.mxu0 %v2803_v23  ;;  %v707_v35 = vshrl.u32 %v706_v32, 7  ;;  %v705_v37 = vunpack.c.l.bf16 %v704_v36  ;;  %v713_v39 = vld [vmem:[#allocation10] sm:$0x1]  ;;  %v728_v57 = vld [vmem:[#allocation13] sm:$0x1]  ;;  %s3373_s16 = smov 88  }
 0x18c   : > { %v664_v5 = vsel %vm663_vm0, %v3871_v2, 0.0  ;;  %v670_v6 = vsel %vm663_vm0, %v3873_v3, 0.0  ;;  %v667_v7 = vsel %vm663_vm0, %v3875_v4, 0.0  ;;  %2462 = vmatpush3.bf16.msra.mxu0 %v2803_v23  ;;  %v714_v43 = vunpack.c.l.bf16 %v713_v39  ;;  %s3374_s22 = smov 120   ;;  %s3376_s14 = smov 56  }
 0x18d   : > { %665 = vadd.xlane.f32.xlu0 %v664_v5  ;;  %671 = vadd.xlane.f32.xlu1 %v670_v6  ;;  %v3890_v38 = vsub.s32 0, %v707_v35  ;;  %v729_v58 = vunpack.c.l.bf16 %v728_v57  ;;  %v803_v23 = vand.u32 127, %v706_v32  ;;  %vm879_vm3 = vcmask 195584   ;;  %s3377_s21 = smov 80   ;;  %s3378_s2 = smov 112  }
 0x18e   : > { %2463 = vmatprep.subr.bf16.mxu0 %v2804_v24  ;;  %vm926_vm4 = vcmask 1043456   ;;  %s3379_s4 = smov 64   ;;  %s3380_s15 = smov 72   ;;  %vm1822_vm5 = vcmask 257024  }
 0x18f   : > { %v709_v42 = vrot.slane %v705_v37, %v3890_v38  ;;  %v718_v49 = vrot.slane %v714_v43, %v3890_v38  ;;  %v733_v59 = vrot.slane %v729_v58, %v3890_v38  ;;  %vm804_vm2 = vcmp.ge.s32.totalorder %v803_v23, 17  ;;  %s3381_s3 = smov 104   ;;  %s3382_s18 = smov 48  }
 0x190   : > { %2464 = vmatpush3.bf16.msra.mxu0 %v2804_v24  ;;  %s3383_s19 = smov 40   ;;  %s4188_s0 = sld [smem:[#allocation36_spill]] }
 0x191   : > { %668 = vadd.xlane.f32.xlu0 %v667_v7  ;;  %p4190_p0 = scmp.ne.s32.totalorder %s4178_s20, 0 }
 0x21a   : > { %v666_v8 = vpop.xlane.xlu0 %665  ;;  %v672_v9 = vpop.xlane.xlu1 %671 }
 0x21b   : > { %v674_v10 = vmul.f32 0.03125, %v666_v8  ;;  %v676_v11 = vmul.f32 0.03125, %v672_v9 }
 0x21d   : > { %v677_v12 = vsub.f32 %v3871_v2, %v674_v10  ;;  %v679_v13 = vsub.f32 %v3873_v3, %v676_v11 }
 0x21e   : > { %v669_v14 = vpop.xlane.xlu0 %668 }
 0x21f   : > { %v675_v15 = vmul.f32 0.03125, %v669_v14  ;;  %v680_v16 = vmul.f32 %v677_v12, %v677_v12  ;;  %v682_v17 = vmul.f32 %v679_v13, %v679_v13 }
 0x221   : > { %v678_v18 = vsub.f32 %v3875_v4, %v675_v15  ;;  %v683_v19 = vsel %vm663_vm0, %v680_v16, 0.0  ;;  %v689_v20 = vsel %vm663_vm0, %v682_v17, 0.0 }
 0x222   : > { %684 = vadd.xlane.f32.xlu1 %v683_v19 }
 0x223   : > { %v681_v21 = vmul.f32 %v678_v18, %v678_v18 }
 0x225   : > { %v686_v22 = vsel %vm663_vm0, %v681_v21, 0.0 }
 0x226   : > { %690 = vadd.xlane.f32.xlu1 %v689_v20  ;;  %687 = vadd.xlane.f32.xlu0 %v686_v22 }
 0x2af   : > { %v685_v25 = vpop.xlane.xlu1 %684 }
 0x2b0   : > { %v692_v26 = vmul.f32 0.03125, %v685_v25 }
 0x2b2   : > { %v695_v27 = vadd.f32 1e-05, %v692_v26 }
 0x2b3   : > { %v691_v28 = vpop.xlane.xlu1 %690  ;;  %v688_v29 = vpop.xlane.xlu0 %687 }
 0x2b4   : > { %2817 = vrsqrt.f32 %v695_v27  ;;  %v694_v30 = vmul.f32 0.03125, %v691_v28  ;;  %v693_v31 = vmul.f32 0.03125, %v688_v29 }
 0x2b6   : > { %v697_v33 = vadd.f32 1e-05, %v694_v30  ;;  %v696_v34 = vadd.f32 1e-05, %v693_v31 }
 0x2b8   : > { %2819 = vrsqrt.f32 %v697_v33 }
 0x2b9   : > { %2821 = vrsqrt.f32 %v696_v34 }
 0x2be   : > { %v2818_v40 = vpop.eup %2817 }
 0x2bf   : > { %v701_v41 = vmul.f32 %v2818_v40, %v677_v12 }
 0x2c1   : > { %v710_v48 = vmul.f32 %v709_v42, %v701_v41 }
 0x2c2   : > { %v2820_v44 = vpop.eup %2819 }
 0x2c3   : > { %v2822_v45 = vpop.eup %2821  ;;  %v703_v46 = vmul.f32 %v2820_v44, %v679_v13  ;;  %v719_v53 = vadd.f32 %v718_v49, %v710_v48 }
 0x2c4   : > { %v702_v47 = vmul.f32 %v2822_v45, %v678_v18  ;;  %v3375_v18 = vmov 0.0  }
 0x2c5   : > { %v712_v50 = vmul.f32 %v709_v42, %v703_v46  ;;  %1826 = vst.msk [vmem:[#allocation4] sm:$0xff] %vm663_vm0, %v3375_v18  ;;  %1827 = vst.msk [vmem:[#allocation4 + $0x8] sm:$0xff] %vm663_vm0, %v3375_v18  ;;  %v3925_v30 = vsel %vm804_vm2, -1e+30, %v3375_v18 }
 0x2c6   : > { %v711_v51 = vmul.f32 %v709_v42, %v702_v47  ;;  %1828 = vst.msk [vmem:[#allocation4 + $0x10] sm:$0xff] %vm663_vm0, %v3375_v18 }
 0x2c7   : > { %v721_v52 = vadd.f32 %v718_v49, %v712_v50 }
 0x2c8   : > { %v720_v54 = vadd.f32 %v718_v49, %v711_v51 }
 0x2c9   : > { %v723_v55 = vpack.c.bf16 %v721_v52, %v721_v52 }
 0x2ca   : > { %v722_v56 = vpack.c.bf16 %v720_v54, %v719_v53 }
 0x2cc   : > { %2465 = vmatprep.mubr.msk.bf16.mxu0 %vm663_vm0, %v722_v56 }
 0x2cd   : > { %2466 = vmatmul.mubr.msk.bf16.vlgmr.msra.gmra.mrb[0].mxu0 %vm663_vm0, %v723_v55 }
 0x3a0   : > { %v2467_v60 = vpop.f32.mrb[0].mxu0 }
 0x3a1   : > { %v795_v61 = vadd.f32 %v2467_v60, %v733_v59  ;;  %v786_v62 = vpop.f32.mrb[1].mxu0 }
 0x3a2   : > { %v2468_v63 = vpop.f32.mrb[2].mxu0  ;;  %v787_v5 = vadd.f32 %v786_v62, %v733_v59 }
 0x3a3   : > { %v3897_v0 = vpack.c.bf16 %v795_v61, %v795_v61  ;;  %v789_v1 = vpop.f32.mrb[3].mxu0 }
 0x3a4   : > { %v790_v6 = vadd.f32 %v789_v1, %v733_v59 }
 0x3a5   : > { %810 = vrot.lane.b32.xlu1 %v3897_v0, %s3372_s25 }
 0x3a6   : > { %v3900_v7 = vpack.c.bf16 %v790_v6, %v787_v5 }
 0x3a8   : > { %808 = vrot.lane.b32.xlu0 %v3900_v7, %s3372_s25  ;;  %2473 = vmatprep.mubr.msk.bf16.mxu1 %vm812_vm1, %v3900_v7  ;;  %s2604_s25 = smul.u32 192, %s4188_s0 }
 0x3a9   : > { %985 = vrot.lane.b32.xlu1 %v3900_v7, %s3373_s16 }
 0x3ac   : > { %981 = vrot.lane.b32.xlu0 %v3900_v7, %s3374_s22 }
 0x3ad   : > { %987 = vrot.lane.b32.xlu1 %v3897_v0, %s3373_s16  ;;  %s650_s16 = scalar_lea.vmem [#allocation26], %s2603_s23  ;;  %s2094_s23 = scalar_lea.sflag [#allocation7], %s3837_s28 }
 0x3b1   : > { %983 = vrot.lane.b32.xlu1 %v3897_v0, %s3374_s22  ;;  %s2107_s22 = sshll.u32 %s650_s16, 4  ;;  %s4076_s22 = int_to_ptr.vmem [resolvable:$true] %s2107_s22 }
 0x417   : > { %v811_v10 = vpop.permute.xlu1 %810 }
 0x418   : > { %v823_v11 = vsel %vm812_vm1, %v811_v10, 0 }
 0x41a   : > { %v809_v8 = vpop.permute.xlu0 %808 }
 0x41b   : > { %2585 = vmatprep.subr.msk.bf16.mxu1 %vm812_vm1, %v809_v8  ;;  %v820_v9 = vsel %vm812_vm1, %v809_v8, 0  ;;  %v986_v12 = vpop.permute.xlu1 %985 }
 0x41c   : > { %2470 = vmatpush3.bf16.xpose.msra.mxu1 %v820_v9  ;;  %v996_v13 = vsel %vm812_vm1, %v986_v12, 0  ;;  %v1154_v9 = vld [vmem:[#allocation14 + $0x4] sm:$0xf] }
 0x41d   : > { %2586 = vmatprep.subr.msk.bf16.mxu1 %vm812_vm1, %v811_v10 }
 0x41e   : > { %v982_v14 = vpop.permute.xlu0 %981 }
 0x41f   : > { %v988_v15 = vpop.permute.xlu1 %987 }
 0x420   : > { %v999_v16 = vsel %vm812_vm1, %v988_v15, 0 }
 0x423   : > { %v984_v17 = vpop.permute.xlu1 %983 }
 0x424   : > { %2472 = vmatpush3.bf16.xpose.msra.mxu1 %v823_v11 }
 0x425   : > { %2588 = vmatprep.subr.msk.bf16.mxu1 %vm812_vm1, %v986_v12 }
 0x42b   : > { %2474 = vmatmul.mubr.msk.bf16.vlgmr.msra.gmra.mrb[0].mxu1 %vm812_vm1, %v3897_v0 }
 0x42c   : > { %2486 = vmatpush3.bf16.xpose.msra.mxu1 %v996_v13  ;;  %2489 = vmatprep.mubr.msk.bf16.mxu1 %vm812_vm1, %v982_v14 }
 0x42d   : > { %2589 = vmatprep.subr.msk.bf16.mxu1 %vm812_vm1, %v988_v15 }
 0x434   : > { %2488 = vmatpush3.bf16.xpose.msra.mxu1 %v999_v16 }
 0x43b   : > { %2490 = vmatmul.mubr.msk.bf16.vlgmr.msra.gmra.mrb[4].mxu1 %vm812_vm1, %v984_v17 }
 0x4fe   : > { %v2475_v19 = vpop.f32.mrb[0].mxu1 }
 0x4ff   : > { %v859_v20 = vpop.f32.mrb[1].mxu1  ;;  %v875_v55 = vmul.f32 0.35355338, %v2475_v19  ;;  %v1162_v19 = vsel %vm926_vm4, %v1154_v9, 0 }
 0x500   : > { %v2476_v21 = vpop.f32.mrb[2].mxu1  ;;  %v873_v54 = vmul.f32 0.35355338, %v859_v20 }
 0x501   : > { %v862_v22 = vpop.f32.mrb[3].mxu1  ;;  %v878_v59 = vadd.f32 %v875_v55, %v3925_v30 }
 0x502   : > { %v876_v56 = vadd.f32 %v873_v54, %v3925_v30  ;;  %v874_v57 = vmul.f32 0.35355338, %v862_v22 }
 0x503   : > { %v886_v60 = vsel %vm879_vm3, %v878_v59, -inf }
 0x504   : > { %v880_v58 = vsel %vm879_vm3, %v876_v56, -inf  ;;  %v877_v61 = vadd.f32 %v874_v57, %v3925_v30 }
 0x506   : > { %v883_v62 = vsel %vm879_vm3, %v877_v61, -inf }
 0x50e   : > { %v2491_v24 = vpop.f32.mrb[4].mxu1 }
 0x50f   : > { %v1035_v25 = vpop.f32.mrb[5].mxu1  ;;  %v1051_v26 = vmul.f32 0.35355338, %v2491_v24 }
 0x510   : > { %v1049_v27 = vmul.f32 0.35355338, %v1035_v25  ;;  %v2492_v28 = vpop.f32.mrb[6].mxu1 }
 0x511   : > { %v1038_v29 = vpop.f32.mrb[7].mxu1  ;;  %v1054_v36 = vadd.f32 %v1051_v26, %v3925_v30 }
 0x512   : > { %v1050_v31 = vmul.f32 0.35355338, %v1038_v29  ;;  %v1052_v33 = vadd.f32 %v1049_v27, %v3925_v30 }
 0x513   : > { %v1061_v37 = vsel %vm879_vm3, %v1054_v36, -inf }
 0x514   : > { %v1055_v34 = vsel %vm879_vm3, %v1052_v33, -inf  ;;  %v1053_v35 = vadd.f32 %v1050_v31, %v3925_v30 }
 0x515   : > { %1056 = vmax.xlane.f32.xlu0 %v1055_v34 }
 0x516   : > { %v1058_v32 = vsel %vm879_vm3, %v1053_v35, -inf }
 0x517   : > { %1059 = vmax.xlane.f32.xlu1 %v1058_v32 }
 0x519   : > { %1062 = vmax.xlane.f32.xlu0 %v1061_v37 }
 0x5a2   : > { %v1057_v39 = vpop.xlane.xlu0 %1056 }
 0x5a3   : > { %v1064_v40 = vsub.f32 %v1052_v33, %v1057_v39 }
 0x5a4   : > { %v1060_v41 = vpop.xlane.xlu1 %1059 }
 0x5a5   : > { %v1067_v42 = vmul.f32 1.442695, %v1064_v40  ;;  %v1065_v43 = vsub.f32 %v1053_v35, %v1060_v41 }
 0x5a6   : > { %v1063_v44 = vpop.xlane.xlu0 %1062 }
 0x5a7   : > { %2823 = vpow2.f32 %v1067_v42  ;;  %v1069_v45 = vmul.f32 1.442695, %v1065_v43  ;;  %v1066_v46 = vsub.f32 %v1054_v36, %v1063_v44 }
 0x5a9   : > { %2825 = vpow2.f32 %v1069_v45  ;;  %v1071_v47 = vmul.f32 1.442695, %v1066_v46 }
 0x5ab   : > { %2827 = vpow2.f32 %v1071_v47 }
 0x5b1   : > { %v2824_v48 = vpop.eup %2823 }
 0x5b2   : > { %v1073_v49 = vsel %vm879_vm3, %v2824_v48, 0.0 }
 0x5b3   : > { %v2826_v50 = vpop.eup %2825  ;;  %1074 = vadd.xlane.f32.xlu0 %v1073_v49 }
 0x5b4   : > { %v1076_v53 = vsel %vm879_vm3, %v2826_v50, 0.0 }
 0x5b5   : > { %v2828_v51 = vpop.eup %2827 }
 0x5b6   : > { %v1079_v52 = vsel %vm879_vm3, %v2828_v51, 0.0 }
 0x5b7   : > { %1080 = vadd.xlane.f32.xlu1 %v1079_v52  ;;  %1077 = vadd.xlane.f32.xlu0 %v1076_v53 }
 0x5c8   : > { %1092 = vrot.lane.b32.xlu1 %v3897_v0, %s3376_s14 }
 0x5cc   : > { %1273 = vrot.lane.b32.xlu1 %v3900_v7, %s3377_s21 }
 0x5cd   : > { %1090 = vrot.lane.b32.xlu0 %v3900_v7, %s3376_s14 }
 0x5d0   : > { %1275 = vrot.lane.b32.xlu1 %v3897_v0, %s3377_s21 }
 0x5d1   : > { %1269 = vrot.lane.b32.xlu0 %v3900_v7, %s3378_s2 }
 0x5d4   : > { %1271 = vrot.lane.b32.xlu1 %v3897_v0, %s3378_s2  ;;  %s4189_s2 = sld [smem:[#allocation44_spill]] }
 0x5f0   : > { %881 = vmax.xlane.f32.xlu0 %v880_v58 }
 0x5f4   : > { %887 = vmax.xlane.f32.xlu0 %v886_v60 }
 0x5f8   : > { %884 = vmax.xlane.f32.xlu1 %v883_v62 }
 0x640   : > { %v1075_v63 = vpop.xlane.xlu0 %1074 }
 0x641   : > { %2829 = vrcp.f32 %v1075_v63 }
 0x644   : > { %v1078_v1 = vpop.xlane.xlu0 %1077  ;;  %v1081_v5 = vpop.xlane.xlu1 %1080 }
 0x645   : > { %2831 = vrcp.f32 %v1078_v1 }
 0x646   : > { %2833 = vrcp.f32 %v1081_v5 }
 0x648   : > { %v1091_v6 = vpop.permute.xlu0 %1090  ;;  %v1093_v8 = vpop.permute.xlu1 %1092 }
 0x649   : > { %2493 = vmatprep.subr.bf16.mxu1 %v1091_v6  ;;  %v1102_v11 = vsel %vm926_vm4, %v1093_v8, 0 }
 0x64a   : > { %2494 = vmatpush3.bf16.msra.mxu1 %v1091_v6 }
 0x64b   : > { %2590 = vmatprep.subr.msk.bf16.mxu1 %vm926_vm4, %v1093_v8  ;;  %v2830_v10 = vpop.eup %2829 }
 0x64c   : > { %v1085_v14 = vmul.f32 %v2830_v10, %v2824_v48  ;;  %v1274_v20 = vpop.permute.xlu1 %1273  ;;  %v1270_v21 = vpop.permute.xlu0 %1269  ;;  %v980_v10 = vld [vmem:[#allocation14] sm:$0xf] }
 0x64d   : > { %v1284_v57 = vsel %vm812_vm1, %v1274_v20, 0 }
 0x64e   : > { %2496 = vmatpush3.bf16.msra.mxu1 %v1102_v11  ;;  %v1219_v11 = vsel %vm926_vm4, %v980_v10, 0 }
 0x64f   : > { %v2832_v12 = vpop.eup %2831  ;;  %2591 = vmatprep.subr.msk.bf16.mxu1 %vm926_vm4, %v1154_v9 }
 0x650   : > { %v2834_v13 = vpop.eup %2833  ;;  %v1086_v15 = vmul.f32 %v2832_v12, %v2826_v50  ;;  %v3955_v22 = vpop.permute.xlu1 %1275 }
 0x651   : > { %v1087_v16 = vmul.f32 %v2834_v13, %v2828_v51  ;;  %v1287_v62 = vsel %vm812_vm1, %v3955_v22, 0 }
 0x652   : > { %v1088_v17 = vpack.c.bf16 %v1086_v15, %v1085_v14 }
 0x653   : > { %v1089_v18 = vpack.c.bf16 %v1087_v16, %v1087_v16 }
 0x654   : > { %2497 = vmatprep.mubr.msk.bf16.mxu1 %vm879_vm3, %v1088_v17  ;;  %v3957_v26 = vpop.permute.xlu1 %1271 }
 0x655   : > { %2498 = vmatmul.mubr.msk.bf16.vlgmr.msra.gmra.mrb[8].mxu1 %vm879_vm3, %v1089_v18 }
 0x656   : > { %2502 = vmatpush3.bf16.msra.mxu1 %v1162_v19 }
 0x657   : > { %2593 = vmatprep.subr.msk.bf16.mxu1 %vm812_vm1, %v1274_v20 }
 0x67d   : > { %v882_v23 = vpop.xlane.xlu0 %881 }
 0x67e   : > { %v889_v24 = vsub.f32 %v876_v56, %v882_v23 }
 0x680   : > { %v892_v25 = vmul.f32 1.442695, %v889_v24 }
 0x681   : > { %v888_v27 = vpop.xlane.xlu0 %887 }
 0x682   : > { %2835 = vpow2.f32 %v892_v25  ;;  %v891_v28 = vsub.f32 %v878_v59, %v888_v27 }
 0x684   : > { %v896_v29 = vmul.f32 1.442695, %v891_v28 }
 0x685   : > { %v885_v31 = vpop.xlane.xlu1 %884 }
 0x686   : > { %2837 = vpow2.f32 %v896_v29  ;;  %v890_v33 = vsub.f32 %v877_v61, %v885_v31 }
 0x688   : > { %v894_v34 = vmul.f32 1.442695, %v890_v33 }
 0x68a   : > { %2839 = vpow2.f32 %v894_v34 }
 0x68c   : > { %v2836_v35 = vpop.eup %2835 }
 0x68d   : > { %v898_v36 = vsel %vm879_vm3, %v2836_v35, 0.0 }
 0x68e   : > { %899 = vadd.xlane.f32.xlu0 %v898_v36 }
 0x690   : > { %v2838_v32 = vpop.eup %2837 }
 0x691   : > { %v904_v37 = vsel %vm879_vm3, %v2838_v32, 0.0 }
 0x692   : > { %905 = vadd.xlane.f32.xlu1 %v904_v37 }
 0x694   : > { %v2840_v39 = vpop.eup %2839 }
 0x695   : > { %v901_v40 = vsel %vm879_vm3, %v2840_v39, 0.0 }
 0x696   : > { %902 = vadd.xlane.f32.xlu0 %v901_v40 }
 0x6a3   : > { %917 = vrot.lane.b32.xlu1 %v3897_v0, %s3379_s4 }
 0x6a7   : > { %1507 = vrot.lane.b32.xlu1 %v3900_v7, %s3380_s15 }
 0x6ab   : > { %1509 = vrot.lane.b32.xlu1 %v3897_v0, %s3380_s15  ;;  %s4073_s15 = scalar_lea.hbm %s4189_s2, %s2604_s25 }
 0x6ac   : > { %915 = vrot.lane.b32.xlu0 %v3900_v7, %s3379_s4 }
 0x6af   : > { %1505 = vrot.lane.b32.xlu1 %v3897_v0, %s3381_s3 }
 0x6b0   : > { %1503 = vrot.lane.b32.xlu0 %v3900_v7, %s3381_s3  ;;  %s3249_s3 = scalar_lea.vmem %s4076_s22, 192 }
 0x6b1   : > { %p3250_p11 = scmp.ne.s32.totalorder %s4076_s22, %s3249_s3 }
 0x6b3   : > { %p3251_p5 = pnand %p3250_p11, %p4190_p0 }
 0x6b5   : > { %p3252_p4 = pneg %p3251_p5 }
 0x71b   : > { %v900_v41 = vpop.xlane.xlu0 %899 }
 0x71f   : > { %v906_v42 = vpop.xlane.xlu1 %905 }
 0x720   : > { %2841 = vrcp.f32 %v906_v42 }
 0x721   : > { %2843 = vrcp.f32 %v900_v41 }
 0x723   : > { %v903_v43 = vpop.xlane.xlu0 %902  ;;  %v918_v46 = vpop.permute.xlu1 %917 }
 0x724   : > { %2845 = vrcp.f32 %v903_v43  ;;  %v928_v52 = vsel %vm926_vm4, %v918_v46, 0 }
 0x727   : > { %v916_v44 = vpop.permute.xlu0 %915  ;;  %v1508_v63 = vpop.permute.xlu1 %1507 }
 0x728   : > { %2477 = vmatprep.subr.bf16.mxu0 %v916_v44  ;;  %v2499_v45 = vpop.f32.mrb[8].mxu1  ;;  %v1518_v1 = vsel %vm812_vm1, %v1508_v63, 0 }
 0x729   : > { %2478 = vmatpush3.bf16.msra.mxu0 %v916_v44  ;;  %v1138_v47 = vpop.f32.mrb[9].mxu1  ;;  %v1153_v54 = vpack.c.bf16 %v2499_v45, %v2499_v45 }
 0x72a   : > { %2587 = vmatprep.subr.msk.bf16.mxu0 %vm926_vm4, %v918_v46  ;;  %v2500_v48 = vpop.f32.mrb[10].mxu1  ;;  %v2842_v49 = vpop.eup %2841 }
 0x72b   : > { %v1141_v50 = vpop.f32.mrb[11].mxu1  ;;  %v2844_v51 = vpop.eup %2843  ;;  %v912_v56 = vmul.f32 %v2842_v49, %v2838_v32 }
 0x72c   : > { %v1152_v53 = vpack.c.bf16 %v1141_v50, %v1138_v47  ;;  %v910_v58 = vmul.f32 %v2844_v51, %v2836_v35  ;;  %v1504_v5 = vpop.permute.xlu0 %1503  ;;  %v1510_v6 = vpop.permute.xlu1 %1509 }
 0x72d   : > { %2480 = vmatpush3.bf16.msra.mxu0 %v928_v52  ;;  %v914_v61 = vpack.c.bf16 %v912_v56, %v912_v56  ;;  %v1521_v8 = vsel %vm812_vm1, %v1510_v6, 0 }
 0x72e   : > { %v2846_v55 = vpop.eup %2845  ;;  %2503 = vmatprep.mubr.msk.bf16.mxu1 %vm812_vm1, %v1152_v53  ;;  %2592 = vmatprep.subr.msk.bf16.mxu0 %vm926_vm4, %v980_v10 }
 0x72f   : > { %2504 = vmatmul.mubr.msk.bf16.vlgmr.msra.gmra.mrb[12].mxu1 %vm812_vm1, %v1153_v54  ;;  %v911_v59 = vmul.f32 %v2846_v55, %v2840_v39 }
 0x730   : > { %2514 = vmatpush3.bf16.xpose.msra.mxu1 %v1284_v57  ;;  %2517 = vmatprep.mubr.msk.bf16.mxu1 %vm812_vm1, %v1270_v21  ;;  %v1506_v9 = vpop.permute.xlu1 %1505 }
 0x731   : > { %2594 = vmatprep.subr.msk.bf16.mxu1 %vm812_vm1, %v3955_v22  ;;  %v913_v60 = vpack.c.bf16 %v911_v59, %v910_v58 }
 0x733   : > { %2481 = vmatprep.mubr.msk.bf16.mxu0 %vm879_vm3, %v913_v60 }
 0x734   : > { %2482 = vmatmul.mubr.msk.bf16.vlgmr.msra.gmra.mrb[4].mxu0 %vm879_vm3, %v914_v61 }
 0x735   : > { %2508 = vmatpush3.bf16.msra.mxu0 %v1219_v11 }
 0x738   : > { %2516 = vmatpush3.bf16.xpose.msra.mxu1 %v1287_v62 }
 0x739   : > { %2597 = vmatprep.subr.msk.bf16.mxu1 %vm812_vm1, %v1508_v63 }
 0x73f   : > { %2518 = vmatmul.mubr.msk.bf16.vlgmr.msra.gmra.mrb[16].mxu1 %vm812_vm1, %v3957_v26 }
 0x740   : > { %2536 = vmatpush3.bf16.xpose.msra.mxu1 %v1518_v1  ;;  %2539 = vmatprep.mubr.msk.bf16.mxu1 %vm812_vm1, %v1504_v5 }
 0x741   : > { %2598 = vmatprep.subr.msk.bf16.mxu1 %vm812_vm1, %v1510_v6 }
 0x748   : > { %2538 = vmatpush3.bf16.xpose.msra.mxu1 %v1521_v8 }
 0x74f   : > { %2540 = vmatmul.mubr.msk.bf16.vlgmr.msra.gmra.mrb[20].mxu1 %vm812_vm1, %v1506_v9 }
 0x802   : > { %v2505_v12 = vpop.f32.mrb[12].mxu1 }
 0x803   : > { %v1198_v13 = vpop.f32.mrb[13].mxu1 }
 0x804   : > { %v2506_v14 = vpop.f32.mrb[14].mxu1 }
 0x805   : > { %v1201_v15 = vpop.f32.mrb[15].mxu1 }
 0x807   : > { %v2483_v16 = vpop.f32.mrb[4].mxu0 }
 0x808   : > { %v964_v17 = vpop.f32.mrb[5].mxu0  ;;  %v979_v21 = vpack.c.bf16 %v2483_v16, %v2483_v16 }
 0x809   : > { %v2484_v18 = vpop.f32.mrb[6].mxu0 }
 0x80a   : > { %v967_v19 = vpop.f32.mrb[7].mxu0 }
 0x80b   : > { %v978_v20 = vpack.c.bf16 %v967_v19, %v964_v17 }
 0x80d   : > { %2509 = vmatprep.mubr.msk.bf16.mxu0 %vm812_vm1, %v978_v20 }
 0x80e   : > { %2510 = vmatmul.mubr.msk.bf16.vlgmr.msra.gmra.mrb[8].mxu0 %vm812_vm1, %v979_v21 }
 0x812   : > { %v2519_v22 = vpop.f32.mrb[16].mxu1 }
 0x813   : > { %v1323_v23 = vpop.f32.mrb[17].mxu1  ;;  %v1339_v24 = vmul.f32 0.35355338, %v2519_v22 }
 0x814   : > { %v1337_v25 = vmul.f32 0.35355338, %v1323_v23  ;;  %v2520_v26 = vpop.f32.mrb[18].mxu1 }
 0x815   : > { %v1326_v27 = vpop.f32.mrb[19].mxu1  ;;  %v1342_v34 = vadd.f32 %v1339_v24, %v3925_v30 }
 0x816   : > { %v1338_v28 = vmul.f32 0.35355338, %v1326_v27  ;;  %v1340_v29 = vadd.f32 %v1337_v25, %v3925_v30 }
 0x817   : > { %v1349_v36 = vsel %vm879_vm3, %v1342_v34, -inf }
 0x818   : > { %v1343_v31 = vsel %vm879_vm3, %v1340_v29, -inf  ;;  %v1341_v33 = vadd.f32 %v1338_v28, %v3925_v30 }
 0x819   : > { %1344 = vmax.xlane.f32.xlu0 %v1343_v31 }
 0x81a   : > { %v1346_v35 = vsel %vm879_vm3, %v1341_v33, -inf }
 0x81b   : > { %1347 = vmax.xlane.f32.xlu1 %v1346_v35 }
 0x81d   : > { %1350 = vmax.xlane.f32.xlu0 %v1349_v36 }
 0x822   : > { %v2541_v32 = vpop.f32.mrb[20].mxu1 }
 0x823   : > { %v1557_v37 = vpop.f32.mrb[21].mxu1  ;;  %v1573_v5 = vmul.f32 0.35355338, %v2541_v32 }
 0x824   : > { %v2542_v39 = vpop.f32.mrb[22].mxu1  ;;  %v1571_v63 = vmul.f32 0.35355338, %v1557_v37 }
 0x825   : > { %v1560_v40 = vpop.f32.mrb[23].mxu1  ;;  %v1576_v11 = vadd.f32 %v1573_v5, %v3925_v30 }
 0x826   : > { %v1572_v1 = vmul.f32 0.35355338, %v1560_v40  ;;  %v1574_v6 = vadd.f32 %v1571_v63, %v3925_v30 }
 0x828   : > { %v1575_v8 = vadd.f32 %v1572_v1, %v3925_v30  ;;  %v1577_v9 = vsel %vm879_vm3, %v1574_v6, -inf }
 0x82a   : > { %v1580_v10 = vsel %vm879_vm3, %v1575_v8, -inf }
 0x8a6   : > { %v1345_v41 = vpop.xlane.xlu0 %1344 }
 0x8a7   : > { %v1352_v42 = vsub.f32 %v1340_v29, %v1345_v41 }
 0x8a8   : > { %v1348_v43 = vpop.xlane.xlu1 %1347 }
 0x8a9   : > { %v1355_v44 = vmul.f32 1.442695, %v1352_v42  ;;  %v1353_v45 = vsub.f32 %v1341_v33, %v1348_v43  ;;  %v1442_v43 = vld [vmem:[#allocation14 + $0x8] sm:$0xf] }
 0x8aa   : > { %v1351_v46 = vpop.xlane.xlu0 %1350 }
 0x8ab   : > { %2847 = vpow2.f32 %v1355_v44  ;;  %v1357_v47 = vmul.f32 1.442695, %v1353_v45  ;;  %v1354_v48 = vsub.f32 %v1342_v34, %v1351_v46  ;;  %v1450_v44 = vsel %vm926_vm4, %v1442_v43, 0 }
 0x8ad   : > { %2849 = vpow2.f32 %v1357_v47  ;;  %v1359_v49 = vmul.f32 1.442695, %v1354_v48 }
 0x8af   : > { %2851 = vpow2.f32 %v1359_v49 }
 0x8b5   : > { %v2848_v50 = vpop.eup %2847 }
 0x8b6   : > { %v1361_v51 = vsel %vm879_vm3, %v2848_v50, 0.0 }
 0x8b7   : > { %v2850_v52 = vpop.eup %2849  ;;  %1362 = vadd.xlane.f32.xlu0 %v1361_v51 }
 0x8b8   : > { %v1364_v55 = vsel %vm879_vm3, %v2850_v52, 0.0 }
 0x8b9   : > { %v2852_v53 = vpop.eup %2851 }
 0x8ba   : > { %v1367_v54 = vsel %vm879_vm3, %v2852_v53, 0.0 }
 0x8bb   : > { %1368 = vadd.xlane.f32.xlu1 %v1367_v54  ;;  %1365 = vadd.xlane.f32.xlu0 %v1364_v55 }
 0x8cc   : > { %1380 = vrot.lane.b32.xlu1 %v3897_v0, %s3382_s18 }
 0x8d1   : > { %1378 = vrot.lane.b32.xlu0 %v3900_v7, %s3382_s18  ;;  %s3384_s18 = smov [#allocation26]  }
 0x8e1   : > { %v2511_v56 = vpop.f32.mrb[8].mxu0 }
 0x8e2   : > { %v4005_v57 = vadd.f32 %v2511_v56, %v2505_v12  ;;  %v1255_v58 = vpop.f32.mrb[9].mxu0  ;;  %v1583_v12 = vsel %vm879_vm3, %v1576_v11, -inf }
 0x8e3   : > { %v4007_v59 = vadd.f32 %v1255_v58, %v1198_v13  ;;  %v2512_v60 = vpop.f32.mrb[10].mxu0 }
 0x8e4   : > { %v1258_v61 = vpop.f32.mrb[11].mxu0 }
 0x8e5   : > { %v4009_v62 = vadd.f32 %v1258_v61, %v1201_v15 }
 0x8f0   : > { %1578 = vmax.xlane.f32.xlu1 %v1577_v9  ;;  %1581 = vmax.xlane.f32.xlu0 %v1580_v10 }
 0x8f4   : > { %1584 = vmax.xlane.f32.xlu0 %v1583_v12 }
 0x944   : > { %v1363_v13 = vpop.xlane.xlu0 %1362 }
 0x945   : > { %2853 = vrcp.f32 %v1363_v13 }
 0x948   : > { %v1366_v14 = vpop.xlane.xlu0 %1365  ;;  %v1369_v15 = vpop.xlane.xlu1 %1368 }
 0x949   : > { %2855 = vrcp.f32 %v1366_v14 }
 0x94a   : > { %2857 = vrcp.f32 %v1369_v15 }
 0x94c   : > { %v1379_v16 = vpop.permute.xlu0 %1378  ;;  %v1381_v17 = vpop.permute.xlu1 %1380 }
 0x94d   : > { %2521 = vmatprep.subr.bf16.mxu0 %v1379_v16  ;;  %v1390_v30 = vsel %vm926_vm4, %v1381_v17, 0 }
 0x94e   : > { %2522 = vmatpush3.bf16.msra.mxu0 %v1379_v16 }
 0x94f   : > { %2595 = vmatprep.subr.msk.bf16.mxu0 %vm926_vm4, %v1381_v17  ;;  %v2854_v18 = vpop.eup %2853 }
 0x950   : > { %v1373_v21 = vmul.f32 %v2854_v18, %v2848_v50 }
 0x952   : > { %2524 = vmatpush3.bf16.msra.mxu0 %v1390_v30 }
 0x953   : > { %v2856_v19 = vpop.eup %2855  ;;  %2596 = vmatprep.subr.msk.bf16.mxu0 %vm926_vm4, %v1442_v43 }
 0x954   : > { %v2858_v20 = vpop.eup %2857  ;;  %v1374_v22 = vmul.f32 %v2856_v19, %v2850_v52 }
 0x955   : > { %v1375_v23 = vmul.f32 %v2858_v20, %v2852_v53 }
 0x956   : > { %v1376_v24 = vpack.c.bf16 %v1374_v22, %v1373_v21  ;;  %v1740_v21 = vld [vmem:[#allocation16] sm:$0x1] }
 0x957   : > { %v1377_v25 = vpack.c.bf16 %v1375_v23, %v1375_v23  ;;  %v1741_v22 = vunpack.c.l.bf16 %v1740_v21 }
 0x958   : > { %2525 = vmatprep.mubr.msk.bf16.mxu0 %vm879_vm3, %v1376_v24 }
 0x959   : > { %2526 = vmatmul.mubr.msk.bf16.vlgmr.msra.gmra.mrb[12].mxu0 %vm879_vm3, %v1377_v25 }
 0x95a   : > { %2530 = vmatpush3.bf16.msra.mxu0 %v1450_v44 }
 0x97d   : > { %v1582_v26 = vpop.xlane.xlu0 %1581  ;;  %v1579_v27 = vpop.xlane.xlu1 %1578 }
 0x97e   : > { %v1587_v28 = vsub.f32 %v1575_v8, %v1582_v26  ;;  %v1586_v31 = vsub.f32 %v1574_v6, %v1579_v27  ;;  %v1676_v6 = vld [vmem:[#allocation14 + $0xc] sm:$0xf] }
 0x97f   : > { %v1684_v8 = vsel %vm926_vm4, %v1676_v6, 0 }
 0x980   : > { %v1591_v29 = vmul.f32 1.442695, %v1587_v28  ;;  %v1589_v35 = vmul.f32 1.442695, %v1586_v31 }
 0x981   : > { %v1585_v33 = vpop.xlane.xlu0 %1584 }
 0x982   : > { %2859 = vpow2.f32 %v1591_v29  ;;  %v1588_v34 = vsub.f32 %v1576_v11, %v1585_v33 }
 0x984   : > { %v1593_v36 = vmul.f32 1.442695, %v1588_v34 }
 0x986   : > { %2861 = vpow2.f32 %v1593_v36 }
 0x987   : > { %2863 = vpow2.f32 %v1589_v35 }
 0x98c   : > { %v2860_v32 = vpop.eup %2859 }
 0x98d   : > { %v1598_v37 = vsel %vm879_vm3, %v2860_v32, 0.0 }
 0x98e   : > { %1599 = vadd.xlane.f32.xlu0 %v1598_v37 }
 0x990   : > { %v2862_v39 = vpop.eup %2861 }
 0x991   : > { %v1601_v40 = vsel %vm879_vm3, %v2862_v39, 0.0  ;;  %v2864_v41 = vpop.eup %2863 }
 0x992   : > { %1602 = vadd.xlane.f32.xlu1 %v1601_v40  ;;  %v1595_v42 = vsel %vm879_vm3, %v2864_v41, 0.0 }
 0x996   : > { %1596 = vadd.xlane.f32.xlu1 %v1595_v42 }
 0x9a4   : > { %1612 = vrot.lane.b32.xlu0 %v3900_v7, %s3383_s19 }
 0x9a7   : > { %1614 = vrot.lane.b32.xlu1 %v3897_v0, %s3383_s19  ;;  %s3253_s19 = sshll.u32 %s3384_s18, 4  ;;  %s3254_s19 = int_to_ptr.vmem [resolvable:$false] %s3253_s19 }
 0x9a8   : > { %s3255_s0 = scalar_lea.vmem %s3254_s19, 384  ;;  %p3256_p10 = scmp.lt.s32.totalorder %s4076_s22, %s3254_s19 }
 0x9a9   : > { %p3257_p13 = scmp.lt.s32.totalorder %s3255_s0, %s3249_s3 }
 0x9ab   : > { %p3258_p2 = por %p3257_p13, %p3256_p10 }
 0x9ad   : > { %p3259_p8 = pnand %p3258_p2, %p3252_p4 }
 0xa1b   : > { %v1600_v45 = vpop.xlane.xlu0 %1599 }
 0xa1c   : > { %2865 = vrcp.f32 %v1600_v45 }
 0xa1f   : > { %v1613_v46 = vpop.permute.xlu0 %1612  ;;  %v1603_v47 = vpop.xlane.xlu1 %1602 }
 0xa20   : > { %2543 = vmatprep.subr.bf16.mxu0 %v1613_v46 }
 0xa23   : > { %v1597_v48 = vpop.xlane.xlu1 %1596 }
 0xa24   : > { %2867 = vrcp.f32 %v1597_v48 }
 0xa25   : > { %2869 = vrcp.f32 %v1603_v47 }
 0xa26   : > { %v2866_v49 = vpop.eup %2865 }
 0xa27   : > { %v1608_v56 = vmul.f32 %v2866_v49, %v2860_v32  ;;  %v1615_v61 = vpop.permute.xlu1 %1614 }
 0xa28   : > { %v1624_v1 = vsel %vm926_vm4, %v1615_v61, 0 }
 0xa2c   : > { %v2527_v50 = vpop.f32.mrb[12].mxu0 }
 0xa2d   : > { %v1426_v51 = vpop.f32.mrb[13].mxu0  ;;  %v1441_v7 = vpack.c.bf16 %v2527_v50, %v2527_v50 }
 0xa2e   : > { %v2868_v52 = vpop.eup %2867  ;;  %v2528_v53 = vpop.f32.mrb[14].mxu0 }
 0xa2f   : > { %v1429_v54 = vpop.f32.mrb[15].mxu0  ;;  %v1607_v55 = vmul.f32 %v2868_v52, %v2864_v41  ;;  %v2870_v0 = vpop.eup %2869  ;;  %v2806_v52 = vld [vmem:[#allocation20 + $0x8] sm:$0xff]   ;;  %v2809_v53 = vld [vmem:[#allocation23] sm:$0xff]  }
 0xa30   : > { %v1440_v58 = vpack.c.bf16 %v1429_v54, %v1426_v51  ;;  %v1609_v63 = vmul.f32 %v2870_v0, %v2862_v39  ;;  %v2805_v51 = vld [vmem:[#allocation20] sm:$0xff]  }
 0xa31   : > { %v1610_v60 = vpack.c.bf16 %v1608_v56, %v1607_v55  ;;  %2557 = vmatprep.subr.bf16.mxu1 %v2805_v51  ;;  %v2810_v54 = vld [vmem:[#allocation23 + $0x8] sm:$0xff]  }
 0xa32   : > { %2531 = vmatprep.mubr.msk.bf16.mxu0 %vm812_vm1, %v1440_v58  ;;  %v1611_v5 = vpack.c.bf16 %v1609_v63, %v1609_v63  ;;  %2558 = vmatpush3.bf16.msra.mxu1 %v2805_v51  ;;  %v1791_v63 = vld [vmem:[#allocation17] sm:$0x1] }
 0xa33   : > { %2532 = vmatmul.mubr.msk.bf16.vlgmr.msra.gmra.mrb[16].mxu0 %vm812_vm1, %v1441_v7  ;;  %2559 = vmatprep.subr.bf16.mxu1 %v2806_v52 }
 0xa34   : > { %2544 = vmatpush3.bf16.msra.mxu0 %v1613_v46  ;;  %2547 = vmatprep.mubr.msk.bf16.mxu0 %vm879_vm3, %v1610_v60 }
 0xa35   : > { %2599 = vmatprep.subr.msk.bf16.mxu0 %vm926_vm4, %v1615_v61 }
 0xa36   : > { %2560 = vmatpush3.bf16.msra.mxu1 %v2806_v52 }
 0xa38   : > { %2546 = vmatpush3.bf16.msra.mxu0 %v1624_v1 }
 0xa39   : > { %2600 = vmatprep.subr.msk.bf16.mxu0 %vm926_vm4, %v1676_v6 }
 0xa3b   : > { %2548 = vmatmul.mubr.msk.bf16.vlgmr.msra.gmra.mrb[20].mxu0 %vm879_vm3, %v1611_v5  ;;  %v1800_v5 = vld [vmem:[#allocation19] sm:$0x1] }
 0xa3c   : > { %2552 = vmatpush3.bf16.msra.mxu0 %v1684_v8  ;;  %v1792_v8 = vunpack.c.l.bf16 %v1791_v63  ;;  %v1933_v63 = vld [vmem:[#allocation4 + $0x8] sm:$0xff] }
 0xa3d   : > { %2565 = vmatprep.subr.bf16.mxu0 %v2809_v53 }
 0xb06   : > { %v2533_v9 = vpop.f32.mrb[16].mxu0 }
 0xb07   : > { %v1502_v10 = vadd.f32 %v2533_v9, %v4005_v57  ;;  %v1486_v11 = vpop.f32.mrb[17].mxu0  ;;  %v1801_v9 = vunpack.c.l.bf16 %v1800_v5 }
 0xb08   : > { %v1500_v12 = vadd.f32 %v1486_v11, %v4007_v59  ;;  %v2534_v13 = vpop.f32.mrb[18].mxu0  ;;  %v1745_v59 = vrot.slane %v1741_v22, %v3890_v38 }
 0xb09   : > { %v1489_v14 = vpop.f32.mrb[19].mxu0 }
 0xb0a   : > { %v1501_v15 = vadd.f32 %v1489_v14, %v4009_v62 }
 0xb0e   : > { %v2549_v16 = vpop.f32.mrb[20].mxu0 }
 0xb0f   : > { %v1660_v17 = vpop.f32.mrb[21].mxu0  ;;  %v1675_v20 = vpack.c.bf16 %v2549_v16, %v2549_v16 }
 0xb10   : > { %v2550_v18 = vpop.f32.mrb[22].mxu0 }
 0xb11   : > { %v1663_v30 = vpop.f32.mrb[23].mxu0 }
 0xb12   : > { %v1674_v19 = vpack.c.bf16 %v1663_v30, %v1660_v17 }
 0xb14   : > { %2553 = vmatprep.mubr.msk.bf16.mxu0 %vm812_vm1, %v1674_v19 }
 0xb15   : > { %2554 = vmatmul.mubr.msk.bf16.vlgmr.msra.gmra.mrb[24].mxu0 %vm812_vm1, %v1675_v20 }
 0xb16   : > { %2566 = vmatpush3.bf16.msra.mxu0 %v2809_v53 }
 0xb17   : > { %2567 = vmatprep.subr.bf16.mxu0 %v2810_v54 }
 0xb1a   : > { %2568 = vmatpush3.bf16.msra.mxu0 %v2810_v54 }
 0xbe8   : > { %v2555_v57 = vpop.f32.mrb[24].mxu0 }
 0xbe9   : > { %v1736_v23 = vadd.f32 %v2555_v57, %v1502_v10  ;;  %v1720_v24 = vpop.f32.mrb[25].mxu0  ;;  %v1796_v10 = vrot.slane %v1792_v8, %v3890_v38 }
 0xbea   : > { %v1734_v25 = vadd.f32 %v1720_v24, %v1500_v12  ;;  %v2556_v26 = vpop.f32.mrb[26].mxu0  ;;  %v1805_v12 = vrot.slane %v1801_v9, %v3890_v38 }
 0xbeb   : > { %v1739_v62 = vadd.f32 %v1736_v23, %v3873_v3  ;;  %v1723_v27 = vpop.f32.mrb[27].mxu0  ;;  %v2811_v26 = vld [vmem:[#allocation23 + $0x10] sm:$0xff]  }
 0xbec   : > { %v1737_v28 = vadd.f32 %v3871_v2, %v1734_v25  ;;  %v1735_v29 = vadd.f32 %v1723_v27, %v1501_v15  ;;  %2569 = vmatprep.subr.bf16.mxu0 %v2811_v26  ;;  %v2813_v27 = vld [vmem:[#allocation23 + $0x20] sm:$0xff]  }
 0xbed   : > { %v1748_v31 = vadd.f32 %v1745_v59, %v1739_v62  ;;  %2570 = vmatpush3.bf16.msra.mxu0 %v2811_v26  ;;  %v2812_v62 = vld [vmem:[#allocation23 + $0x18] sm:$0xff]  }
 0xbee   : > { %v1746_v33 = vadd.f32 %v1745_v59, %v1737_v28  ;;  %v1738_v34 = vadd.f32 %v3875_v4, %v1735_v29  ;;  %2571 = vmatprep.subr.bf16.mxu0 %v2812_v62  ;;  %v2814_v28 = vld [vmem:[#allocation23 + $0x28] sm:$0xff]   ;;  %v2815_v29 = vld [vmem:[#allocation23 + $0x30] sm:$0xff]  }
 0xbef   : > { %1751 = vst.msk [vmem:[#allocation2 + $0x10] sm:$0xff] %vm663_vm0, %v1748_v31  ;;  %v1758_v2 = vsel %vm663_vm0, %v1748_v31, 0.0 }
 0xbf0   : > { %1749 = vst.msk [vmem:[#allocation2] sm:$0xff] %vm663_vm0, %v1746_v33  ;;  %v1747_v35 = vadd.f32 %v1745_v59, %v1738_v34  ;;  %v1752_v36 = vsel %vm663_vm0, %v1746_v33, 0.0 }
 0xbf1   : > { %1753 = vadd.xlane.f32.xlu1 %v1752_v36  ;;  %2572 = vmatpush3.bf16.msra.mxu0 %v2812_v62 }
 0xbf2   : > { %1750 = vst.msk [vmem:[#allocation2 + $0x8] sm:$0xff] %vm663_vm0, %v1747_v35  ;;  %v1755_v3 = vsel %vm663_vm0, %v1747_v35, 0.0  ;;  %2573 = vmatprep.subr.bf16.mxu0 %v2813_v27 }
 0xbf3   : > { %1756 = vadd.xlane.f32.xlu0 %v1755_v3 }
 0xbf5   : > { %2574 = vmatpush3.bf16.msra.mxu0 %v2813_v27 }
 0xbf6   : > { %2575 = vmatprep.subr.bf16.mxu0 %v2814_v28 }
 0xbf7   : > { %1759 = vadd.xlane.f32.xlu0 %v1758_v2 }
 0xbf9   : > { %2576 = vmatpush3.bf16.msra.mxu0 %v2814_v28 }
 0xbfa   : > { %2577 = vmatprep.subr.bf16.mxu0 %v2815_v29 }
 0xbfd   : > { %2578 = vmatpush3.bf16.msra.mxu0 %v2815_v29 }
 0xc7e   : > { %v1754_v32 = vpop.xlane.xlu1 %1753 }
 0xc7f   : > { %v1761_v37 = vmul.f32 0.03125, %v1754_v32 }
 0xc80   : > { %v1757_v39 = vpop.xlane.xlu0 %1756 }
 0xc81   : > { %v1764_v4 = vsub.f32 %v1746_v33, %v1761_v37  ;;  %v1762_v40 = vmul.f32 0.03125, %v1757_v39  ;;  %v1836_v33 = vld [vmem:[#allocation22] sm:$0x1] }
 0xc82   : > { %v1837_v34 = vunpack.c.l.bf16 %v1836_v33 }
 0xc83   : > { %v1765_v41 = vsub.f32 %v1747_v35, %v1762_v40  ;;  %v1767_v42 = vmul.f32 %v1764_v4, %v1764_v4 }
 0xc84   : > { %v1760_v43 = vpop.xlane.xlu0 %1759  ;;  %v1841_v35 = vrot.slane %v1837_v34, %v3890_v38 }
 0xc85   : > { %v1763_v44 = vmul.f32 0.03125, %v1760_v43  ;;  %v1770_v45 = vsel %vm663_vm0, %v1767_v42, 0.0  ;;  %v1768_v46 = vmul.f32 %v1765_v41, %v1765_v41 }
 0xc86   : > { %1771 = vadd.xlane.f32.xlu1 %v1770_v45 }
 0xc87   : > { %v1766_v47 = vsub.f32 %v1748_v31, %v1763_v44  ;;  %v1773_v48 = vsel %vm663_vm0, %v1768_v46, 0.0  ;;  %v2816_v31 = vld [vmem:[#allocation23 + $0x38] sm:$0xff]  }
 0xc88   : > { %1774 = vadd.xlane.f32.xlu0 %v1773_v48  ;;  %2579 = vmatprep.subr.bf16.mxu0 %v2816_v31 }
 0xc89   : > { %v1769_v49 = vmul.f32 %v1766_v47, %v1766_v47  ;;  %2580 = vmatpush3.bf16.msra.mxu0 %v2816_v31 }
 0xc8b   : > { %v1776_v50 = vsel %vm663_vm0, %v1769_v49, 0.0 }
 0xc8c   : > { %1777 = vadd.xlane.f32.xlu1 %v1776_v50 }
 0xd13   : > { %v1772_v55 = vpop.xlane.xlu1 %1771 }
 0xd14   : > { %v1779_v56 = vmul.f32 0.03125, %v1772_v55 }
 0xd15   : > { %v1775_v58 = vpop.xlane.xlu0 %1774 }
 0xd16   : > { %v1782_v7 = vadd.f32 1e-05, %v1779_v56  ;;  %v1780_v60 = vmul.f32 0.03125, %v1775_v58  ;;  %v1934_v58 = vld [vmem:[#allocation4 + $0x10] sm:$0xff] }
 0xd18   : > { %2871 = vrsqrt.f32 %v1782_v7  ;;  %v1783_v0 = vadd.f32 1e-05, %v1780_v60  ;;  %v1932_v7 = vld [vmem:[#allocation4] sm:$0xff] }
 0xd19   : > { %v1778_v61 = vpop.xlane.xlu1 %1777 }
 0xd1a   : > { %2873 = vrsqrt.f32 %v1783_v0  ;;  %v1781_v1 = vmul.f32 0.03125, %v1778_v61 }
 0xd1c   : > { %v1784_v6 = vadd.f32 1e-05, %v1781_v1 }
 0xd1e   : > { %2875 = vrsqrt.f32 %v1784_v6  ;;  %v2067_v6 = vld [vmem:[#allocation25] sm:$0x1] }
 0xd22   : > { %v2872_v11 = vpop.eup %2871 }
 0xd23   : > { %v1788_v13 = vmul.f32 %v2872_v11, %v1764_v4 }
 0xd24   : > { %v2874_v14 = vpop.eup %2873 }
 0xd25   : > { %v1797_v15 = vmul.f32 %v1796_v10, %v1788_v13  ;;  %v1789_v16 = vmul.f32 %v2874_v14, %v1765_v41  ;;  %v2058_v14 = vld [vmem:[#allocation2] sm:$0xff] }
 0xd27   : > { %v1806_v17 = vadd.f32 %v1805_v12, %v1797_v15  ;;  %v1798_v18 = vmul.f32 %v1796_v10, %v1789_v16 }
 0xd28   : > { %v2876_v30 = vpop.eup %2875 }
 0xd29   : > { %v2389_v19 = vpack.c.bf16 %v1806_v17, %v1806_v17  ;;  %v1807_v20 = vadd.f32 %v1805_v12, %v1798_v18  ;;  %v1790_v21 = vmul.f32 %v2876_v30, %v1766_v47  ;;  %v2059_v18 = vld [vmem:[#allocation2 + $0x8] sm:$0xff] }
 0xd2b   : > { %1823 = vst.msk [vmem:[#allocation3] sm:$0xf] %vm1822_vm5, %v2389_v19  ;;  %v2390_v22 = vpack.c.bf16 %v1807_v20, %v1807_v20  ;;  %v1799_v57 = vmul.f32 %v1796_v10, %v1790_v21  ;;  %v2068_v10 = vunpack.c.l.bf16 %v2067_v6 }
 0xd2d   : > { %1824 = vst.msk [vmem:[#allocation3 + $0x4] sm:$0xf] %vm1822_vm5, %v2390_v22  ;;  %v1808_v23 = vadd.f32 %v1805_v12, %v1799_v57  ;;  %v2072_v11 = vrot.slane %v2068_v10, %v3890_v38  ;;  %v2060_v12 = vld [vmem:[#allocation2 + $0x10] sm:$0xff] }
 0xd2f   : > { %v2391_v59 = vpack.c.bf16 %v1808_v23, %v1808_v23 }
 0xd31   : > { %1825 = vst.msk [vmem:[#allocation3 + $0x8] sm:$0xf] %vm1822_vm5, %v2391_v59 }
 0xd34   : > { %v2807_v24 = vld [vmem:[#allocation3] sm:$0xff]  }
 0xd35   : > { %2561 = vmatprep.mubr.msk.bf16.mxu1 %vm663_vm0, %v2807_v24 }
 0xd38   : > { %v2808_v25 = vld [vmem:[#allocation3 + $0x8] ss:$0 sps:$4 sm:$0xff]  }
 0xd39   : > { %2562 = vmatmul.mubr.msk.bf16.vlgmr.msra.gmra.mrb[24].mxu1 %vm663_vm0, %v2808_v25 }
 0xe0c   : > { %v2563_v36 = vpop.f32.mrb[24].mxu1 }
 0xe0d   : > { %v1912_v3 = vadd.f32 %v2563_v36, %v1841_v35  ;;  %v1903_v2 = vpop.f32.mrb[25].mxu1 }
 0xe0e   : > { %v1904_v32 = vadd.f32 %v1903_v2, %v1841_v35  ;;  %v2564_v37 = vpop.f32.mrb[26].mxu1 }
 0xe0f   : > { %v1922_v39 = vmul.f32 0.70710677, %v1912_v3  ;;  %v1906_v4 = vpop.f32.mrb[27].mxu1  ;;  %v1919_v48 = vmul.f32 0.5, %v1912_v3 }
 0xe10   : > { %v1920_v40 = vmul.f32 0.70710677, %v1904_v32  ;;  %v1907_v41 = vadd.f32 %v1906_v4, %v1841_v35  ;;  %v1917_v49 = vmul.f32 0.5, %v1904_v32 }
 0xe11   : > { %2877 = verf.f32 %v1922_v39 }
 0xe12   : > { %2879 = verf.f32 %v1920_v40  ;;  %v1921_v42 = vmul.f32 0.70710677, %v1907_v41  ;;  %v1918_v50 = vmul.f32 0.5, %v1907_v41 }
 0xe14   : > { %2881 = verf.f32 %v1921_v42 }
 0xe1b   : > { %v2878_v43 = vpop.eup %2877 }
 0xe1c   : > { %v2880_v44 = vpop.eup %2879  ;;  %v1928_v45 = vadd.f32 1.0, %v2878_v43 }
 0xe1d   : > { %v1926_v46 = vadd.f32 1.0, %v2880_v44 }
 0xe1e   : > { %v2882_v47 = vpop.eup %2881  ;;  %v1931_v52 = vmul.f32 %v1928_v45, %v1919_v48 }
 0xe1f   : > { %v1927_v51 = vadd.f32 1.0, %v2882_v47  ;;  %v1929_v53 = vmul.f32 %v1926_v46, %v1917_v49 }
 0xe20   : > { %v1936_v56 = vpack.c.bf16 %v1931_v52, %v1931_v52 }
 0xe21   : > { %v1930_v54 = vmul.f32 %v1927_v51, %v1918_v50 }
 0xe23   : > { %v1935_v55 = vpack.c.bf16 %v1930_v54, %v1929_v53 }
 0xe25   : > { %2581 = vmatprep.mubr.bf16.mxu0 %v1935_v55 }
 0xe26   : > { %2582 = vmatmul.mubr.bf16.vlgmr.msra.gmra.mrb[28].mxu0 %v1936_v56 }
 0xef9   : > { %v2583_v60 = vpop.f32.mrb[28].mxu0 }
 0xefa   : > { %v2051_v0 = vadd.f32 %v2583_v60, %v1934_v58  ;;  %v2035_v61 = vpop.f32.mrb[29].mxu0 }
 0xefb   : > { %v2049_v1 = vadd.f32 %v2035_v61, %v1932_v7  ;;  %v2584_v5 = vpop.f32.mrb[30].mxu0 }
 0xefc   : > { %2054 = vst.msk [vmem:[#allocation4 + $0x10] sm:$0xff] %vm663_vm0, %v2051_v0  ;;  %v2038_v8 = vpop.f32.mrb[31].mxu0 }
 0xefd   : > { %2052 = vst.msk [vmem:[#allocation4] sm:$0xff] %vm663_vm0, %v2049_v1  ;;  %v2050_v9 = vadd.f32 %v2038_v8, %v1933_v63 }
 0xeff   : > { %2053 = vst.msk [vmem:[#allocation4 + $0x8] sm:$0xff] %vm663_vm0, %v2050_v9 }
 0xf03   : > { %v2063_v13 = vld [vmem:[#allocation4 + $0x10] sm:$0xff] }
 0xf04   : > { %v2061_v15 = vld [vmem:[#allocation4] sm:$0xff]  ;;  %v2066_v16 = vadd.f32 %v2063_v13, %v2060_v12 }
 0xf05   : > { %v2064_v17 = vadd.f32 %v2061_v15, %v2058_v14 }
 0xf06   : > { %v2062_v30 = vld [vmem:[#allocation4 + $0x8] sm:$0xff]  ;;  %v2075_v19 = vadd.f32 %v2072_v11, %v2066_v16 }
 0xf07   : > { %v2065_v20 = vadd.f32 %v2062_v30, %v2059_v18  ;;  %v2073_v21 = vadd.f32 %v2072_v11, %v2064_v17 }
 0xf08   : > { %v2394_v22 = vpack.c.bf16 %v2075_v19, %v2075_v19 }
 0xf09   : > { %v2074_v57 = vadd.f32 %v2072_v11, %v2065_v20  ;;  %v2392_v38 = vpack.c.bf16 %v2073_v21, %v2073_v21 }
 0xf0a   : > { %2092 = vst.msk [vmem:[%s650_s16 + $0x8] sm:$0xf] %vm1822_vm5, %v2394_v22 }
 0xf0b   : > { %v2393_v23 = vpack.c.bf16 %v2074_v57, %v2074_v57  ;;  %2090 = vst.msk [vmem:[%s650_s16] sm:$0xf] %vm1822_vm5, %v2392_v38 }
 0xf0d   : > { %2091 = vst.msk [vmem:[%s650_s16 + $0x4] sm:$0xf] %vm1822_vm5, %v2393_v23 }
 0xf0e   : > { %3262 = shalt.err (!%p3259_p8)
}
 0xf0f   : > { %s3263_s25 = scalar_lea.hbm %s4073_s15, 192  ;;  %s3267_s21 = scalar_lea.hbm %s4189_s2, 384 }
 0xf10   : > { %p3264_p9 = scmp.ne.s32.totalorder %s4073_s15, %s3263_s25  ;;  %p3268_p3 = scmp.lt.u32.totalorder %s4073_s15, %s4189_s2 }
 0xf11   : > { %p3269_p7 = scmp.lt.u32.totalorder %s3267_s21, %s3263_s25  ;;  %p3271_p11 = scmp.lt.u32.totalorder %s3263_s25, %s4073_s15 }
 0xf12   : > { %p3265_p1 = pnand %p3264_p9, %p4190_p0 }
 0xf13   : > { %p3270_p12 = por %p3269_p7, %p3268_p3 }
 0xf14   : > { %p3266_p6 = pneg %p3265_p1 }
 0xf15   : > { %p3272_p5 = por %p3271_p11, %p3270_p12 }
 0xf17   : > { %p3273_p4 = pnand %p3272_p5, %p3266_p6 }
 0xf19   : > { %3276 = shalt.err (!%p3273_p4)
}
 0xf1a   : > { %s3385_s3 = smov 4  }
 0xf1b   : > { %2655 = dma.vmem_to_hbm [thread:$0]  (%p4190_p0), %s4076_s22, 192, %s4073_s15, %s2094_s23, %s3379_s4, %s3379_s4, %s3385_s3  }
 0xf1c PF: > { %s4191_s0 = sld [smem:[#allocation35_spill]]  ;;  %p4192_p10 = scmp.ne.s32.totalorder %s4179_s1, 0 }
 0xf1d   : > { %p4193_p13 = scmp.ge.s32.totalorder %s3355_s30, 2 }
 0xf1f   : > { %p2699_p2 = pnand %p4193_p13, %p4192_p10 }
 0xf22   : > { %s2122_s16 = sand.u32 1, %s4191_s0  }
 0xf23   : > { %s2123_s25 = scalar_lea.sflag [#allocation7], %s2122_s16 }
 0xf24   : > { %3330 = dma.done.wait (!%p2699_p2), %s2123_s25, 192  }
 0xf25   : > { %3332 = vsyncadd (!%p2699_p2), %s2123_s25, 4294967104  ;;  %s35_s30 = sadd.s32 1, %s3355_s30   ;;  %s4194_s25 = smov %s3339_s26 }
 0xf26   : > { %p32_p8 = scmp.ge.s32.totalorder %s35_s30, 4   ;;  %s4195_s26 = smov %s3343_s27 }
 0xf27   : > { %s4196_s27 = smov %s3781_s13  ;;  %s4197_s28 = smov %s3351_s29 }
 0xf28   : > { %s4198_s29 = smov %s4200_s24  ;;  %34 = sbr.rel (!%p32_p8) target bundleno = 19 (0x13), region = 176 }
 0xf2f   :  { %2128 = vsyncpa [#allocation6], 1 }
 0xf30   :  { %2130 = vsyncpa [#allocation6 + $0x1], 1 }
 0xf31   :  { %2131 = vsyncpa [#allocation9], 1 }
 0xf32   :  { %2132 = vsyncpa [#allocation12], 1 }
 0xf33   :  { %2133 = vsyncpa [#allocation15], 1 }
 0xf34   :  { %2134 = vsyncpa [#allocation18], 1 }
 0xf35   :  { %2135 = vsyncpa [#allocation21], 1 }
 0xf36   :  { %2136 = vsyncpa [#allocation24], 1 }
 0xf37   :  { %2137 = vsyncpa [#allocation7], 1 }
 0xf38   :  { %2139 = vsyncpa [#allocation7 + $0x1], 1 }

</bundles_post_ra>
